<compile_context>
chip_gen: v5e
topology: v5e:2x2
jax: 0.10.0
libtpu: 0.0.40
codegen_flags: <defaults>
</compile_context>

<pallas_src>
import numpy as np

import jax
import jax.numpy as jnp
from jax import lax
from jax.experimental import pallas as pl
from jax.experimental.pallas import tpu as pltpu

NUM_CLASSES = 10
F32 = jnp.float32


# ----------------------------- fused kernel ---------------------------------

def make_fused_kernel(TB, H, W, C1, C2, C3):
    H2, W2, H4, W4 = H // 2, W // 2, H // 4, W // 4
    Hp1, Wp1 = H2 + 2, W2 + 2                  # zero-padded pool1 map dims
    Hp2, Wp2 = H4 + 2, W4 + 2                  # zero-padded pool2 map dims
    L1, L2 = H * W - W, H2 * W2 - W2           # shifted-max lengths
    PP1 = ((Hp1 * Wp1 + 7) // 8) * 8           # 8-aligned selection row count
    PP2 = ((Hp2 * Wp2 + 7) // 8) * 8
    P1, P3 = H2 * W2, H4 * W4

    def kernel(x1_ref, w1_ref, b1_ref, w2_ref, b2_ref, w3_ref, b3_ref,
               wh_ref, bh_ref, wc_ref, bc_ref, s1_ref, s2_ref,
               o_ref, p1_ref, im2_ref, p2_ref, im3_ref):
        # ---- conv1 + relu: one im2col matmul, M = TB*H*W, K = 9 ------------
        y1 = jnp.dot(x1_ref[0], w1_ref[...], preferred_element_type=F32)
        y1 = jnp.maximum(y1 + b1_ref[...], 0.0)                # (TB*H*W, C1)

        # ---- pool1: aligned vertical shifted max + stacked selection matmul
        y1r = y1.reshape(TB, H * W, C1)
        v1 = jnp.maximum(y1r[:, :L1, :], y1r[:, W:, :])        # (TB, L1, C1)
        st1 = lax.dot_general(
            s1_ref[...], v1,
            dimension_numbers=(((2,), (1,)), ((0,), (0,))),
            preferred_element_type=F32)                        # (TB, 2*PP1, C1)
        pad1 = jnp.maximum(st1[:, :PP1, :], st1[:, PP1:, :])
        # padded pooled map (halo rows already zero): one aligned full store
        p1_ref[...] = pad1[:, :Hp1 * Wp1, :].reshape(TB, Hp1, Wp1, C1)

        # ---- conv2 + relu: tap-granularity im2col slab, one matmul ---------
        for dh in range(3):
            for dw in range(3):
                t = 3 * dh + dw
                im2_ref[:, :, :, C1 * t:C1 * (t + 1)] = \
                    p1_ref[:, dh:dh + H2, dw:dw + W2, :]
        y2 = jnp.dot(im2_ref[...].reshape(TB * P1, 9 * C1), w2_ref[...],
                     preferred_element_type=F32)
        y2 = jnp.maximum(y2 + b2_ref[...], 0.0)                # (TB*P1, C2)

        # ---- pool2 ----------------------------------------------------------
        y2r = y2.reshape(TB, P1, C2)
        v2 = jnp.maximum(y2r[:, :L2, :], y2r[:, W2:, :])       # (TB, L2, C2)
        st2 = lax.dot_general(
            s2_ref[...], v2,
            dimension_numbers=(((2,), (1,)), ((0,), (0,))),
            preferred_element_type=F32)                        # (TB, 2*PP2, C2)
        pad2 = jnp.maximum(st2[:, :PP2, :], st2[:, PP2:, :])
        p2_ref[...] = pad2[:, :Hp2 * Wp2, :].reshape(TB, Hp2, Wp2, C2)

        # ---- conv3 + relu ----------------------------------------------------
        for dh in range(3):
            for dw in range(3):
                t = 3 * dh + dw
                im3_ref[:, :, :, C2 * t:C2 * (t + 1)] = \
                    p2_ref[:, dh:dh + H4, dw:dw + W4, :]
        y3 = jnp.dot(im3_ref[...].reshape(TB * P3, 9 * C2), w3_ref[...],
                     preferred_element_type=F32)
        y3 = jnp.maximum(y3 + b3_ref[...], 0.0)                # (TB*P3, C3)

        # ---- head: fused [feature | replicated attention] 1x1 convs ---------
        h = jnp.dot(y3, wh_ref[...], preferred_element_type=F32) + bh_ref[...]
        att = jax.nn.sigmoid(h[:, C3:2 * C3])                  # (TB*P3, C3)
        attended = h[:, :C3] * att                             # (TB*P3, C3)
        pooled = jnp.mean(attended.reshape(TB, P3, C3), axis=1)  # (TB, C3)

        # ---- classifier: lane-dense 128-wide rows ----------------------------
        o_ref[...] = (jnp.dot(pooled, wc_ref[...], preferred_element_type=F32)
                      + bc_ref[...])

    return kernel


# ------------------------------ JAX wrapper ---------------------------------

def _pick_tb(B):
    if B % 16 == 0:
        return 16
    if B % 8 == 0:
        return 8
    assert B <= 32, "pad the batch to a multiple of 8 for larger batches"
    return B


def _pool_select(Hc, Wc, TB):
    """Constant 0/1 selection matrix for a 2x2/stride-2 max pool.

    Applied to vmax[l] = max(y[l], y[l+Wc]) (l < Hc*Wc - Wc); output rows are
    indexed over the zero-padded (Hc/2+2, Wc/2+2) map, stacked [even; odd]
    halves (each padded to a multiple of 8 rows).  Halo rows are all-zero.
    """
    Ho, Wo = Hc // 2, Wc // 2
    Hp, Wp = Ho + 2, Wo + 2
    L = Hc * Wc - Wc
    PP = ((Hp * Wp + 7) // 8) * 8
    S = np.zeros((2 * PP, L), np.float32)
    for i in range(Ho):
        for j in range(Wo):
            row = (i + 1) * Wp + (j + 1)
            col = (2 * i) * Wc + 2 * j
            S[row, col] = 1.0              # max(y[2i,2j],   y[2i+1,2j])
            S[PP + row, col + 1] = 1.0     # max(y[2i,2j+1], y[2i+1,2j+1])
    return jnp.asarray(np.broadcast_to(S[None], (TB, 2 * PP, L)))


def forward_pallas(x_nchw, p):
    B, Cin, H, W = x_nchw.shape
    assert Cin == 1 and H % 4 == 0 and W % 4 == 0
    C1, C2, C3 = 32, 64, 64
    assert 2 * C3 == 128 and NUM_CLASSES <= 128
    H2, W2, H4, W4 = H // 2, W // 2, H // 4, W // 4
    TB = _pick_tb(B)
    G = B // TB

    # conv1 im2col (Cin == 1 -> 9 tiny columns), TB images per grid block.
    x = x_nchw[:, 0]                                           # (B, H, W)
    xp = jnp.pad(x, ((0, 0), (1, 1), (1, 1)))
    x1 = jnp.stack([xp[:, dh:dh + H, dw:dw + W].reshape(B, H * W)
                    for dh in range(3) for dw in range(3)], axis=-1)
    x1 = x1.reshape(G, TB * H * W, 9)

    # im2col conv weights: row index = (dh*3 + dw)*Cin + ci.
    w1 = jnp.transpose(p["conv1_w"], (2, 3, 1, 0)).reshape(9 * Cin, C1)
    w2 = jnp.transpose(p["conv2_w"], (2, 3, 1, 0)).reshape(9 * C1, C2)
    w3 = jnp.transpose(p["conv3_w"], (2, 3, 1, 0)).reshape(9 * C2, C3)
    b1 = p["conv1_b"].reshape(1, C1)
    b2 = p["conv2_b"].reshape(1, C2)
    b3 = p["conv3_b"].reshape(1, C3)

    # fused [feature | attention-replicated] 1x1-conv weight (C3, 128).
    wh = jnp.concatenate(
        [p["feat_w"][:, :, 0, 0].T,
         jnp.broadcast_to(p["att_w"][:, :, 0, 0].T, (C3, C3))], axis=1)
    bh = jnp.concatenate(
        [p["feat_b"], jnp.broadcast_to(p["att_b"], (C3,))]).reshape(1, 2 * C3)

    # classifier padded to a lane-dense 128-wide output.
    wc = jnp.zeros((C3, 128), F32).at[:, :NUM_CLASSES].set(p["cls_w"].T)
    bc = jnp.zeros((1, 128), F32).at[0, :NUM_CLASSES].set(p["cls_b"])

    # constant pooling-selection matrices (resident in VMEM across the grid).
    s1 = _pool_select(H, W, TB)
    s2 = _pool_select(H2, W2, TB)

    kernel = make_fused_kernel(TB, H, W, C1, C2, C3)
    c2 = lambda g: (0, 0)
    c3 = lambda g: (0, 0, 0)

    flops = 2 * B * (H * W * 9 * C1
                     + s1.shape[1] * s1.shape[2] * C1
                     + H2 * W2 * 9 * C1 * C2
                     + s2.shape[1] * s2.shape[2] * C2
                     + H4 * W4 * 9 * C2 * C3
                     + H4 * W4 * C3 * 2 * C3
                     + C3 * 128)
    bytes_accessed = 4 * (B * (H * W * 9 + 128)
                          + 9 * Cin * C1 + 9 * C1 * C2 + 9 * C2 * C3
                          + 2 * C3 * 128 + C1 + C2 + C3 + 2 * 128
                          + int(s1.size) + int(s2.size))

    out = pl.pallas_call(
        kernel,
        out_shape=jax.ShapeDtypeStruct((B, 128), F32),
        grid=(G,),
        in_specs=[
            pl.BlockSpec((1, TB * H * W, 9), lambda g: (g, 0, 0)),
            pl.BlockSpec((9 * Cin, C1), c2),
            pl.BlockSpec((1, C1), c2),
            pl.BlockSpec((9 * C1, C2), c2),
            pl.BlockSpec((1, C2), c2),
            pl.BlockSpec((9 * C2, C3), c2),
            pl.BlockSpec((1, C3), c2),
            pl.BlockSpec((C3, 2 * C3), c2),
            pl.BlockSpec((1, 2 * C3), c2),
            pl.BlockSpec((C3, 128), c2),
            pl.BlockSpec((1, 128), c2),
            pl.BlockSpec(s1.shape, c3),
            pl.BlockSpec(s2.shape, c3),
        ],
        out_specs=pl.BlockSpec((TB, 128), lambda g: (g, 0)),
        scratch_shapes=[
            pltpu.VMEM((TB, H2 + 2, W2 + 2, C1), F32),   # padded pool1 map
            pltpu.VMEM((TB, H2, W2, 9 * C1), F32),       # conv2 im2col slab
            pltpu.VMEM((TB, H4 + 2, W4 + 2, C2), F32),   # padded pool2 map
            pltpu.VMEM((TB, H4, W4, 9 * C2), F32),       # conv3 im2col slab
        ],
        compiler_params=pltpu.CompilerParams(
            dimension_semantics=("parallel",),
            vmem_limit_bytes=48 * 1024 * 1024),
        cost_estimate=pl.CostEstimate(
            flops=int(flops),
            transcendentals=int(B * H4 * W4 * C3),
            bytes_accessed=int(bytes_accessed)),
    )(x1, w1, b1, w2, b2, w3, b3, wh, bh, wc, bc, s1, s2)
    return out[:, :NUM_CLASSES]


# ------------------------------ pure-JAX reference --------------------------

def forward_reference(x_nchw, p):
    x = jnp.transpose(x_nchw, (0, 2, 3, 1))

    def conv3x3(x, w_oihw, b):
        w = jnp.transpose(w_oihw, (2, 3, 1, 0))
        y = lax.conv_general_dilated(
            x, w, (1, 1), "SAME",
            dimension_numbers=("NHWC", "HWIO", "NHWC")) + b
        return jnp.maximum(y, 0.0)

    def pool(x):
        B, H, W, C = x.shape
        return x.reshape(B, H // 2, 2, W // 2, 2, C).max(axis=(2, 4))

    x = pool(conv3x3(x, p["conv1_w"], p["conv1_b"]))
    x = pool(conv3x3(x, p["conv2_w"], p["conv2_b"]))
    x = conv3x3(x, p["conv3_w"], p["conv3_b"])
    wa = p["att_w"][:, :, 0, 0].T
    wf = p["feat_w"][:, :, 0, 0].T
    att = jax.nn.sigmoid(jnp.einsum("bhwc,cd->bhwd", x, wa) + p["att_b"])
    feat = jnp.einsum("bhwc,cd->bhwd", x, wf) + p["feat_b"]
    pooled = (feat * att).mean(axis=(1, 2))
    return pooled @ p["cls_w"].T + p["cls_b"]


# --------------------------------- params -----------------------------------

def init_params(key):
    ks = jax.random.split(key, 12)
    n = lambda k, s, sc: (sc * jax.random.normal(k, s, F32))
    return {
        "conv1_w": n(ks[0], (32, 1, 3, 3), 0.3),   "conv1_b": n(ks[1], (32,), 0.1),
        "conv2_w": n(ks[2], (64, 32, 3, 3), 0.1),  "conv2_b": n(ks[3], (64,), 0.1),
        "conv3_w": n(ks[4], (64, 64, 3, 3), 0.05), "conv3_b": n(ks[5], (64,), 0.1),
        "att_w":   n(ks[6], (1, 64, 1, 1), 0.1),   "att_b":   n(ks[7], (1,), 0.1),
        "feat_w":  n(ks[8], (64, 64, 1, 1), 0.1),  "feat_b":  n(ks[9], (64,), 0.1),
        "cls_w":   n(ks[10], (NUM_CLASSES, 64), 0.1),
        "cls_b":   n(ks[11], (NUM_CLASSES,), 0.1),
    }


if __name__ == "__main__":
    key = jax.random.PRNGKey(0)
    k_x, k_p = jax.random.split(key)
    # small MNIST-like input: batch=2, 1 channel, 16x16 spatial (NCHW)
    x = jax.random.normal(k_x, (2, 1, 16, 16), F32)
    params = init_params(k_p)

    fwd = jax.jit(forward_pallas)
    out = jax.block_until_ready(fwd(x, params))
    ref = jax.block_until_ready(forward_reference(x, params))

    assert out.shape == (2, NUM_CLASSES)
    assert jnp.allclose(out, ref, atol=1e-4, rtol=1e-4), (out, ref)
    print("KERNEL_OK")
</pallas_src>

<mosaic_0001>
module attributes {stable_mosaic.version = 11 : i64} {
  func.func @kernel(%arg0: i32, %arg1: memref<1x512x9xf32, #tpu.memory_space<vmem>>, %arg2: memref<9x32xf32, #tpu.memory_space<vmem>>, %arg3: memref<1x32xf32, #tpu.memory_space<vmem>>, %arg4: memref<288x64xf32, #tpu.memory_space<vmem>>, %arg5: memref<1x64xf32, #tpu.memory_space<vmem>>, %arg6: memref<576x64xf32, #tpu.memory_space<vmem>>, %arg7: memref<1x64xf32, #tpu.memory_space<vmem>>, %arg8: memref<64x128xf32, #tpu.memory_space<vmem>>, %arg9: memref<1x128xf32, #tpu.memory_space<vmem>>, %arg10: memref<64x128xf32, #tpu.memory_space<vmem>>, %arg11: memref<1x128xf32, #tpu.memory_space<vmem>>, %arg12: memref<2x208x240xf32, #tpu.memory_space<vmem>>, %arg13: memref<2x80x56xf32, #tpu.memory_space<vmem>>, %arg14: memref<2x128xf32, #tpu.memory_space<vmem>>, %arg15: memref<2x10x10x32xf32, #tpu.memory_space<vmem>>, %arg16: memref<2x8x8x288xf32, #tpu.memory_space<vmem>>, %arg17: memref<2x6x6x64xf32, #tpu.memory_space<vmem>>, %arg18: memref<2x4x4x576xf32, #tpu.memory_space<vmem>>) attributes {dimension_semantics = [#tpu.dimension_semantics<parallel>], iteration_bounds = array<i64: 1>, scalar_prefetch = 0 : i64, scratch_operands = 4 : i64, tpu.core_type = #tpu.core_type<tc>, window_params = [{transform_indices = @transform_0, window_bounds = array<i64: 1, 512, 9>}, {pipeline_mode = #tpu.pipeline_mode<synchronous>, transform_indices = @transform_1, window_bounds = array<i64: 9, 32>}, {pipeline_mode = #tpu.pipeline_mode<synchronous>, transform_indices = @transform_2, window_bounds = array<i64: 1, 32>}, {pipeline_mode = #tpu.pipeline_mode<synchronous>, transform_indices = @transform_3, window_bounds = array<i64: 288, 64>}, {pipeline_mode = #tpu.pipeline_mode<synchronous>, transform_indices = @transform_4, window_bounds = array<i64: 1, 64>}, {pipeline_mode = #tpu.pipeline_mode<synchronous>, transform_indices = @transform_5, window_bounds = array<i64: 576, 64>}, {pipeline_mode = #tpu.pipeline_mode<synchronous>, transform_indices = @transform_6, window_bounds = array<i64: 1, 64>}, {pipeline_mode = #tpu.pipeline_mode<synchronous>, transform_indices = @transform_7, window_bounds = array<i64: 64, 128>}, {pipeline_mode = #tpu.pipeline_mode<synchronous>, transform_indices = @transform_8, window_bounds = array<i64: 1, 128>}, {pipeline_mode = #tpu.pipeline_mode<synchronous>, transform_indices = @transform_9, window_bounds = array<i64: 64, 128>}, {pipeline_mode = #tpu.pipeline_mode<synchronous>, transform_indices = @transform_10, window_bounds = array<i64: 1, 128>}, {pipeline_mode = #tpu.pipeline_mode<synchronous>, transform_indices = @transform_11, window_bounds = array<i64: 2, 208, 240>}, {pipeline_mode = #tpu.pipeline_mode<synchronous>, transform_indices = @transform_12, window_bounds = array<i64: 2, 80, 56>}, {transform_indices = @transform_13, window_bounds = array<i64: 2, 128>}]} {
    %c0 = arith.constant 0 : index
    %c0_0 = arith.constant 0 : index
    %c0_1 = arith.constant 0 : index
    %0 = vector.load %arg1[%c0, %c0_0, %c0_1] : memref<1x512x9xf32, #tpu.memory_space<vmem>>, vector<1x512x9xf32>
    %1 = vector.shape_cast %0 : vector<1x512x9xf32> to vector<512x9xf32>
    %c0_2 = arith.constant 0 : index
    %c0_3 = arith.constant 0 : index
    %2 = vector.load %arg2[%c0_2, %c0_3] : memref<9x32xf32, #tpu.memory_space<vmem>>, vector<9x32xf32>
    %cst = arith.constant dense<0.000000e+00> : vector<512x32xf32>
    %3 = tpu.matmul %1, %2, %cst {dimension_numbers = #tpu.dot_dimension_numbers<[1], [0], [0], [1], [0, 0, 1, 1], [], []>} : vector<512x9xf32>, vector<9x32xf32>, vector<512x32xf32> -> vector<512x32xf32>
    %c0_4 = arith.constant 0 : index
    %c0_5 = arith.constant 0 : index
    %4 = vector.load %arg3[%c0_4, %c0_5] : memref<1x32xf32, #tpu.memory_space<vmem>>, vector<1x32xf32>
    %5 = vector.broadcast %4 : vector<1x32xf32> to vector<512x32xf32>
    %6 = arith.addf %3, %5 : vector<512x32xf32>
    %cst_6 = arith.constant 0.000000e+00 : f32
    %7 = vector.broadcast %cst_6 : f32 to vector<512x32xf32>
    %8 = arith.maximumf %6, %7 : vector<512x32xf32>
    %9 = vector.shape_cast %8 : vector<512x32xf32> to vector<2x256x32xf32>
    %10 = vector.extract_strided_slice %9 {offsets = [0, 0, 0], sizes = [2, 240, 32], strides = [1, 1, 1]} : vector<2x256x32xf32> to vector<2x240x32xf32>
    %11 = vector.extract_strided_slice %9 {offsets = [0, 16, 0], sizes = [2, 240, 32], strides = [1, 1, 1]} : vector<2x256x32xf32> to vector<2x240x32xf32>
    %12 = arith.maximumf %10, %11 : vector<2x240x32xf32>
    %c0_7 = arith.constant 0 : index
    %c0_8 = arith.constant 0 : index
    %c0_9 = arith.constant 0 : index
    %13 = vector.load %arg12[%c0_7, %c0_8, %c0_9] : memref<2x208x240xf32, #tpu.memory_space<vmem>>, vector<2x208x240xf32>
    %cst_10 = arith.constant dense<0.000000e+00> : vector<2x208x32xf32>
    %14 = tpu.matmul %13, %12, %cst_10 {dimension_numbers = #tpu.dot_dimension_numbers<[2], [1], [1], [2], [0, 0, 0, 1, 1, 2], [0], [0]>} : vector<2x208x240xf32>, vector<2x240x32xf32>, vector<2x208x32xf32> -> vector<2x208x32xf32>
    %15 = vector.extract_strided_slice %14 {offsets = [0, 0, 0], sizes = [2, 104, 32], strides = [1, 1, 1]} : vector<2x208x32xf32> to vector<2x104x32xf32>
    %16 = vector.extract_strided_slice %14 {offsets = [0, 104, 0], sizes = [2, 104, 32], strides = [1, 1, 1]} : vector<2x208x32xf32> to vector<2x104x32xf32>
    %17 = arith.maximumf %15, %16 : vector<2x104x32xf32>
    %18 = vector.extract_strided_slice %17 {offsets = [0, 0, 0], sizes = [2, 100, 32], strides = [1, 1, 1]} : vector<2x104x32xf32> to vector<2x100x32xf32>
    %19 = vector.shape_cast %18 : vector<2x100x32xf32> to vector<2x10x10x32xf32>
    %c0_11 = arith.constant 0 : index
    %c0_12 = arith.constant 0 : index
    %c0_13 = arith.constant 0 : index
    %c0_14 = arith.constant 0 : index
    %20 = vector.load %arg15[%c0_11, %c0_12, %c0_13, %c0_14] : memref<2x10x10x32xf32, #tpu.memory_space<vmem>>, vector<2x10x10x32xf32>
    tpu.vector_store %arg15[%c0_11, %c0_12, %c0_13, %c0_14], %19 {strides = array<i32>} : memref<2x10x10x32xf32, #tpu.memory_space<vmem>>, vector<2x10x10x32xf32>,
    %c0_15 = arith.constant 0 : index
    %c0_16 = arith.constant 0 : index
    %c0_17 = arith.constant 0 : index
    %c0_18 = arith.constant 0 : index
    %21 = vector.load %arg15[%c0_15, %c0_16, %c0_17, %c0_18] : memref<2x10x10x32xf32, #tpu.memory_space<vmem>>, vector<2x8x8x32xf32>
    %c0_19 = arith.constant 0 : index
    %c0_20 = arith.constant 0 : index
    %c0_21 = arith.constant 0 : index
    %c0_22 = arith.constant 0 : index
    %22 = vector.load %arg16[%c0_19, %c0_20, %c0_21, %c0_22] : memref<2x8x8x288xf32, #tpu.memory_space<vmem>>, vector<2x8x8x32xf32>
    tpu.vector_store %arg16[%c0_19, %c0_20, %c0_21, %c0_22], %21 {strides = array<i32>} : memref<2x8x8x288xf32, #tpu.memory_space<vmem>>, vector<2x8x8x32xf32>,
    %c0_23 = arith.constant 0 : index
    %c0_24 = arith.constant 0 : index
    %c1 = arith.constant 1 : index
    %c0_25 = arith.constant 0 : index
    %23 = vector.load %arg15[%c0_23, %c0_24, %c1, %c0_25] : memref<2x10x10x32xf32, #tpu.memory_space<vmem>>, vector<2x8x8x32xf32>
    %c0_26 = arith.constant 0 : index
    %c0_27 = arith.constant 0 : index
    %c0_28 = arith.constant 0 : index
    %c32 = arith.constant 32 : index
    %24 = vector.load %arg16[%c0_26, %c0_27, %c0_28, %c32] : memref<2x8x8x288xf32, #tpu.memory_space<vmem>>, vector<2x8x8x32xf32>
    tpu.vector_store %arg16[%c0_26, %c0_27, %c0_28, %c32], %23 {strides = array<i32>} : memref<2x8x8x288xf32, #tpu.memory_space<vmem>>, vector<2x8x8x32xf32>,
    %c0_29 = arith.constant 0 : index
    %c0_30 = arith.constant 0 : index
    %c2 = arith.constant 2 : index
    %c0_31 = arith.constant 0 : index
    %25 = vector.load %arg15[%c0_29, %c0_30, %c2, %c0_31] : memref<2x10x10x32xf32, #tpu.memory_space<vmem>>, vector<2x8x8x32xf32>
    %c0_32 = arith.constant 0 : index
    %c0_33 = arith.constant 0 : index
    %c0_34 = arith.constant 0 : index
    %c64 = arith.constant 64 : index
    %26 = vector.load %arg16[%c0_32, %c0_33, %c0_34, %c64] : memref<2x8x8x288xf32, #tpu.memory_space<vmem>>, vector<2x8x8x32xf32>
    tpu.vector_store %arg16[%c0_32, %c0_33, %c0_34, %c64], %25 {strides = array<i32>} : memref<2x8x8x288xf32, #tpu.memory_space<vmem>>, vector<2x8x8x32xf32>,
    %c0_35 = arith.constant 0 : index
    %c1_36 = arith.constant 1 : index
    %c0_37 = arith.constant 0 : index
    %c0_38 = arith.constant 0 : index
    %27 = vector.load %arg15[%c0_35, %c1_36, %c0_37, %c0_38] : memref<2x10x10x32xf32, #tpu.memory_space<vmem>>, vector<2x8x8x32xf32>
    %c0_39 = arith.constant 0 : index
    %c0_40 = arith.constant 0 : index
    %c0_41 = arith.constant 0 : index
    %c96 = arith.constant 96 : index
    %28 = vector.load %arg16[%c0_39, %c0_40, %c0_41, %c96] : memref<2x8x8x288xf32, #tpu.memory_space<vmem>>, vector<2x8x8x32xf32>
    tpu.vector_store %arg16[%c0_39, %c0_40, %c0_41, %c96], %27 {strides = array<i32>} : memref<2x8x8x288xf32, #tpu.memory_space<vmem>>, vector<2x8x8x32xf32>,
    %c0_42 = arith.constant 0 : index
    %c1_43 = arith.constant 1 : index
    %c1_44 = arith.constant 1 : index
    %c0_45 = arith.constant 0 : index
    %29 = vector.load %arg15[%c0_42, %c1_43, %c1_44, %c0_45] : memref<2x10x10x32xf32, #tpu.memory_space<vmem>>, vector<2x8x8x32xf32>
    %c0_46 = arith.constant 0 : index
    %c0_47 = arith.constant 0 : index
    %c0_48 = arith.constant 0 : index
    %c128 = arith.constant 128 : index
    %30 = vector.load %arg16[%c0_46, %c0_47, %c0_48, %c128] : memref<2x8x8x288xf32, #tpu.memory_space<vmem>>, vector<2x8x8x32xf32>
    tpu.vector_store %arg16[%c0_46, %c0_47, %c0_48, %c128], %29 {strides = array<i32>} : memref<2x8x8x288xf32, #tpu.memory_space<vmem>>, vector<2x8x8x32xf32>,
    %c0_49 = arith.constant 0 : index
    %c1_50 = arith.constant 1 : index
    %c2_51 = arith.constant 2 : index
    %c0_52 = arith.constant 0 : index
    %31 = vector.load %arg15[%c0_49, %c1_50, %c2_51, %c0_52] : memref<2x10x10x32xf32, #tpu.memory_space<vmem>>, vector<2x8x8x32xf32>
    %c0_53 = arith.constant 0 : index
    %c0_54 = arith.constant 0 : index
    %c0_55 = arith.constant 0 : index
    %c160 = arith.constant 160 : index
    %32 = vector.load %arg16[%c0_53, %c0_54, %c0_55, %c160] : memref<2x8x8x288xf32, #tpu.memory_space<vmem>>, vector<2x8x8x32xf32>
    tpu.vector_store %arg16[%c0_53, %c0_54, %c0_55, %c160], %31 {strides = array<i32>} : memref<2x8x8x288xf32, #tpu.memory_space<vmem>>, vector<2x8x8x32xf32>,
    %c0_56 = arith.constant 0 : index
    %c2_57 = arith.constant 2 : index
    %c0_58 = arith.constant 0 : index
    %c0_59 = arith.constant 0 : index
    %33 = vector.load %arg15[%c0_56, %c2_57, %c0_58, %c0_59] : memref<2x10x10x32xf32, #tpu.memory_space<vmem>>, vector<2x8x8x32xf32>
    %c0_60 = arith.constant 0 : index
    %c0_61 = arith.constant 0 : index
    %c0_62 = arith.constant 0 : index
    %c192 = arith.constant 192 : index
    %34 = vector.load %arg16[%c0_60, %c0_61, %c0_62, %c192] : memref<2x8x8x288xf32, #tpu.memory_space<vmem>>, vector<2x8x8x32xf32>
    tpu.vector_store %arg16[%c0_60, %c0_61, %c0_62, %c192], %33 {strides = array<i32>} : memref<2x8x8x288xf32, #tpu.memory_space<vmem>>, vector<2x8x8x32xf32>,
    %c0_63 = arith.constant 0 : index
    %c2_64 = arith.constant 2 : index
    %c1_65 = arith.constant 1 : index
    %c0_66 = arith.constant 0 : index
    %35 = vector.load %arg15[%c0_63, %c2_64, %c1_65, %c0_66] : memref<2x10x10x32xf32, #tpu.memory_space<vmem>>, vector<2x8x8x32xf32>
    %c0_67 = arith.constant 0 : index
    %c0_68 = arith.constant 0 : index
    %c0_69 = arith.constant 0 : index
    %c224 = arith.constant 224 : index
    %36 = vector.load %arg16[%c0_67, %c0_68, %c0_69, %c224] : memref<2x8x8x288xf32, #tpu.memory_space<vmem>>, vector<2x8x8x32xf32>
    tpu.vector_store %arg16[%c0_67, %c0_68, %c0_69, %c224], %35 {strides = array<i32>} : memref<2x8x8x288xf32, #tpu.memory_space<vmem>>, vector<2x8x8x32xf32>,
    %c0_70 = arith.constant 0 : index
    %c2_71 = arith.constant 2 : index
    %c2_72 = arith.constant 2 : index
    %c0_73 = arith.constant 0 : index
    %37 = vector.load %arg15[%c0_70, %c2_71, %c2_72, %c0_73] : memref<2x10x10x32xf32, #tpu.memory_space<vmem>>, vector<2x8x8x32xf32>
    %c0_74 = arith.constant 0 : index
    %c0_75 = arith.constant 0 : index
    %c0_76 = arith.constant 0 : index
    %c256 = arith.constant 256 : index
    %38 = vector.load %arg16[%c0_74, %c0_75, %c0_76, %c256] : memref<2x8x8x288xf32, #tpu.memory_space<vmem>>, vector<2x8x8x32xf32>
    tpu.vector_store %arg16[%c0_74, %c0_75, %c0_76, %c256], %37 {strides = array<i32>} : memref<2x8x8x288xf32, #tpu.memory_space<vmem>>, vector<2x8x8x32xf32>,
    %c0_77 = arith.constant 0 : index
    %c0_78 = arith.constant 0 : index
    %c0_79 = arith.constant 0 : index
    %c0_80 = arith.constant 0 : index
    %39 = vector.load %arg16[%c0_77, %c0_78, %c0_79, %c0_80] : memref<2x8x8x288xf32, #tpu.memory_space<vmem>>, vector<2x8x8x288xf32>
    %40 = vector.shape_cast %39 : vector<2x8x8x288xf32> to vector<128x288xf32>
    %c0_81 = arith.constant 0 : index
    %c0_82 = arith.constant 0 : index
    %41 = vector.load %arg4[%c0_81, %c0_82] : memref<288x64xf32, #tpu.memory_space<vmem>>, vector<288x64xf32>
    %cst_83 = arith.constant dense<0.000000e+00> : vector<128x64xf32>
    %42 = tpu.matmul %40, %41, %cst_83 {dimension_numbers = #tpu.dot_dimension_numbers<[1], [0], [0], [1], [0, 0, 1, 1], [], []>} : vector<128x288xf32>, vector<288x64xf32>, vector<128x64xf32> -> vector<128x64xf32>
    %c0_84 = arith.constant 0 : index
    %c0_85 = arith.constant 0 : index
    %43 = vector.load %arg5[%c0_84, %c0_85] : memref<1x64xf32, #tpu.memory_space<vmem>>, vector<1x64xf32>
    %44 = vector.broadcast %43 : vector<1x64xf32> to vector<128x64xf32>
    %45 = arith.addf %42, %44 : vector<128x64xf32>
    %cst_86 = arith.constant 0.000000e+00 : f32
    %46 = vector.broadcast %cst_86 : f32 to vector<128x64xf32>
    %47 = arith.maximumf %45, %46 : vector<128x64xf32>
    %48 = vector.shape_cast %47 : vector<128x64xf32> to vector<2x64x64xf32>
    %49 = vector.extract_strided_slice %48 {offsets = [0, 0, 0], sizes = [2, 56, 64], strides = [1, 1, 1]} : vector<2x64x64xf32> to vector<2x56x64xf32>
    %50 = vector.extract_strided_slice %48 {offsets = [0, 8, 0], sizes = [2, 56, 64], strides = [1, 1, 1]} : vector<2x64x64xf32> to vector<2x56x64xf32>
    %51 = arith.maximumf %49, %50 : vector<2x56x64xf32>
    %c0_87 = arith.constant 0 : index
    %c0_88 = arith.constant 0 : index
    %c0_89 = arith.constant 0 : index
    %52 = vector.load %arg13[%c0_87, %c0_88, %c0_89] : memref<2x80x56xf32, #tpu.memory_space<vmem>>, vector<2x80x56xf32>
    %cst_90 = arith.constant dense<0.000000e+00> : vector<2x80x64xf32>
    %53 = tpu.matmul %52, %51, %cst_90 {dimension_numbers = #tpu.dot_dimension_numbers<[2], [1], [1], [2], [0, 0, 0, 1, 1, 2], [0], [0]>} : vector<2x80x56xf32>, vector<2x56x64xf32>, vector<2x80x64xf32> -> vector<2x80x64xf32>
    %54 = vector.extract_strided_slice %53 {offsets = [0, 0, 0], sizes = [2, 40, 64], strides = [1, 1, 1]} : vector<2x80x64xf32> to vector<2x40x64xf32>
    %55 = vector.extract_strided_slice %53 {offsets = [0, 40, 0], sizes = [2, 40, 64], strides = [1, 1, 1]} : vector<2x80x64xf32> to vector<2x40x64xf32>
    %56 = arith.maximumf %54, %55 : vector<2x40x64xf32>
    %57 = vector.extract_strided_slice %56 {offsets = [0, 0, 0], sizes = [2, 36, 64], strides = [1, 1, 1]} : vector<2x40x64xf32> to vector<2x36x64xf32>
    %58 = vector.shape_cast %57 : vector<2x36x64xf32> to vector<2x6x6x64xf32>
    %c0_91 = arith.constant 0 : index
    %c0_92 = arith.constant 0 : index
    %c0_93 = arith.constant 0 : index
    %c0_94 = arith.constant 0 : index
    %59 = vector.load %arg17[%c0_91, %c0_92, %c0_93, %c0_94] : memref<2x6x6x64xf32, #tpu.memory_space<vmem>>, vector<2x6x6x64xf32>
    tpu.vector_store %arg17[%c0_91, %c0_92, %c0_93, %c0_94], %58 {strides = array<i32>} : memref<2x6x6x64xf32, #tpu.memory_space<vmem>>, vector<2x6x6x64xf32>,
    %c0_95 = arith.constant 0 : index
    %c0_96 = arith.constant 0 : index
    %c0_97 = arith.constant 0 : index
    %c0_98 = arith.constant 0 : index
    %60 = vector.load %arg17[%c0_95, %c0_96, %c0_97, %c0_98] : memref<2x6x6x64xf32, #tpu.memory_space<vmem>>, vector<2x4x4x64xf32>
    %c0_99 = arith.constant 0 : index
    %c0_100 = arith.constant 0 : index
    %c0_101 = arith.constant 0 : index
    %c0_102 = arith.constant 0 : index
    %61 = vector.load %arg18[%c0_99, %c0_100, %c0_101, %c0_102] : memref<2x4x4x576xf32, #tpu.memory_space<vmem>>, vector<2x4x4x64xf32>
    tpu.vector_store %arg18[%c0_99, %c0_100, %c0_101, %c0_102], %60 {strides = array<i32>} : memref<2x4x4x576xf32, #tpu.memory_space<vmem>>, vector<2x4x4x64xf32>,
    %c0_103 = arith.constant 0 : index
    %c0_104 = arith.constant 0 : index
    %c1_105 = arith.constant 1 : index
    %c0_106 = arith.constant 0 : index
    %62 = vector.load %arg17[%c0_103, %c0_104, %c1_105, %c0_106] : memref<2x6x6x64xf32, #tpu.memory_space<vmem>>, vector<2x4x4x64xf32>
    %c0_107 = arith.constant 0 : index
    %c0_108 = arith.constant 0 : index
    %c0_109 = arith.constant 0 : index
    %c64_110 = arith.constant 64 : index
    %63 = vector.load %arg18[%c0_107, %c0_108, %c0_109, %c64_110] : memref<2x4x4x576xf32, #tpu.memory_space<vmem>>, vector<2x4x4x64xf32>
    tpu.vector_store %arg18[%c0_107, %c0_108, %c0_109, %c64_110], %62 {strides = array<i32>} : memref<2x4x4x576xf32, #tpu.memory_space<vmem>>, vector<2x4x4x64xf32>,
    %c0_111 = arith.constant 0 : index
    %c0_112 = arith.constant 0 : index
    %c2_113 = arith.constant 2 : index
    %c0_114 = arith.constant 0 : index
    %64 = vector.load %arg17[%c0_111, %c0_112, %c2_113, %c0_114] : memref<2x6x6x64xf32, #tpu.memory_space<vmem>>, vector<2x4x4x64xf32>
    %c0_115 = arith.constant 0 : index
    %c0_116 = arith.constant 0 : index
    %c0_117 = arith.constant 0 : index
    %c128_118 = arith.constant 128 : index
    %65 = vector.load %arg18[%c0_115, %c0_116, %c0_117, %c128_118] : memref<2x4x4x576xf32, #tpu.memory_space<vmem>>, vector<2x4x4x64xf32>
    tpu.vector_store %arg18[%c0_115, %c0_116, %c0_117, %c128_118], %64 {strides = array<i32>} : memref<2x4x4x576xf32, #tpu.memory_space<vmem>>, vector<2x4x4x64xf32>,
    %c0_119 = arith.constant 0 : index
    %c1_120 = arith.constant 1 : index
    %c0_121 = arith.constant 0 : index
    %c0_122 = arith.constant 0 : index
    %66 = vector.load %arg17[%c0_119, %c1_120, %c0_121, %c0_122] : memref<2x6x6x64xf32, #tpu.memory_space<vmem>>, vector<2x4x4x64xf32>
    %c0_123 = arith.constant 0 : index
    %c0_124 = arith.constant 0 : index
    %c0_125 = arith.constant 0 : index
    %c192_126 = arith.constant 192 : index
    %67 = vector.load %arg18[%c0_123, %c0_124, %c0_125, %c192_126] : memref<2x4x4x576xf32, #tpu.memory_space<vmem>>, vector<2x4x4x64xf32>
    tpu.vector_store %arg18[%c0_123, %c0_124, %c0_125, %c192_126], %66 {strides = array<i32>} : memref<2x4x4x576xf32, #tpu.memory_space<vmem>>, vector<2x4x4x64xf32>,
    %c0_127 = arith.constant 0 : index
    %c1_128 = arith.constant 1 : index
    %c1_129 = arith.constant 1 : index
    %c0_130 = arith.constant 0 : index
    %68 = vector.load %arg17[%c0_127, %c1_128, %c1_129, %c0_130] : memref<2x6x6x64xf32, #tpu.memory_space<vmem>>, vector<2x4x4x64xf32>
    %c0_131 = arith.constant 0 : index
    %c0_132 = arith.constant 0 : index
    %c0_133 = arith.constant 0 : index
    %c256_134 = arith.constant 256 : index
    %69 = vector.load %arg18[%c0_131, %c0_132, %c0_133, %c256_134] : memref<2x4x4x576xf32, #tpu.memory_space<vmem>>, vector<2x4x4x64xf32>
    tpu.vector_store %arg18[%c0_131, %c0_132, %c0_133, %c256_134], %68 {strides = array<i32>} : memref<2x4x4x576xf32, #tpu.memory_space<vmem>>, vector<2x4x4x64xf32>,
    %c0_135 = arith.constant 0 : index
    %c1_136 = arith.constant 1 : index
    %c2_137 = arith.constant 2 : index
    %c0_138 = arith.constant 0 : index
    %70 = vector.load %arg17[%c0_135, %c1_136, %c2_137, %c0_138] : memref<2x6x6x64xf32, #tpu.memory_space<vmem>>, vector<2x4x4x64xf32>
    %c0_139 = arith.constant 0 : index
    %c0_140 = arith.constant 0 : index
    %c0_141 = arith.constant 0 : index
    %c320 = arith.constant 320 : index
    %71 = vector.load %arg18[%c0_139, %c0_140, %c0_141, %c320] : memref<2x4x4x576xf32, #tpu.memory_space<vmem>>, vector<2x4x4x64xf32>
    tpu.vector_store %arg18[%c0_139, %c0_140, %c0_141, %c320], %70 {strides = array<i32>} : memref<2x4x4x576xf32, #tpu.memory_space<vmem>>, vector<2x4x4x64xf32>,
    %c0_142 = arith.constant 0 : index
    %c2_143 = arith.constant 2 : index
    %c0_144 = arith.constant 0 : index
    %c0_145 = arith.constant 0 : index
    %72 = vector.load %arg17[%c0_142, %c2_143, %c0_144, %c0_145] : memref<2x6x6x64xf32, #tpu.memory_space<vmem>>, vector<2x4x4x64xf32>
    %c0_146 = arith.constant 0 : index
    %c0_147 = arith.constant 0 : index
    %c0_148 = arith.constant 0 : index
    %c384 = arith.constant 384 : index
    %73 = vector.load %arg18[%c0_146, %c0_147, %c0_148, %c384] : memref<2x4x4x576xf32, #tpu.memory_space<vmem>>, vector<2x4x4x64xf32>
    tpu.vector_store %arg18[%c0_146, %c0_147, %c0_148, %c384], %72 {strides = array<i32>} : memref<2x4x4x576xf32, #tpu.memory_space<vmem>>, vector<2x4x4x64xf32>,
    %c0_149 = arith.constant 0 : index
    %c2_150 = arith.constant 2 : index
    %c1_151 = arith.constant 1 : index
    %c0_152 = arith.constant 0 : index
    %74 = vector.load %arg17[%c0_149, %c2_150, %c1_151, %c0_152] : memref<2x6x6x64xf32, #tpu.memory_space<vmem>>, vector<2x4x4x64xf32>
    %c0_153 = arith.constant 0 : index
    %c0_154 = arith.constant 0 : index
    %c0_155 = arith.constant 0 : index
    %c448 = arith.constant 448 : index
    %75 = vector.load %arg18[%c0_153, %c0_154, %c0_155, %c448] : memref<2x4x4x576xf32, #tpu.memory_space<vmem>>, vector<2x4x4x64xf32>
    tpu.vector_store %arg18[%c0_153, %c0_154, %c0_155, %c448], %74 {strides = array<i32>} : memref<2x4x4x576xf32, #tpu.memory_space<vmem>>, vector<2x4x4x64xf32>,
    %c0_156 = arith.constant 0 : index
    %c2_157 = arith.constant 2 : index
    %c2_158 = arith.constant 2 : index
    %c0_159 = arith.constant 0 : index
    %76 = vector.load %arg17[%c0_156, %c2_157, %c2_158, %c0_159] : memref<2x6x6x64xf32, #tpu.memory_space<vmem>>, vector<2x4x4x64xf32>
    %c0_160 = arith.constant 0 : index
    %c0_161 = arith.constant 0 : index
    %c0_162 = arith.constant 0 : index
    %c512 = arith.constant 512 : index
    %77 = vector.load %arg18[%c0_160, %c0_161, %c0_162, %c512] : memref<2x4x4x576xf32, #tpu.memory_space<vmem>>, vector<2x4x4x64xf32>
    tpu.vector_store %arg18[%c0_160, %c0_161, %c0_162, %c512], %76 {strides = array<i32>} : memref<2x4x4x576xf32, #tpu.memory_space<vmem>>, vector<2x4x4x64xf32>,
    %c0_163 = arith.constant 0 : index
    %c0_164 = arith.constant 0 : index
    %c0_165 = arith.constant 0 : index
    %c0_166 = arith.constant 0 : index
    %78 = vector.load %arg18[%c0_163, %c0_164, %c0_165, %c0_166] : memref<2x4x4x576xf32, #tpu.memory_space<vmem>>, vector<2x4x4x576xf32>
    %79 = vector.shape_cast %78 : vector<2x4x4x576xf32> to vector<32x576xf32>
    %c0_167 = arith.constant 0 : index
    %c0_168 = arith.constant 0 : index
    %80 = vector.load %arg6[%c0_167, %c0_168] : memref<576x64xf32, #tpu.memory_space<vmem>>, vector<576x64xf32>
    %cst_169 = arith.constant dense<0.000000e+00> : vector<32x64xf32>
    %81 = tpu.matmul %79, %80, %cst_169 {dimension_numbers = #tpu.dot_dimension_numbers<[1], [0], [0], [1], [0, 0, 1, 1], [], []>} : vector<32x576xf32>, vector<576x64xf32>, vector<32x64xf32> -> vector<32x64xf32>
    %c0_170 = arith.constant 0 : index
    %c0_171 = arith.constant 0 : index
    %82 = vector.load %arg7[%c0_170, %c0_171] : memref<1x64xf32, #tpu.memory_space<vmem>>, vector<1x64xf32>
    %83 = vector.broadcast %82 : vector<1x64xf32> to vector<32x64xf32>
    %84 = arith.addf %81, %83 : vector<32x64xf32>
    %cst_172 = arith.constant 0.000000e+00 : f32
    %85 = vector.broadcast %cst_172 : f32 to vector<32x64xf32>
    %86 = arith.maximumf %84, %85 : vector<32x64xf32>
    %c0_173 = arith.constant 0 : index
    %c0_174 = arith.constant 0 : index
    %87 = vector.load %arg8[%c0_173, %c0_174] : memref<64x128xf32, #tpu.memory_space<vmem>>, vector<64x128xf32>
    %cst_175 = arith.constant dense<0.000000e+00> : vector<32x128xf32>
    %88 = tpu.matmul %86, %87, %cst_175 {dimension_numbers = #tpu.dot_dimension_numbers<[1], [0], [0], [1], [0, 0, 1, 1], [], []>} : vector<32x64xf32>, vector<64x128xf32>, vector<32x128xf32> -> vector<32x128xf32>
    %c0_176 = arith.constant 0 : index
    %c0_177 = arith.constant 0 : index
    %89 = vector.load %arg9[%c0_176, %c0_177] : memref<1x128xf32, #tpu.memory_space<vmem>>, vector<1x128xf32>
    %90 = vector.broadcast %89 : vector<1x128xf32> to vector<32x128xf32>
    %91 = arith.addf %88, %90 : vector<32x128xf32>
    %92 = vector.extract_strided_slice %91 {offsets = [0, 64], sizes = [32, 64], strides = [1, 1]} : vector<32x128xf32> to vector<32x64xf32>
    %93 = arith.negf %92 : vector<32x64xf32>
    %94 = math.exp %93 : vector<32x64xf32>
    %cst_178 = arith.constant 1.000000e+00 : f32
    %95 = vector.broadcast %cst_178 : f32 to vector<32x64xf32>
    %96 = arith.addf %95, %94 : vector<32x64xf32>
    %97 = arith.divf %95, %96 : vector<32x64xf32>
    %98 = vector.extract_strided_slice %91 {offsets = [0, 0], sizes = [32, 64], strides = [1, 1]} : vector<32x128xf32> to vector<32x64xf32>
    %99 = arith.mulf %98, %97 : vector<32x64xf32>
    %100 = vector.shape_cast %99 : vector<32x64xf32> to vector<2x16x64xf32>
    %cst_179 = arith.constant dense<0.000000e+00> : vector<2x64xf32>
    %101 = vector.multi_reduction <add>, %100, %cst_179 [1] : vector<2x16x64xf32> to vector<2x64xf32>
    %cst_180 = arith.constant 1.600000e+01 : f32
    %102 = vector.broadcast %cst_180 : f32 to vector<2x64xf32>
    %103 = arith.divf %101, %102 : vector<2x64xf32>
    %c0_181 = arith.constant 0 : index
    %c0_182 = arith.constant 0 : index
    %104 = vector.load %arg10[%c0_181, %c0_182] : memref<64x128xf32, #tpu.memory_space<vmem>>, vector<64x128xf32>
    %cst_183 = arith.constant dense<0.000000e+00> : vector<2x128xf32>
    %105 = tpu.matmul %103, %104, %cst_183 {dimension_numbers = #tpu.dot_dimension_numbers<[1], [0], [0], [1], [0, 0, 1, 1], [], []>} : vector<2x64xf32>, vector<64x128xf32>, vector<2x128xf32> -> vector<2x128xf32>
    %c0_184 = arith.constant 0 : index
    %c0_185 = arith.constant 0 : index
    %106 = vector.load %arg11[%c0_184, %c0_185] : memref<1x128xf32, #tpu.memory_space<vmem>>, vector<1x128xf32>
    %107 = vector.broadcast %106 : vector<1x128xf32> to vector<2x128xf32>
    %108 = arith.addf %105, %107 : vector<2x128xf32>
    %c0_186 = arith.constant 0 : index
    %c0_187 = arith.constant 0 : index
    %109 = vector.load %arg14[%c0_186, %c0_187] : memref<2x128xf32, #tpu.memory_space<vmem>>, vector<2x128xf32>
    tpu.vector_store %arg14[%c0_186, %c0_187], %108 {strides = array<i32>} : memref<2x128xf32, #tpu.memory_space<vmem>>, vector<2x128xf32>,
    return
  }
  func.func @transform_0(%arg0: i32) -> (i32, i32, i32) {
    %c0_i32 = arith.constant 0 : i32
    %c0_i32_0 = arith.constant 0 : i32
    %c0_i32_1 = arith.constant 0 : i32
    return %arg0, %c0_i32, %c0_i32_0 : i32, i32, i32
  }
  func.func @transform_1(%arg0: i32) -> (i32, i32) {
    %c0_i32 = arith.constant 0 : i32
    %c0_i32_0 = arith.constant 0 : i32
    %c0_i32_1 = arith.constant 0 : i32
    return %c0_i32, %c0_i32_0 : i32, i32
  }
  func.func @transform_2(%arg0: i32) -> (i32, i32) {
    %c0_i32 = arith.constant 0 : i32
    %c0_i32_0 = arith.constant 0 : i32
    %c0_i32_1 = arith.constant 0 : i32
    return %c0_i32, %c0_i32_0 : i32, i32
  }
  func.func @transform_3(%arg0: i32) -> (i32, i32) {
    %c0_i32 = arith.constant 0 : i32
    %c0_i32_0 = arith.constant 0 : i32
    %c0_i32_1 = arith.constant 0 : i32
    return %c0_i32, %c0_i32_0 : i32, i32
  }
  func.func @transform_4(%arg0: i32) -> (i32, i32) {
    %c0_i32 = arith.constant 0 : i32
    %c0_i32_0 = arith.constant 0 : i32
    %c0_i32_1 = arith.constant 0 : i32
    return %c0_i32, %c0_i32_0 : i32, i32
  }
  func.func @transform_5(%arg0: i32) -> (i32, i32) {
    %c0_i32 = arith.constant 0 : i32
    %c0_i32_0 = arith.constant 0 : i32
    %c0_i32_1 = arith.constant 0 : i32
    return %c0_i32, %c0_i32_0 : i32, i32
  }
  func.func @transform_6(%arg0: i32) -> (i32, i32) {
    %c0_i32 = arith.constant 0 : i32
    %c0_i32_0 = arith.constant 0 : i32
    %c0_i32_1 = arith.constant 0 : i32
    return %c0_i32, %c0_i32_0 : i32, i32
  }
  func.func @transform_7(%arg0: i32) -> (i32, i32) {
    %c0_i32 = arith.constant 0 : i32
    %c0_i32_0 = arith.constant 0 : i32
    %c0_i32_1 = arith.constant 0 : i32
    return %c0_i32, %c0_i32_0 : i32, i32
  }
  func.func @transform_8(%arg0: i32) -> (i32, i32) {
    %c0_i32 = arith.constant 0 : i32
    %c0_i32_0 = arith.constant 0 : i32
    %c0_i32_1 = arith.constant 0 : i32
    return %c0_i32, %c0_i32_0 : i32, i32
  }
  func.func @transform_9(%arg0: i32) -> (i32, i32) {
    %c0_i32 = arith.constant 0 : i32
    %c0_i32_0 = arith.constant 0 : i32
    %c0_i32_1 = arith.constant 0 : i32
    return %c0_i32, %c0_i32_0 : i32, i32
  }
  func.func @transform_10(%arg0: i32) -> (i32, i32) {
    %c0_i32 = arith.constant 0 : i32
    %c0_i32_0 = arith.constant 0 : i32
    %c0_i32_1 = arith.constant 0 : i32
    return %c0_i32, %c0_i32_0 : i32, i32
  }
  func.func @transform_11(%arg0: i32) -> (i32, i32, i32) {
    %c0_i32 = arith.constant 0 : i32
    %c0_i32_0 = arith.constant 0 : i32
    %c0_i32_1 = arith.constant 0 : i32
    %c0_i32_2 = arith.constant 0 : i32
    return %c0_i32, %c0_i32_0, %c0_i32_1 : i32, i32, i32
  }
  func.func @transform_12(%arg0: i32) -> (i32, i32, i32) {
    %c0_i32 = arith.constant 0 : i32
    %c0_i32_0 = arith.constant 0 : i32
    %c0_i32_1 = arith.constant 0 : i32
    %c0_i32_2 = arith.constant 0 : i32
    return %c0_i32, %c0_i32_0, %c0_i32_1 : i32, i32, i32
  }
  func.func @transform_13(%arg0: i32) -> (i32, i32) {
    %c0_i32 = arith.constant 0 : i32
    %c0_i32_0 = arith.constant 0 : i32
    return %arg0, %c0_i32 : i32, i32
  }
}

</mosaic_0001>

<bundles_post_ra>
// kernel: forward_pallas.1
= control target key start
LH: loop header
LB: loop body
LE: loop exit
PB: predicated region body
PF: predicated region fallthrough
CT: control target
= control target key end

     0   :  { %vm308_vm0 = vcmask 1040384   ;;  %vm115_vm1 = vcmask 72704   ;;  %s6266_s0 = inlined_call_operand.vmem [shape: f32[1,512,9], index: 0, kind: input, shape index: {}]   ;;  %s6267_s1 = inlined_call_operand.vmem [shape: f32[9,32], index: 1, kind: input, shape index: {}]   ;;  %s6268_s2 = inlined_call_operand.vmem [shape: f32[1,32], index: 2, kind: input, shape index: {}]   ;;  %s6269_s3 = inlined_call_operand.vmem [shape: f32[288,64], index: 3, kind: input, shape index: {}]   ;;  %s6270_s4 = inlined_call_operand.vmem [shape: f32[1,64], index: 4, kind: input, shape index: {}]   ;;  %s6271_s5 = inlined_call_operand.vmem [shape: f32[576,64], index: 5, kind: input, shape index: {}]   ;;  %s6272_s6 = inlined_call_operand.vmem [shape: f32[1,64], index: 6, kind: input, shape index: {}]   ;;  %s6273_s7 = inlined_call_operand.vmem [shape: f32[64,128], index: 7, kind: input, shape index: {}]   ;;  %s6274_s8 = inlined_call_operand.vmem [shape: f32[1,128], index: 8, kind: input, shape index: {}]   ;;  %s6275_s9 = inlined_call_operand.vmem [shape: f32[64,128], index: 9, kind: input, shape index: {}]   ;;  %s6276_s10 = inlined_call_operand.vmem [shape: f32[1,128], index: 10, kind: input, shape index: {}]   ;;  %s6277_s11 = inlined_call_operand.vmem [shape: f32[2,208,240], index: 11, kind: input, shape index: {}]   ;;  %s6278_s12 = inlined_call_operand.vmem [shape: f32[2,80,56], index: 12, kind: input, shape index: {}]   ;;  %s6279_s13 = inlined_call_operand.hbm [shape: f32[2,128], index: 13, kind: output, shape index: {}]  }
   0x1   :  { %v110_v0 = vld [vmem:[%s6267_s1 + $0x8] sm:$0x1]  ;;  %v109_v1 = vld [vmem:[%s6267_s1] sm:$0xff] }
   0x2   :  { %3831 = vmatpush.msk.msra.mxu0 %vm308_vm0, %v110_v0  ;;  %v45_v2 = vld [vmem:[%s6266_s0] sm:$0xff] }
   0x4   :  { %327 = vmatpush.msra.mxu0 %v109_v1 }
   0x5   :  { %3832 = vmatmul.msk.f32.vlgmr.msra.gmra.mxu0 %vm115_vm1, %v45_v2 }
   0x6   :  { %18 = vsyncpa [#allocation7], 0  ;;  %v46_v3 = vld [vmem:[%s6266_s0 + $0x8] sm:$0xff]  ;;  %v47_v4 = vld [vmem:[%s6266_s0 + $0x10] sm:$0xff]  ;;  %vm749_vm2 = vcmask 916480   ;;  %vm1596_vm3 = vcmask 261120  }
   0x7   :  { %v48_v5 = vld [vmem:[%s6266_s0 + $0x18] sm:$0xff]  ;;  %v49_v6 = vld [vmem:[%s6266_s0 + $0x20] sm:$0xff]  ;;  %v50_v7 = vld [vmem:[%s6266_s0 + $0x28] sm:$0xff]  ;;  %vm1598_vm4 = vcmask 254976   ;;  %s4052_s28 = smov 32   ;;  %s4053_s16 = smov 64  }
   0x8   :  { %v51_v8 = vld [vmem:[%s6266_s0 + $0x30] sm:$0xff]  ;;  %v52_v9 = vld [vmem:[%s6266_s0 + $0x38] sm:$0xff]  ;;  %v53_v10 = vld [vmem:[%s6266_s0 + $0x40] sm:$0xff]  ;;  %vm1750_vm5 = vcmask 523520   ;;  %vm1847_vm6 = vcmask 785920   ;;  %vm1945_vm7 = vcmask 1048320  }
   0x9   :  { %v54_v11 = vld [vmem:[%s6266_s0 + $0x48] sm:$0xff]  ;;  %v55_v12 = vld [vmem:[%s6266_s0 + $0x50] sm:$0xff]  ;;  %v56_v13 = vld [vmem:[%s6266_s0 + $0x58] sm:$0xff]  ;;  %vm2696_vm8 = vcmask 457728   ;;  %vm2962_vm9 = vcmask 521216   ;;  %vm2983_vm10 = vcmask 519168  }
   0xa   :  { %v57_v14 = vld [vmem:[%s6266_s0 + $0x60] sm:$0xff]  ;;  %v58_v15 = vld [vmem:[%s6266_s0 + $0x68] sm:$0xff]  ;;  %v59_v16 = vld [vmem:[%s6266_s0 + $0x70] sm:$0xff]  ;;  %vm3442_vm11 = vcmask 523264   ;;  %vm3032_vm12 = vcmask 1043968   ;;  %s3822_s14 = sshll.u32 %s6279_s13, 4  ;;  %s3823_s14 = int_to_ptr.hbm [resolvable:$true] %s3822_s14 }
   0xb   :  { %v60_v17 = vld [vmem:[%s6266_s0 + $0x78] sm:$0xff]  ;;  %v61_v19 = vld [vmem:[%s6266_s0 + $0x80] sm:$0xff]  ;;  %v62_v21 = vld [vmem:[%s6266_s0 + $0x88] sm:$0xff] }
   0xc   :  { %v63_v23 = vld [vmem:[%s6266_s0 + $0x90] sm:$0xff]  ;;  %v64_v25 = vld [vmem:[%s6266_s0 + $0x98] sm:$0xff]  ;;  %v65_v27 = vld [vmem:[%s6266_s0 + $0xa0] sm:$0xff] }
   0xd   :  { %3833 = vmatmul.msk.f32.gmra.mxu0 %vm115_vm1, %v46_v3  ;;  %v66_v29 = vld [vmem:[%s6266_s0 + $0xa8] sm:$0xff]  ;;  %v67_v31 = vld [vmem:[%s6266_s0 + $0xb0] sm:$0xff]  ;;  %v68_v33 = vld [vmem:[%s6266_s0 + $0xb8] sm:$0xff] }
   0xe   :  { %v69_v35 = vld [vmem:[%s6266_s0 + $0xc0] sm:$0xff]  ;;  %v70_v37 = vld [vmem:[%s6266_s0 + $0xc8] sm:$0xff]  ;;  %v71_v39 = vld [vmem:[%s6266_s0 + $0xd0] sm:$0xff] }
   0xf   :  { %v72_v41 = vld [vmem:[%s6266_s0 + $0xd8] sm:$0xff]  ;;  %v73_v43 = vld [vmem:[%s6266_s0 + $0xe0] sm:$0xff]  ;;  %v74_v45 = vld [vmem:[%s6266_s0 + $0xe8] sm:$0xff] }
  0x10   :  { %v75_v47 = vld [vmem:[%s6266_s0 + $0xf0] sm:$0xff]  ;;  %v76_v49 = vld [vmem:[%s6266_s0 + $0xf8] sm:$0xff]  ;;  %v77_v51 = vld [vmem:[%s6266_s0 + $0x100] sm:$0xff] }
  0x11   :  { %v4284_v52 = vld [vmem:[%s6268_s2] ss:$0 sm:$0xff]  ;;  %v78_v56 = vld [vmem:[%s6266_s0 + $0x108] sm:$0xff]  ;;  %s4056_s2 = smov [#allocation6]  }
  0x12   :  { %s3820_s27 = sshll.u32 %s4056_s2, 4  ;;  %s3821_s27 = int_to_ptr.vmem [resolvable:$true] %s3820_s27 }
  0x15   :  { %3834 = vmatmul.msk.f32.gmra.mxu0 %vm115_vm1, %v47_v4 }
  0x1d   :  { %3835 = vmatmul.msk.f32.gmra.mxu0 %vm115_vm1, %v48_v5 }
  0x25   :  { %3836 = vmatmul.msk.f32.gmra.mxu0 %vm115_vm1, %v49_v6  ;;  %v79_v6 = vld [vmem:[%s6266_s0 + $0x110] sm:$0xff] }
  0x2d   :  { %3837 = vmatmul.msk.f32.gmra.mxu0 %vm115_vm1, %v50_v7 }
  0x35   :  { %3838 = vmatmul.msk.f32.gmra.mxu0 %vm115_vm1, %v51_v8 }
  0x3d   :  { %3839 = vmatmul.msk.f32.gmra.mxu0 %vm115_vm1, %v52_v9 }
  0x45   :  { %3840 = vmatmul.msk.f32.gmra.mxu0 %vm115_vm1, %v53_v10 }
  0x4d   :  { %3841 = vmatmul.msk.f32.gmra.mxu0 %vm115_vm1, %v54_v11 }
  0x55   :  { %3842 = vmatmul.msk.f32.gmra.mxu0 %vm115_vm1, %v55_v12 }
  0x5d   :  { %3843 = vmatmul.msk.f32.gmra.mxu0 %vm115_vm1, %v56_v13 }
  0x65   :  { %3844 = vmatmul.msk.f32.gmra.mxu0 %vm115_vm1, %v57_v14 }
  0x6d   :  { %3845 = vmatmul.msk.f32.gmra.mxu0 %vm115_vm1, %v58_v15 }
  0x75   :  { %3846 = vmatmul.msk.f32.gmra.mxu0 %vm115_vm1, %v59_v16 }
  0x7d   :  { %3847 = vmatmul.msk.f32.gmra.mxu0 %vm115_vm1, %v60_v17 }
  0x82   :  { %v4197_v18 = vpop.f32.mrf.mxu0 }
  0x85   :  { %3848 = vmatmul.msk.f32.gmra.mxu0 %vm115_vm1, %v61_v19 }
  0x8a   :  { %v4203_v20 = vpop.f32.mrf.mxu0 }
  0x8d   :  { %3849 = vmatmul.msk.f32.gmra.mxu0 %vm115_vm1, %v62_v21 }
  0x92   :  { %v4209_v22 = vpop.f32.mrf.mxu0 }
  0x95   :  { %3850 = vmatmul.msk.f32.gmra.mxu0 %vm115_vm1, %v63_v23  ;;  %v80_v23 = vld [vmem:[%s6266_s0 + $0x118] sm:$0xff] }
  0x9a   :  { %v4215_v24 = vpop.f32.mrf.mxu0 }
  0x9d   :  { %3851 = vmatmul.msk.f32.gmra.mxu0 %vm115_vm1, %v64_v25 }
  0xa2   :  { %v4221_v26 = vpop.f32.mrf.mxu0 }
  0xa5   :  { %3852 = vmatmul.msk.f32.gmra.mxu0 %vm115_vm1, %v65_v27 }
  0xaa   :  { %v4227_v28 = vpop.f32.mrf.mxu0 }
  0xad   :  { %3853 = vmatmul.msk.f32.gmra.mxu0 %vm115_vm1, %v66_v29 }
  0xb2   :  { %v4233_v30 = vpop.f32.mrf.mxu0 }
  0xb3   :  { %v348_v25 = vadd.f32 %v4284_v52, %v4233_v30  ;;  %v339_v30 = vadd.f32 %v4284_v52, %v4215_v24 }
  0xb5   :  { %3854 = vmatmul.msk.f32.gmra.mxu0 %vm115_vm1, %v67_v31  ;;  %v345_v31 = vadd.f32 %v4284_v52, %v4227_v28  ;;  %v81_v28 = vld [vmem:[%s6266_s0 + $0x120] sm:$0xff] }
  0xba   :  { %v4239_v32 = vpop.f32.mrf.mxu0 }
  0xbb   :  { %v351_v16 = vadd.f32 %v4284_v52, %v4239_v32 }
  0xbd   :  { %3855 = vmatmul.msk.f32.gmra.mxu0 %vm115_vm1, %v68_v33  ;;  %v528_v33 = vmax.f32 %v351_v16, 0.0 }
  0xc2   :  { %v353_v34 = vpop.f32.mrf.mxu0 }
  0xc3   :  { %v354_v13 = vadd.f32 %v4284_v52, %v353_v34  ;;  %v342_v34 = vadd.f32 %v4284_v52, %v4221_v26 }
  0xc5   :  { %3856 = vmatmul.msk.f32.gmra.mxu0 %vm115_vm1, %v69_v35  ;;  %v529_v27 = vmax.f32 %v354_v13, 0.0  ;;  %v527_v35 = vmax.f32 %v348_v25, 0.0 }
  0xca   :  { %v356_v36 = vpop.f32.mrf.mxu0 }
  0xcb   :  { %v357_v10 = vadd.f32 %v4284_v52, %v356_v36 }
  0xcd   :  { %3857 = vmatmul.msk.f32.gmra.mxu0 %vm115_vm1, %v70_v37  ;;  %v530_v17 = vmax.f32 %v357_v10, 0.0  ;;  %v526_v37 = vmax.f32 %v345_v31, 0.0  ;;  %v91_v10 = vld [vmem:[%s6266_s0 + $0x170] sm:$0xff] }
  0xcf   :  { %v592_v36 = vmax.f32 %v528_v33, %v530_v17  ;;  %v590_v26 = vmax.f32 %v526_v37, %v528_v33 }
  0xd2   :  { %v359_v38 = vpop.f32.mrf.mxu0 }
  0xd3   :  { %v360_v7 = vadd.f32 %v4284_v52, %v359_v38  ;;  %v591_v38 = vmax.f32 %v527_v35, %v529_v27 }
  0xd5   :  { %3858 = vmatmul.msk.f32.gmra.mxu0 %vm115_vm1, %v71_v39  ;;  %v531_v14 = vmax.f32 %v360_v7, 0.0 }
  0xd7   :  { %v593_v32 = vmax.f32 %v529_v27, %v531_v14 }
  0xda   :  { %v362_v40 = vpop.f32.mrf.mxu0 }
  0xdb   :  { %v363_v2 = vadd.f32 %v4284_v52, %v362_v40  ;;  %v336_v40 = vadd.f32 %v4284_v52, %v4209_v22 }
  0xdd   :  { %3859 = vmatmul.msk.f32.gmra.mxu0 %vm115_vm1, %v72_v41  ;;  %v532_v11 = vmax.f32 %v363_v2, 0.0  ;;  %v525_v41 = vmax.f32 %v342_v34, 0.0 }
  0xdf   :  { %v594_v29 = vmax.f32 %v530_v17, %v532_v11  ;;  %v589_v24 = vmax.f32 %v525_v41, %v527_v35  ;;  %v645_v35 = vld [vmem:[%s6277_s11] sm:$0xff] }
  0xe2   :  { %v365_v42 = vpop.f32.mrf.mxu0 }
  0xe3   :  { %v366_v63 = vadd.f32 %v4284_v52, %v365_v42  ;;  %v333_v42 = vadd.f32 %v4284_v52, %v4203_v20  ;;  %v82_v20 = vld [vmem:[%s6266_s0 + $0x128] sm:$0xff] }
  0xe5   :  { %3860 = vmatmul.msk.f32.gmra.mxu0 %vm115_vm1, %v73_v43  ;;  %v533_v8 = vmax.f32 %v366_v63, 0.0  ;;  %v524_v43 = vmax.f32 %v339_v30, 0.0  ;;  %v86_v63 = vld [vmem:[%s6266_s0 + $0x148] sm:$0xff]  ;;  %v93_v30 = vld [vmem:[%s6266_s0 + $0x180] sm:$0xff] }
  0xe7   :  { %v595_v19 = vmax.f32 %v531_v14, %v533_v8  ;;  %v92_v14 = vld [vmem:[%s6266_s0 + $0x178] sm:$0xff] }
  0xea   :  { %v368_v44 = vpop.f32.mrf.mxu0 }
  0xeb   :  { %v369_v59 = vadd.f32 %v4284_v52, %v368_v44  ;;  %v330_v44 = vadd.f32 %v4284_v52, %v4197_v18 }
  0xed   :  { %3861 = vmatmul.msk.f32.gmra.mxu0 %vm115_vm1, %v74_v45  ;;  %v534_v3 = vmax.f32 %v369_v59, 0.0  ;;  %v523_v45 = vmax.f32 %v336_v40, 0.0  ;;  %v85_v59 = vld [vmem:[%s6266_s0 + $0x140] sm:$0xff] }
  0xef   :  { %v596_v15 = vmax.f32 %v532_v11, %v534_v3  ;;  %v587_v22 = vmax.f32 %v523_v45, %v525_v41 }
  0xf2   :  { %v371_v46 = vpop.f32.mrf.mxu0 }
  0xf3   :  { %v372_v57 = vadd.f32 %v4284_v52, %v371_v46  ;;  %v588_v46 = vmax.f32 %v524_v43, %v526_v37 }
  0xf5   :  { %3862 = vmatmul.msk.f32.gmra.mxu0 %vm115_vm1, %v75_v47  ;;  %v535_v0 = vmax.f32 %v372_v57, 0.0  ;;  %v522_v47 = vmax.f32 %v333_v42, 0.0 }
  0xf7   :  { %v597_v12 = vmax.f32 %v533_v8, %v535_v0  ;;  %v90_v8 = vld [vmem:[%s6266_s0 + $0x168] sm:$0xff] }
  0xfa   :  { %v374_v48 = vpop.f32.mrf.mxu0 }
  0xfb   :  { %v375_v53 = vadd.f32 %v4284_v52, %v374_v48 }
  0xfd   :  { %3863 = vmatmul.msk.f32.gmra.mxu0 %vm115_vm1, %v76_v49  ;;  %v536_v61 = vmax.f32 %v375_v53, 0.0  ;;  %v521_v49 = vmax.f32 %v330_v44, 0.0  ;;  %v83_v53 = vld [vmem:[%s6266_s0 + $0x130] sm:$0xff] }
  0xff   :  { %v598_v9 = vmax.f32 %v534_v3, %v536_v61  ;;  %v88_v3 = vld [vmem:[%s6266_s0 + $0x158] sm:$0xff] }
 0x102   :  { %v377_v50 = vpop.f32.mrf.mxu0 }
 0x103   :  { %v4288_v54 = vadd.f32 %v4284_v52, %v377_v50  ;;  %v586_v50 = vmax.f32 %v522_v47, %v524_v43  ;;  %v647_v47 = vld [vmem:[%s6277_s11 + $0x10] sm:$0xff] }
 0x105   :  { %3864 = vmatmul.msk.f32.gmra.mxu0 %vm115_vm1, %v77_v51  ;;  %v537_v60 = vmax.f32 %v4288_v54, 0.0  ;;  %v585_v51 = vmax.f32 %v521_v49, %v523_v45  ;;  %v648_v54 = vld [vmem:[%s6277_s11 + $0x18] sm:$0xff] }
 0x107   :  { %v599_v4 = vmax.f32 %v535_v0, %v537_v60 }
 0x10a   :  { %v380_v55 = vpop.f32.mrf.mxu0 }
 0x10b   :  { %v4295_v58 = vadd.f32 %v4284_v52, %v380_v55 }
 0x10d   :  { %3865 = vmatmul.msk.f32.gmra.mxu0 %vm115_vm1, %v78_v56  ;;  %v538_v62 = vmax.f32 %v4295_v58, 0.0  ;;  %v84_v56 = vld [vmem:[%s6266_s0 + $0x138] sm:$0xff] }
 0x10e   :  { %v96_v58 = vld [vmem:[%s6266_s0 + $0x198] sm:$0xff] }
 0x10f   :  { %v600_v1 = vmax.f32 %v536_v61, %v538_v62 }
 0x111   :  { %828 = vmatpush.msra.mxu1 %v600_v1  ;;  %v87_v1 = vld [vmem:[%s6266_s0 + $0x150] sm:$0xff] }
 0x112   :  { %v4307_v5 = vpop.f32.mrf.mxu0 }
 0x113   :  { %829 = vmatpush.msra.mxu1 %v599_v4 }
 0x115   :  { %3866 = vmatmul.msk.f32.gmra.mxu0 %vm115_vm1, %v79_v6  ;;  %830 = vmatpush.msra.mxu1 %v598_v9  ;;  %v89_v6 = vld [vmem:[%s6266_s0 + $0x160] sm:$0xff] }
 0x117   :  { %831 = vmatpush.msra.mxu1 %v597_v12 }
 0x119   :  { %832 = vmatpush.msra.mxu1 %v596_v15 }
 0x11a   :  { %v4318_v21 = vpop.f32.mrf.mxu0 }
 0x11b   :  { %833 = vmatpush.msra.mxu1 %v595_v19 }
 0x11d   :  { %3867 = vmatmul.msk.f32.gmra.mxu0 %vm115_vm1, %v80_v23  ;;  %834 = vmatpush.msra.mxu1 %v594_v29 }
 0x11f   :  { %835 = vmatpush.msra.mxu1 %v593_v32 }
 0x121   :  { %836 = vmatpush.msra.mxu1 %v592_v36 }
 0x122   :  { %v4332_v39 = vpop.f32.mrf.mxu0 }
 0x123   :  { %837 = vmatpush.msra.mxu1 %v591_v38  ;;  %v390_v49 = vadd.f32 %v4284_v52, %v4332_v39 }
 0x125   :  { %3868 = vmatmul.msk.f32.gmra.mxu0 %vm115_vm1, %v81_v28  ;;  %838 = vmatpush.msra.mxu1 %v590_v26 }
 0x127   :  { %839 = vmatpush.msra.mxu1 %v589_v24 }
 0x129   :  { %840 = vmatpush.msra.mxu1 %v588_v46 }
 0x12a   :  { %v4344_v48 = vpop.f32.mrf.mxu0 }
 0x12b   :  { %841 = vmatpush.msra.mxu1 %v587_v22  ;;  %v393_v44 = vadd.f32 %v4284_v52, %v4344_v48 }
 0x12d   :  { %3869 = vmatmul.msk.f32.gmra.mxu0 %vm115_vm1, %v82_v20  ;;  %842 = vmatpush.msra.mxu1 %v586_v50  ;;  %v94_v20 = vld [vmem:[%s6266_s0 + $0x188] sm:$0xff] }
 0x12f   :  { %843 = vmatpush.msra.mxu1 %v585_v51  ;;  %v387_v51 = vadd.f32 %v4284_v52, %v4318_v21  ;;  %v95_v21 = vld [vmem:[%s6266_s0 + $0x190] sm:$0xff] }
 0x130   :  { %844 = vmatmul.f32.vlgmr.msra.gmra.mxu1 %v645_v35 }
 0x132   :  { %v395_v18 = vpop.f32.mrf.mxu0 }
 0x133   :  { %v396_v42 = vadd.f32 %v4284_v52, %v395_v18  ;;  %v542_v18 = vmax.f32 %v393_v44, 0.0  ;;  %v669_v44 = vld [vmem:[%s6277_s11 + $0xc0] sm:$0xff] }
 0x135   :  { %3870 = vmatmul.msk.f32.gmra.mxu0 %vm115_vm1, %v83_v53  ;;  %v543_v50 = vmax.f32 %v396_v42, 0.0 }
 0x138   :  { %847 = vmatmul.f32.gmra.mxu1 %v647_v47  ;;  %v666_v47 = vld [vmem:[%s6277_s11 + $0xa8] sm:$0xff] }
 0x13a   :  { %v398_v55 = vpop.f32.mrf.mxu0 }
 0x13b   :  { %v399_v40 = vadd.f32 %v4284_v52, %v398_v55  ;;  %v384_v55 = vadd.f32 %v4284_v52, %v4307_v5 }
 0x13d   :  { %3871 = vmatmul.msk.f32.gmra.mxu0 %vm115_vm1, %v84_v56  ;;  %v544_v45 = vmax.f32 %v399_v40, 0.0  ;;  %v541_v56 = vmax.f32 %v390_v49, 0.0  ;;  %v103_v40 = vld [vmem:[%s6266_s0 + $0x1d0] sm:$0xff] }
 0x13f   :  { %v605_v39 = vmax.f32 %v541_v56, %v543_v50 }
 0x142   :  { %v401_v57 = vpop.f32.mrf.mxu0 }
 0x143   :  { %v402_v37 = vadd.f32 %v4284_v52, %v401_v57  ;;  %v606_v57 = vmax.f32 %v542_v18, %v544_v45 }
 0x145   :  { %3872 = vmatmul.msk.f32.gmra.mxu0 %vm115_vm1, %v85_v59  ;;  %v545_v43 = vmax.f32 %v402_v37, 0.0  ;;  %v540_v59 = vmax.f32 %v387_v51, 0.0  ;;  %v660_v37 = vld [vmem:[%s6277_s11 + $0x78] sm:$0xff]  ;;  %v673_v51 = vld [vmem:[%s6277_s11 + $0xe0] sm:$0xff] }
 0x147   :  { %v607_v53 = vmax.f32 %v543_v50, %v545_v43  ;;  %v604_v5 = vmax.f32 %v540_v59, %v542_v18  ;;  %v106_v50 = vld [vmem:[%s6266_s0 + $0x1e8] sm:$0xff] }
 0x14a   :  { %v404_v61 = vpop.f32.mrf.mxu0 }
 0x14b   :  { %v405_v33 = vadd.f32 %v4284_v52, %v404_v61  ;;  %v649_v61 = vld [vmem:[%s6277_s11 + $0x20] sm:$0xff] }
 0x14c   :  { %850 = vmatmul.f32.gmra.mxu1 %v649_v61  ;;  %v672_v61 = vld [vmem:[%s6277_s11 + $0xd8] sm:$0xff] }
 0x14d   :  { %3873 = vmatmul.msk.f32.gmra.mxu0 %vm115_vm1, %v86_v63  ;;  %v546_v41 = vmax.f32 %v405_v33, 0.0  ;;  %v101_v33 = vld [vmem:[%s6266_s0 + $0x1c0] sm:$0xff] }
 0x14f   :  { %v608_v48 = vmax.f32 %v544_v45, %v546_v41 }
 0x152   :  { %v407_v0 = vpop.f32.mrf.mxu0 }
 0x153   :  { %v408_v27 = vadd.f32 %v4284_v52, %v407_v0  ;;  %v539_v0 = vmax.f32 %v384_v55, 0.0  ;;  %v670_v55 = vld [vmem:[%s6277_s11 + $0xc8] sm:$0xff] }
 0x155   :  { %3874 = vmatmul.msk.f32.gmra.mxu0 %vm115_vm1, %v87_v1  ;;  %v547_v38 = vmax.f32 %v408_v27, 0.0  ;;  %v603_v1 = vmax.f32 %v539_v0, %v541_v56  ;;  %v656_v27 = vld [vmem:[%s6277_s11 + $0x58] sm:$0xff]  ;;  %v675_v56 = vld [vmem:[%s6277_s11 + $0xf0] sm:$0xff] }
 0x157   :  { %v609_v46 = vmax.f32 %v545_v43, %v547_v38  ;;  %v104_v43 = vld [vmem:[%s6266_s0 + $0x1d8] sm:$0xff] }
 0x15a   :  { %v410_v2 = vpop.f32.mrf.mxu0 }
 0x15b   :  { %v411_v17 = vadd.f32 %v4284_v52, %v410_v2  ;;  %v602_v2 = vmax.f32 %v538_v62, %v540_v59  ;;  %v108_v59 = vld [vmem:[%s6266_s0 + $0x1f8] sm:$0xff] }
 0x15d   :  { %3875 = vmatmul.msk.f32.gmra.mxu0 %vm115_vm1, %v88_v3  ;;  %v548_v32 = vmax.f32 %v411_v17, 0.0  ;;  %v601_v3 = vmax.f32 %v537_v60, %v539_v0  ;;  %v653_v60 = vld [vmem:[%s6277_s11 + $0x40] sm:$0xff]  ;;  %v654_v17 = vld [vmem:[%s6277_s11 + $0x48] sm:$0xff] }
 0x15f   :  { %v610_v24 = vmax.f32 %v546_v41, %v548_v32  ;;  %v662_v41 = vld [vmem:[%s6277_s11 + $0x88] sm:$0xff] }
 0x162   :  { %v413_v4 = vpop.f32.mrf.mxu0 }
 0x163   :  { %v414_v15 = vadd.f32 %v4284_v52, %v413_v4  ;;  %v646_v4 = vld [vmem:[%s6277_s11 + $0x8] sm:$0xff] }
 0x165   :  { %3876 = vmatmul.msk.f32.gmra.mxu0 %vm115_vm1, %v89_v6  ;;  %v549_v29 = vmax.f32 %v414_v15, 0.0  ;;  %v651_v6 = vld [vmem:[%s6277_s11 + $0x30] sm:$0xff] }
 0x166   :  { %853 = vmatmul.f32.gmra.mxu1 %v651_v6 }
 0x167   :  { %v611_v26 = vmax.f32 %v547_v38, %v549_v29  ;;  %v665_v38 = vld [vmem:[%s6277_s11 + $0xa0] sm:$0xff] }
 0x16a   :  { %v416_v7 = vpop.f32.mrf.mxu0 }
 0x16b   :  { %v417_v11 = vadd.f32 %v4284_v52, %v416_v7 }
 0x16d   :  { %3877 = vmatmul.msk.f32.gmra.mxu0 %vm115_vm1, %v90_v8  ;;  %v550_v23 = vmax.f32 %v417_v11, 0.0  ;;  %v97_v8 = vld [vmem:[%s6266_s0 + $0x1a0] sm:$0xff] }
 0x16e   :  { %856 = vmatmul.f32.gmra.mxu1 %v653_v60 }
 0x16f   :  { %v612_v28 = vmax.f32 %v548_v32, %v550_v23  ;;  %v658_v32 = vld [vmem:[%s6277_s11 + $0x68] sm:$0xff] }
 0x172   :  { %v419_v9 = vpop.f32.mrf.mxu0 }
 0x173   :  { %v420_v12 = vadd.f32 %v4284_v52, %v419_v9  ;;  %v650_v9 = vld [vmem:[%s6277_s11 + $0x28] sm:$0xff] }
 0x175   :  { %3878 = vmatmul.msk.f32.gmra.mxu0 %vm115_vm1, %v91_v10  ;;  %v551_v19 = vmax.f32 %v420_v12, 0.0  ;;  %v655_v10 = vld [vmem:[%s6277_s11 + $0x50] sm:$0xff]  ;;  %v98_v12 = vld [vmem:[%s6266_s0 + $0x1a8] sm:$0xff] }
 0x176   :  { %859 = vmatmul.f32.gmra.mxu1 %v655_v10 }
 0x177   :  { %v613_v34 = vmax.f32 %v549_v29, %v551_v19  ;;  %v659_v19 = vld [vmem:[%s6277_s11 + $0x70] sm:$0xff]  ;;  %v661_v29 = vld [vmem:[%s6277_s11 + $0x80] sm:$0xff] }
 0x17a   :  { %v422_v13 = vpop.f32.mrf.mxu0 }
 0x17b   :  { %v423_v16 = vadd.f32 %v4284_v52, %v422_v13  ;;  %v652_v13 = vld [vmem:[%s6277_s11 + $0x38] sm:$0xff] }
 0x17d   :  { %3879 = vmatmul.msk.f32.gmra.mxu0 %vm115_vm1, %v92_v14  ;;  %v552_v25 = vmax.f32 %v423_v16, 0.0  ;;  %v657_v14 = vld [vmem:[%s6277_s11 + $0x60] sm:$0xff]  ;;  %v99_v16 = vld [vmem:[%s6266_s0 + $0x1b0] sm:$0xff] }
 0x17e   :  { %862 = vmatmul.f32.gmra.mxu1 %v657_v14 }
 0x17f   :  { %v614_v31 = vmax.f32 %v550_v23, %v552_v25  ;;  %v100_v25 = vld [vmem:[%s6266_s0 + $0x1b8] sm:$0xff] }
 0x181   :  { %925 = vmatpush.msra.mxu2 %v614_v31 }
 0x182   :  { %v4400_v36 = vpop.f32.mrf.mxu0 }
 0x183   :  { %926 = vmatpush.msra.mxu2 %v613_v34  ;;  %v663_v34 = vld [vmem:[%s6277_s11 + $0x90] sm:$0xff] }
 0x185   :  { %3880 = vmatmul.msk.f32.gmra.mxu0 %vm115_vm1, %v93_v30  ;;  %927 = vmatpush.msra.mxu2 %v612_v28  ;;  %v102_v30 = vld [vmem:[%s6266_s0 + $0x1c8] sm:$0xff] }
 0x186   :  { %865 = vmatmul.f32.gmra.mxu1 %v659_v19 }
 0x187   :  { %928 = vmatpush.msra.mxu2 %v611_v26  ;;  %v667_v26 = vld [vmem:[%s6277_s11 + $0xb0] sm:$0xff] }
 0x189   :  { %929 = vmatpush.msra.mxu2 %v610_v24  ;;  %v664_v24 = vld [vmem:[%s6277_s11 + $0x98] sm:$0xff] }
 0x18a   :  { %v4414_v22 = vpop.f32.mrf.mxu0 }
 0x18b   :  { %930 = vmatpush.msra.mxu2 %v609_v46  ;;  %v105_v46 = vld [vmem:[%s6266_s0 + $0x1e0] sm:$0xff] }
 0x18d   :  { %3881 = vmatmul.msk.f32.gmra.mxu0 %vm115_vm1, %v94_v20  ;;  %931 = vmatpush.msra.mxu2 %v608_v48  ;;  %v671_v20 = vld [vmem:[%s6277_s11 + $0xd0] sm:$0xff]  ;;  %v668_v48 = vld [vmem:[%s6277_s11 + $0xb8] sm:$0xff] }
 0x18e   :  { %868 = vmatmul.f32.gmra.mxu1 %v661_v29  ;;  %v681_v29 = vld [vmem:[%s6277_s11 + $0x120] sm:$0xff] }
 0x18f   :  { %932 = vmatpush.msra.mxu2 %v607_v53  ;;  %v107_v53 = vld [vmem:[%s6266_s0 + $0x1f0] sm:$0xff]  ;;  %s4054_s0 = smov 96  }
 0x191   :  { %933 = vmatpush.msra.mxu2 %v606_v57 }
 0x192   :  { %v4429_v63 = vpop.f32.mrf.mxu0 }
 0x193   :  { %934 = vmatpush.msra.mxu2 %v605_v39 }
 0x195   :  { %3882 = vmatmul.msk.f32.gmra.mxu0 %vm115_vm1, %v95_v21  ;;  %935 = vmatpush.msra.mxu2 %v604_v5  ;;  %v677_v21 = vld [vmem:[%s6277_s11 + $0x100] sm:$0xff] }
 0x196   :  { %871 = vmatmul.f32.gmra.mxu1 %v663_v34 }
 0x197   :  { %936 = vmatpush.msra.mxu2 %v603_v1 }
 0x199   :  { %937 = vmatpush.msra.mxu2 %v602_v2 }
 0x19a   :  { %v4445_v7 = vpop.f32.mrf.mxu0 }
 0x19b   :  { %938 = vmatpush.msra.mxu2 %v601_v3  ;;  %v674_v3 = vld [vmem:[%s6277_s11 + $0xe8] sm:$0xff] }
 0x19c   :  { %3896 = vmatmul.msk.f32.vlgmr.msra.gmra.mxu2 %vm749_vm2, %v646_v4  ;;  %v679_v4 = vld [vmem:[%s6277_s11 + $0x110] sm:$0xff] }
 0x19d   :  { %3883 = vmatmul.msk.f32.gmra.mxu0 %vm115_vm1, %v96_v58 }
 0x19e   :  { %874 = vmatmul.f32.gmra.mxu1 %v665_v38 }
 0x1a2   :  { %v4458_v62 = vpop.f32.mrf.mxu0 }
 0x1a4   :  { %3897 = vmatmul.msk.f32.gmra.mxu2 %vm749_vm2, %v648_v54 }
 0x1a5   :  { %3884 = vmatmul.msk.f32.gmra.mxu0 %vm115_vm1, %v97_v8 }
 0x1a6   :  { %877 = vmatmul.f32.gmra.mxu1 %v667_v26 }
 0x1aa   :  { %v4471_v11 = vpop.f32.mrf.mxu0 }
 0x1ac   :  { %3898 = vmatmul.msk.f32.gmra.mxu2 %vm749_vm2, %v650_v9 }
 0x1ad   :  { %3885 = vmatmul.msk.f32.gmra.mxu0 %vm115_vm1, %v98_v12  ;;  %v4598_v39 = vpop.f32.mrf.mxu1 }
 0x1ae   :  { %880 = vmatmul.f32.gmra.mxu1 %v669_v44 }
 0x1b2   :  { %v4484_v15 = vpop.f32.mrf.mxu0 }
 0x1b4   :  { %3899 = vmatmul.msk.f32.gmra.mxu2 %vm749_vm2, %v652_v13 }
 0x1b5   :  { %3886 = vmatmul.msk.f32.gmra.mxu0 %vm115_vm1, %v99_v16  ;;  %v4607_v5 = vpop.f32.mrf.mxu1 }
 0x1b6   :  { %883 = vmatmul.f32.gmra.mxu1 %v671_v20 }
 0x1ba   :  { %v4497_v23 = vpop.f32.mrf.mxu0 }
 0x1bc   :  { %3900 = vmatmul.msk.f32.gmra.mxu2 %vm749_vm2, %v654_v17 }
 0x1bd   :  { %3887 = vmatmul.msk.f32.gmra.mxu0 %vm115_vm1, %v100_v25 }
 0x1be   :  { %886 = vmatmul.f32.gmra.mxu1 %v673_v51  ;;  %v441_v51 = vadd.f32 %v4284_v52, %v4471_v11  ;;  %v435_v11 = vadd.f32 %v4284_v52, %v4445_v7 }
 0x1c2   :  { %v4510_v31 = vpop.f32.mrf.mxu0 }
 0x1c4   :  { %3901 = vmatmul.msk.f32.gmra.mxu2 %vm749_vm2, %v656_v27  ;;  %v676_v27 = vld [vmem:[%s6277_s11 + $0xf8] sm:$0xff] }
 0x1c5   :  { %3888 = vmatmul.msk.f32.gmra.mxu0 %vm115_vm1, %v101_v33 }
 0x1c6   :  { %889 = vmatmul.f32.gmra.mxu1 %v675_v56  ;;  %v438_v56 = vadd.f32 %v4284_v52, %v4458_v62  ;;  %v680_v62 = vld [vmem:[%s6277_s11 + $0x118] sm:$0xff] }
 0x1c9   :  { %v4622_v16 = vpop.f32.mrf.mxu1 }
 0x1ca   :  { %v4523_v35 = vpop.f32.mrf.mxu0 }
 0x1cb   :  { %v453_v38 = vadd.f32 %v4284_v52, %v4523_v35 }
 0x1cc   :  { %3902 = vmatmul.msk.f32.gmra.mxu2 %vm749_vm2, %v658_v32 }
 0x1cd   :  { %3889 = vmatmul.msk.f32.gmra.mxu0 %vm115_vm1, %v102_v30 }
 0x1ce   :  { %892 = vmatmul.f32.gmra.mxu1 %v677_v21 }
 0x1d2   :  { %v4536_v28 = vpop.f32.mrf.mxu0 }
 0x1d3   :  { %v456_v32 = vadd.f32 %v4284_v52, %v4536_v28 }
 0x1d4   :  { %3903 = vmatmul.msk.f32.gmra.mxu2 %vm749_vm2, %v660_v37 }
 0x1d5   :  { %3890 = vmatmul.msk.f32.gmra.mxu0 %vm115_vm1, %v103_v40  ;;  %v563_v28 = vmax.f32 %v456_v32, 0.0 }
 0x1d6   :  { %895 = vmatmul.f32.gmra.mxu1 %v679_v4 }
 0x1da   :  { %v458_v42 = vpop.f32.mrf.mxu0 }
 0x1db   :  { %v459_v17 = vadd.f32 %v4284_v52, %v458_v42  ;;  %v450_v42 = vadd.f32 %v4284_v52, %v4510_v31  ;;  %v683_v31 = vld [vmem:[%s6277_s11 + $0x130] sm:$0xff] }
 0x1dc   :  { %3904 = vmatmul.msk.f32.gmra.mxu2 %vm749_vm2, %v662_v41 }
 0x1dd   :  { %3891 = vmatmul.msk.f32.gmra.mxu0 %vm115_vm1, %v104_v43  ;;  %v564_v40 = vmax.f32 %v459_v17, 0.0 }
 0x1de   :  { %898 = vmatmul.f32.gmra.mxu1 %v681_v29 }
 0x1e2   :  { %v461_v45 = vpop.f32.mrf.mxu0 }
 0x1e3   :  { %v462_v12 = vadd.f32 %v4284_v52, %v461_v45  ;;  %v447_v45 = vadd.f32 %v4284_v52, %v4497_v23 }
 0x1e4   :  { %3905 = vmatmul.msk.f32.gmra.mxu2 %vm749_vm2, %v664_v24  ;;  %v4642_v24 = vpop.f32.mrf.mxu1 }
 0x1e5   :  { %3892 = vmatmul.msk.f32.gmra.mxu0 %vm115_vm1, %v105_v46  ;;  %v565_v34 = vmax.f32 %v462_v12, 0.0  ;;  %v562_v46 = vmax.f32 %v453_v38, 0.0 }
 0x1e6   :  { %901 = vmatmul.f32.gmra.mxu1 %v683_v31 }
 0x1e7   :  { %v625_v35 = vmax.f32 %v563_v28, %v565_v34  ;;  %v624_v23 = vmax.f32 %v562_v46, %v564_v40 }
 0x1ea   :  { %v464_v49 = vpop.f32.mrf.mxu0 }
 0x1eb   :  { %v465_v60 = vadd.f32 %v4284_v52, %v464_v49  ;;  %v444_v49 = vadd.f32 %v4284_v52, %v4484_v15 }
 0x1ec   :  { %3906 = vmatmul.msk.f32.gmra.mxu2 %vm749_vm2, %v666_v47  ;;  %v678_v47 = vld [vmem:[%s6277_s11 + $0x108] sm:$0xff] }
 0x1ed   :  { %3893 = vmatmul.msk.f32.gmra.mxu0 %vm115_vm1, %v106_v50  ;;  %v566_v19 = vmax.f32 %v465_v60, 0.0  ;;  %v561_v50 = vmax.f32 %v450_v42, 0.0  ;;  %v556_v60 = vmax.f32 %v435_v11, 0.0  ;;  %v690_v11 = vld [vmem:[%s6277_s11 + $0x168] sm:$0xff] }
 0x1ef   :  { %v626_v43 = vmax.f32 %v564_v40, %v566_v19  ;;  %v684_v40 = vld [vmem:[%s6277_s11 + $0x138] sm:$0xff] }
 0x1f2   :  { %v467_v18 = vpop.f32.mrf.mxu0 }
 0x1f3   :  { %v468_v58 = vadd.f32 %v4284_v52, %v467_v18  ;;  %v560_v18 = vmax.f32 %v447_v45, 0.0 }
 0x1f4   :  { %3907 = vmatmul.msk.f32.gmra.mxu2 %vm749_vm2, %v668_v48 }
 0x1f5   :  { %3894 = vmatmul.msk.f32.gmra.mxu0 %vm115_vm1, %v107_v53  ;;  %v567_v13 = vmax.f32 %v468_v58, 0.0  ;;  %v622_v15 = vmax.f32 %v560_v18, %v562_v46 }
 0x1f7   :  { %v627_v26 = vmax.f32 %v565_v34, %v567_v13 }
 0x1fa   :  { %v470_v57 = vpop.f32.mrf.mxu0 }
 0x1fb   :  { %v471_v1 = vadd.f32 %v4284_v52, %v470_v57  ;;  %v559_v57 = vmax.f32 %v444_v49, 0.0 }
 0x1fc   :  { %3908 = vmatmul.msk.f32.gmra.mxu2 %vm749_vm2, %v670_v55  ;;  %v623_v55 = vmax.f32 %v561_v50, %v563_v28 }
 0x1fd   :  { %3895 = vmatmul.msk.f32.gmra.mxu0 %vm115_vm1, %v108_v59  ;;  %v568_v8 = vmax.f32 %v471_v1, 0.0  ;;  %v558_v1 = vmax.f32 %v441_v51, 0.0  ;;  %v688_v51 = vld [vmem:[%s6277_s11 + $0x158] sm:$0xff] }
 0x1ff   :  { %v628_v37 = vmax.f32 %v566_v19, %v568_v8  ;;  %v620_v7 = vmax.f32 %v558_v1, %v560_v18  ;;  %v693_v18 = vld [vmem:[%s6277_s11 + $0x180] sm:$0xff] }
 0x202   :  { %v473_v0 = vpop.f32.mrf.mxu0 }
 0x203   :  { %v474_v2 = vadd.f32 %v4284_v52, %v473_v0  ;;  %v4667_v0 = vpop.f32.mrf.mxu1 }
 0x204   :  { %3909 = vmatmul.msk.f32.gmra.mxu2 %vm749_vm2, %v672_v61 }
 0x205   :  { %v569_v9 = vmax.f32 %v474_v2, 0.0  ;;  %v621_v2 = vmax.f32 %v559_v57, %v561_v50 }
 0x207   :  { %v629_v25 = vmax.f32 %v567_v13, %v569_v9 }
 0x20a   :  { %v476_v6 = vpop.f32.mrf.mxu0 }
 0x20b   :  { %v477_v54 = vadd.f32 %v4284_v52, %v476_v6  ;;  %v557_v6 = vmax.f32 %v438_v56, 0.0  ;;  %v4696_v29 = vpop.f32.mrf.mxu1 }
 0x20c   :  { %3910 = vmatmul.msk.f32.gmra.mxu2 %vm749_vm2, %v674_v3  ;;  %v685_v3 = vld [vmem:[%s6277_s11 + $0x140] sm:$0xff] }
 0x20d   :  { %v570_v10 = vmax.f32 %v477_v54, 0.0  ;;  %904 = vmatmul.f32.gmra.mxu1 %v685_v3  ;;  %v429_v54 = vadd.f32 %v4284_v52, %v4414_v22  ;;  %v682_v22 = vld [vmem:[%s6277_s11 + $0x128] sm:$0xff]  ;;  %v692_v3 = vld [vmem:[%s6277_s11 + $0x178] sm:$0xff] }
 0x20f   :  { %v630_v14 = vmax.f32 %v568_v8, %v570_v10  ;;  %v554_v19 = vmax.f32 %v429_v54, 0.0 }
 0x211   :  { %1096 = vmatpush.msra.mxu3 %v630_v14 }
 0x212   :  { %v479_v33 = vpop.f32.mrf.mxu0 }
 0x213   :  { %v4634_v30 = vadd.f32 %v4284_v52, %v479_v33  ;;  %1097 = vmatpush.msra.mxu3 %v629_v25  ;;  %v4712_v28 = vpop.f32.mrf.mxu1 }
 0x214   :  { %3911 = vmatmul.msk.f32.gmra.mxu2 %vm749_vm2, %v676_v27 }
 0x215   :  { %v571_v41 = vmax.f32 %v4634_v30, 0.0  ;;  %1098 = vmatpush.msra.mxu3 %v628_v37 }
 0x217   :  { %1099 = vmatpush.msra.mxu3 %v627_v26  ;;  %v4644_v44 = vmax.f32 %v569_v9, %v571_v41  ;;  %v619_v9 = vmax.f32 %v557_v6, %v559_v57 }
 0x219   :  { %1100 = vmatpush.msra.mxu3 %v626_v43 }
 0x21a   :  { %v482_v20 = vpop.f32.mrf.mxu0 }
 0x21b   :  { %v483_v48 = vadd.f32 %v4284_v52, %v482_v20  ;;  %1101 = vmatpush.msra.mxu3 %v625_v35  ;;  %v686_v35 = vld [vmem:[%s6277_s11 + $0x148] sm:$0xff]  ;;  %v4729_v50 = vpop.f32.mrf.mxu1 }
 0x21c   :  { %3912 = vmatmul.msk.f32.gmra.mxu2 %vm749_vm2, %v678_v47  ;;  %v691_v47 = vld [vmem:[%s6277_s11 + $0x170] sm:$0xff] }
 0x21d   :  { %v572_v53 = vmax.f32 %v483_v48, 0.0  ;;  %1102 = vmatpush.msra.mxu3 %v624_v23 }
 0x21f   :  { %v940_v59 = vpop.f32.mrf.mxu2  ;;  %1103 = vmatpush.msra.mxu3 %v623_v55  ;;  %v4662_v61 = vmax.f32 %v570_v10, %v572_v53  ;;  %v426_v10 = vadd.f32 %v4284_v52, %v4400_v36  ;;  %v687_v36 = vld [vmem:[%s6277_s11 + $0x150] sm:$0xff] }
 0x220   :  { %v4665_v21 = vadd.f32 %v940_v59, %v4598_v39  ;;  %v432_v39 = vadd.f32 %v4284_v52, %v4429_v63  ;;  %v618_v63 = vmax.f32 %v556_v60, %v558_v1  ;;  %907 = vmatmul.f32.gmra.mxu1 %v687_v36  ;;  %v695_v1 = vld [vmem:[%s6277_s11 + $0x190] sm:$0xff] }
 0x221   :  { %1104 = vmatpush.msra.mxu3 %v622_v15  ;;  %v553_v33 = vmax.f32 %v426_v10, 0.0 }
 0x222   :  { %v485_v4 = vpop.f32.mrf.mxu0  ;;  %v555_v12 = vmax.f32 %v432_v39, 0.0 }
 0x223   :  { %v486_v58 = vadd.f32 %v4284_v52, %v485_v4  ;;  %1105 = vmatpush.msra.mxu3 %v621_v2  ;;  %v4754_v15 = vpop.f32.mrf.mxu1 }
 0x224   :  { %3913 = vmatmul.msk.f32.gmra.mxu2 %vm749_vm2, %v680_v62  ;;  %v617_v25 = vmax.f32 %v555_v12, %v557_v6  ;;  %v615_v30 = vmax.f32 %v553_v33, %v555_v12 }
 0x225   :  { %v573_v8 = vmax.f32 %v486_v58, 0.0  ;;  %1106 = vmatpush.msra.mxu3 %v620_v7  ;;  %v694_v58 = vld [vmem:[%s6277_s11 + $0x188] sm:$0xff] }
 0x227   :  { %v943_v13 = vpop.f32.mrf.mxu2  ;;  %1107 = vmatpush.msra.mxu3 %v619_v9  ;;  %v4685_v14 = vmax.f32 %v571_v41, %v573_v8  ;;  %v689_v41 = vld [vmem:[%s6277_s11 + $0x160] sm:$0xff] }
 0x228   :  { %v4688_v17 = vadd.f32 %v943_v13, %v4607_v5  ;;  %v616_v5 = vmax.f32 %v554_v19, %v556_v60  ;;  %910 = vmatmul.f32.gmra.mxu1 %v689_v41 }
 0x229   :  { %1108 = vmatpush.msra.mxu3 %v618_v63 }
 0x22a   :  { %v488_v27 = vpop.f32.mrf.mxu0 }
 0x22b   :  { %v489_v32 = vadd.f32 %v4284_v52, %v488_v27  ;;  %1109 = vmatpush.msra.mxu3 %v617_v25  ;;  %v4768_v39 = vpop.f32.mrf.mxu1 }
 0x22c   :  { %3914 = vmatmul.msk.f32.gmra.mxu2 %vm749_vm2, %v682_v22 }
 0x22d   :  { %v574_v34 = vmax.f32 %v489_v32, 0.0  ;;  %1110 = vmatpush.msra.mxu3 %v616_v5 }
 0x22f   :  { %v4700_v37 = vpop.f32.mrf.mxu2  ;;  %1111 = vmatpush.msra.mxu3 %v615_v30  ;;  %v4702_v38 = vmax.f32 %v572_v53, %v574_v34 }
 0x230   :  { %913 = vmatmul.f32.gmra.mxu1 %v691_v47 }
 0x232   :  { %v491_v26 = vpop.f32.mrf.mxu0 }
 0x233   :  { %v492_v42 = vadd.f32 %v4284_v52, %v491_v26  ;;  %v4777_v54 = vpop.f32.mrf.mxu1 }
 0x234   :  { %3915 = vmatmul.msk.f32.gmra.mxu2 %vm749_vm2, %v684_v40 }
 0x235   :  { %v575_v43 = vmax.f32 %v492_v42, 0.0 }
 0x237   :  { %v4714_v45 = vpop.f32.mrf.mxu2  ;;  %v4716_v46 = vmax.f32 %v573_v8, %v575_v43  ;;  %v696_v8 = vld [vmem:[%s6277_s11 + $0x198] sm:$0xff] }
 0x238   :  { %916 = vmatmul.f32.gmra.mxu1 %v693_v18 }
 0x23a   :  { %v494_v31 = vpop.f32.mrf.mxu0 }
 0x23b   :  { %v4725_v20 = vadd.f32 %v4284_v52, %v494_v31  ;;  %v4785_v10 = vpop.f32.mrf.mxu1  ;;  %v697_v31 = vld [vmem:[%s6277_s11 + $0x1a0] sm:$0xff] }
 0x23c   :  { %3916 = vmatmul.msk.f32.gmra.mxu2 %vm749_vm2, %v686_v35  ;;  %1112 = vmatmul.f32.vlgmr.msra.gmra.mxu3 %v697_v31 }
 0x23d   :  { %v576_v49 = vmax.f32 %v4725_v20, 0.0  ;;  %v701_v20 = vld [vmem:[%s6277_s11 + $0x1c0] sm:$0xff] }
 0x23f   :  { %v4731_v48 = vpop.f32.mrf.mxu2  ;;  %v4735_v23 = vmax.f32 %v574_v34, %v576_v49 }
 0x240   :  { %919 = vmatmul.f32.gmra.mxu1 %v695_v1 }
 0x242   :  { %v497_v53 = vpop.f32.mrf.mxu0 }
 0x243   :  { %v4744_v55 = vadd.f32 %v4284_v52, %v497_v53  ;;  %v4791_v19 = vpop.f32.mrf.mxu1 }
 0x244   :  { %3917 = vmatmul.msk.f32.gmra.mxu2 %vm749_vm2, %v688_v51 }
 0x245   :  { %v577_v56 = vmax.f32 %v4744_v55, 0.0 }
 0x247   :  { %v4748_v57 = vpop.f32.mrf.mxu2  ;;  %v4752_v59 = vmax.f32 %v575_v43, %v577_v56 }
 0x24a   :  { %v500_v2 = vpop.f32.mrf.mxu0 }
 0x24b   :  { %v884_v32 = vpop.f32.mrf.mxu1  ;;  %v501_v51 = vadd.f32 %v4284_v52, %v500_v2 }
 0x24c   :  { %3918 = vmatmul.msk.f32.gmra.mxu2 %vm749_vm2, %v690_v11 }
 0x24f   :  { %v4763_v62 = vpop.f32.mrf.mxu2 }
 0x252   :  { %v503_v4 = vpop.f32.mrf.mxu0 }
 0x253   :  { %v504_v42 = vadd.f32 %v4284_v52, %v503_v4 }
 0x254   :  { %3919 = vmatmul.msk.f32.gmra.mxu2 %vm749_vm2, %v692_v3  ;;  %v887_v3 = vpop.f32.mrf.mxu1 }
 0x255   :  { %v579_v11 = vmax.f32 %v504_v42, 0.0 }
 0x257   :  { %v4771_v6 = vpop.f32.mrf.mxu2 }
 0x25a   :  { %v506_v7 = vpop.f32.mrf.mxu0 }
 0x25b   :  { %v507_v30 = vadd.f32 %v4284_v52, %v506_v7 }
 0x25c   :  { %3920 = vmatmul.msk.f32.gmra.mxu2 %vm749_vm2, %v694_v58  ;;  %v578_v58 = vmax.f32 %v501_v51, 0.0 }
 0x25d   :  { %v580_v18 = vmax.f32 %v507_v30, 0.0 }
 0x25f   :  { %v4779_v60 = vpop.f32.mrf.mxu2 }
 0x262   :  { %v509_v9 = vpop.f32.mrf.mxu0 }
 0x263   :  { %v510_v5 = vadd.f32 %v4284_v52, %v509_v9  ;;  %v699_v9 = vld [vmem:[%s6277_s11 + $0x1b0] sm:$0xff] }
 0x264   :  { %3921 = vmatmul.msk.f32.gmra.mxu2 %vm749_vm2, %v696_v8  ;;  %v640_v8 = vmax.f32 %v578_v58, %v580_v18  ;;  %1115 = vmatmul.f32.gmra.mxu3 %v699_v9 }
 0x265   :  { %v581_v43 = vmax.f32 %v510_v5, 0.0  ;;  %v890_v5 = vpop.f32.mrf.mxu1 }
 0x267   :  { %v4787_v12 = vpop.f32.mrf.mxu2  ;;  %v641_v4 = vmax.f32 %v579_v11, %v581_v43 }
 0x26a   :  { %v512_v13 = vpop.f32.mrf.mxu0 }
 0x26b   :  { %v513_v36 = vadd.f32 %v4284_v52, %v512_v13 }
 0x26c   :  { %1118 = vmatmul.f32.gmra.mxu3 %v701_v20 }
 0x26d   :  { %v582_v40 = vmax.f32 %v513_v36, 0.0 }
 0x26f   :  { %v4789_v63 = vpop.f32.mrf.mxu2  ;;  %v642_v1 = vmax.f32 %v580_v18, %v582_v40 }
 0x272   :  { %v515_v25 = vpop.f32.mrf.mxu0 }
 0x273   :  { %v516_v27 = vadd.f32 %v4284_v52, %v515_v25  ;;  %v638_v25 = vmax.f32 %v576_v49, %v578_v58  ;;  %v953_v58 = vadd.f32 %v4731_v48, %v4667_v0 }
 0x275   :  { %v583_v41 = vmax.f32 %v516_v27, 0.0 }
 0x277   :  { %v4793_v22 = vpop.f32.mrf.mxu2  ;;  %v643_v53 = vmax.f32 %v581_v43, %v583_v41 }
 0x27a   :  { %v518_v33 = vpop.f32.mrf.mxu0 }
 0x27b   :  { %v519_v34 = vadd.f32 %v4284_v52, %v518_v33  ;;  %v639_v52 = vmax.f32 %v577_v56, %v579_v11 }
 0x27d   :  { %v584_v26 = vmax.f32 %v519_v34, 0.0 }
 0x27f   :  { %v4801_v35 = vpop.f32.mrf.mxu2  ;;  %v644_v47 = vmax.f32 %v582_v40, %v584_v26  ;;  %v893_v40 = vpop.f32.mrf.mxu1 }
 0x281   :  { %1193 = vmatpush.msrb.mxu2 %v644_v47 }
 0x283   :  { %1194 = vmatpush.msrb.mxu2 %v643_v53 }
 0x285   :  { %1195 = vmatpush.msrb.mxu2 %v642_v1 }
 0x287   :  { %v979_v7 = vpop.f32.mrf.mxu2  ;;  %1196 = vmatpush.msrb.mxu2 %v641_v4  ;;  %v896_v47 = vpop.f32.mrf.mxu1  ;;  %v702_v4 = vld [vmem:[%s6277_s11 + $0x1c8] sm:$0xff] }
 0x288   :  { %v980_v13 = vadd.f32 %v979_v7, %v884_v32  ;;  %v705_v7 = vld [vmem:[%s6277_s11 + $0x1e0] sm:$0xff] }
 0x289   :  { %1197 = vmatpush.msrb.mxu2 %v640_v8 }
 0x28a   :  { %v1286_v2 = vmax.f32 %v4665_v21, %v980_v13 }
 0x28b   :  { %1198 = vmatpush.msrb.mxu2 %v639_v52 }
 0x28c   :  { %v1338_v36 = vrot.slane %v1286_v2, 2  ;;  %v1339_v27 = vrot.slane %v1286_v2, 4  ;;  %v1340_v33 = vrot.slane %v1286_v2, 6  ;;  %1412 = vst [vmem:[#allocation1] ss:$4 sm:$0xff] %v1286_v2 }
 0x28d   :  { %1199 = vmatpush.msrb.mxu2 %v638_v25 }
 0x28e   :  { %1414 = vst [vmem:[#allocation1 + $0x1] ss:$4 sm:$0xff] %v1338_v36 }
 0x28f   :  { %1416 = vst [vmem:[#allocation1 + $0x2] ss:$4 sm:$0xff] %v1339_v27  ;;  %v982_v32 = vpop.f32.mrf.mxu2  ;;  %1200 = vmatpush.msrb.mxu2 %v4752_v59  ;;  %v899_v13 = vpop.f32.mrf.mxu1 }
 0x290   :  { %1418 = vst [vmem:[#allocation1 + $0x3] ss:$4 sm:$0xff] %v1340_v33  ;;  %v983_v55 = vadd.f32 %v982_v32, %v887_v3  ;;  %v704_v32 = vld [vmem:[%s6277_s11 + $0x1d8] sm:$0xff] }
 0x291   :  { %1201 = vmatpush.msrb.mxu2 %v4735_v23 }
 0x292   :  { %v1287_v21 = vmax.f32 %v4688_v17, %v983_v55  ;;  %v947_v17 = vadd.f32 %v4700_v37, %v4622_v16  ;;  %v950_v37 = vadd.f32 %v4714_v45, %v4642_v24  ;;  %v707_v55 = vld [vmem:[%s6277_s11 + $0x1f0] sm:$0xff] }
 0x293   :  { %1202 = vmatpush.msrb.mxu2 %v4716_v46  ;;  %v698_v46 = vld [vmem:[%s6277_s11 + $0x1a8] sm:$0xff] }
 0x294   :  { %v1341_v49 = vrot.slane %v1287_v21, 2  ;;  %1420 = vst [vmem:[#allocation1 + $0x20] ss:$4 sm:$0xff] %v1287_v21  ;;  %v1342_v56 = vrot.slane %v1287_v21, 4  ;;  %v1343_v34 = vrot.slane %v1287_v21, 6 }
 0x295   :  { %1203 = vmatpush.msrb.mxu2 %v4702_v38 }
 0x297   :  { %v1421_v59 = vld.sshfl [vmem:[#allocation1] sm:$0xff pattern:$0x73625140]  ;;  %v985_v30 = vpop.f32.mrf.mxu2  ;;  %1204 = vmatpush.msrb.mxu2 %v4685_v14 }
 0x298   :  { %1423 = vst [vmem:[#allocation1] ss:$4 sm:$0xff] %v1341_v49  ;;  %v986_v23 = vadd.f32 %v985_v30, %v890_v5  ;;  %v956_v49 = vadd.f32 %v4748_v57, %v4696_v29  ;;  %v706_v29 = vld [vmem:[%s6277_s11 + $0x1e8] sm:$0xff] }
 0x299   :  { %1424 = vst [vmem:[#allocation1 + $0x1] ss:$4 sm:$0xff] %v1342_v56  ;;  %1205 = vmatpush.msrb.mxu2 %v4662_v61  ;;  %v703_v61 = vld [vmem:[%s6277_s11 + $0x1d0] sm:$0xff]  ;;  %v902_v56 = vpop.f32.mrf.mxu1 }
 0x29a   :  { %1425 = vst [vmem:[#allocation1 + $0x2] ss:$4 sm:$0xff] %v1343_v34  ;;  %v1288_v38 = vmax.f32 %v947_v17, %v986_v23  ;;  %1121 = vmatmul.f32.gmra.mxu3 %v703_v61 }
 0x29b   :  { %v1422_v41 = vld.sshfl [vmem:[#allocation1 + $0x20] sm:$0xff pattern:$0x73625140]  ;;  %1206 = vmatpush.msrb.mxu2 %v4644_v44  ;;  %1597 = vst.msk [vmem:[#allocation2] sm:$0xff] %vm1596_vm3, %v1421_v59  ;;  %v700_v44 = vld [vmem:[%s6277_s11 + $0x1b8] sm:$0xff] }
 0x29c   :  { %v1344_v16 = vrot.slane %v1288_v38, 2  ;;  %1426 = vst [vmem:[#allocation1 + $0x3] ss:$4 sm:$0xff] %v1288_v38  ;;  %3922 = vmatmul.msk.f32.vlgmr.msrb.gmra.mxu2 %vm749_vm2, %v698_v46  ;;  %v1345_v42 = vrot.slane %v1288_v38, 4  ;;  %v1346_v51 = vrot.slane %v1288_v38, 6  ;;  %v709_v46 = vld [vmem:[%s6277_s11 + $0x200] sm:$0xff] }
 0x29d   :  { %1599 = vst.msk [vmem:[#allocation2 + $0x8] sm:$0x3] %vm1598_vm4, %v1422_v41 }
 0x29e   :  { %1427 = vst [vmem:[#allocation1 + $0x20] ss:$4 sm:$0xff] %v1344_v16  ;;  %v959_v16 = vadd.f32 %v4763_v62, %v4712_v28  ;;  %v708_v28 = vld [vmem:[%s6277_s11 + $0x1f8] sm:$0xff] }
 0x29f   :  { %v988_v14 = vpop.f32.mrf.mxu2 }
 0x2a0   :  { %v989_v26 = vadd.f32 %v988_v14, %v893_v40 }
 0x2a2   :  { %v1289_v43 = vmax.f32 %v950_v37, %v989_v26  ;;  %v1638_v31 = vld [vmem:[#allocation2] sm:$0xff]  ;;  %1124 = vmatmul.f32.gmra.mxu3 %v705_v7 }
 0x2a3   :  { %v1428_v18 = vld.sshfl [vmem:[#allocation1] sm:$0xff pattern:$0x73625140]  ;;  %1654 = vst.msk [vmem:[#allocation3] sm:$0xff] %vm1596_vm3, %v1638_v31 }
 0x2a4   :  { %1430 = vst [vmem:[#allocation1] ss:$4 sm:$0xff] %v1345_v42  ;;  %v1347_v53 = vrot.slane %v1289_v43, 2  ;;  %v1348_v11 = vrot.slane %v1289_v43, 4  ;;  %3923 = vmatmul.msk.f32.gmra.mxu2 %vm749_vm2, %v700_v44  ;;  %v1670_v1 = vld [vmem:[#allocation2 + $0x1] sm:$0xff]  ;;  %v1349_v52 = vrot.slane %v1289_v43, 6  ;;  %v905_v44 = vpop.f32.mrf.mxu1 }
 0x2a5   :  { %v1429_v24 = vld.sshfl [vmem:[#allocation1 + $0x20] sm:$0xff pattern:$0x73625140]  ;;  %1431 = vst [vmem:[#allocation1 + $0x1] ss:$4 sm:$0xff] %v1346_v51  ;;  %1702 = vrot.lane.b32.xlu0 %v1670_v1, %s4052_s28  ;;  %v1767_v9 = vld [vmem:[#allocation2 + $0x2] sm:$0xff] }
 0x2a6   :  { %1432 = vst [vmem:[#allocation1 + $0x2] ss:$4 sm:$0xff] %v1289_v43 }
 0x2a7   :  { %1433 = vst [vmem:[#allocation1 + $0x3] ss:$4 sm:$0xff] %v1347_v53  ;;  %v991_v45 = vpop.f32.mrf.mxu2  ;;  %v711_v53 = vld [vmem:[%s6277_s11 + $0x210] sm:$0xff] }
 0x2a8   :  { %1434 = vst [vmem:[#allocation1 + $0x20] ss:$4 sm:$0xff] %v1348_v11  ;;  %v992_v3 = vadd.f32 %v991_v45, %v896_v47  ;;  %v962_v47 = vadd.f32 %v4771_v6, %v4729_v50 }
 0x2a9   :  { %1600 = vst.msk [vmem:[#allocation2 + $0x10] sm:$0xff] %vm1596_vm3, %v1428_v18 }
 0x2aa   :  { %1601 = vst.msk [vmem:[#allocation2 + $0x18] sm:$0x3] %vm1598_vm4, %v1429_v24  ;;  %v1290_v8 = vmax.f32 %v953_v58, %v992_v3  ;;  %1127 = vmatmul.f32.gmra.mxu3 %v707_v55  ;;  %v710_v3 = vld [vmem:[%s6277_s11 + $0x208] sm:$0xff] }
 0x2ac   :  { %3924 = vmatmul.msk.f32.gmra.mxu2 %vm749_vm2, %v702_v4  ;;  %v1350_v2 = vrot.slane %v1290_v8, 2  ;;  %v1351_v36 = vrot.slane %v1290_v8, 4  ;;  %v1352_v33 = vrot.slane %v1290_v8, 6  ;;  %v908_v7 = vpop.f32.mrf.mxu1 }
 0x2ad   :  { %1799 = vrot.lane.b32.xlu0 %v1767_v9, %s4053_s16 }
 0x2ae   :  { %v1435_v0 = vld.sshfl [vmem:[#allocation1] sm:$0xff pattern:$0x73625140] }
 0x2af   :  { %v1436_v48 = vld.sshfl [vmem:[#allocation1 + $0x20] sm:$0xff pattern:$0x73625140]  ;;  %1437 = vst [vmem:[#allocation1] ss:$4 sm:$0xff] %v1349_v52  ;;  %v994_v25 = vpop.f32.mrf.mxu2 }
 0x2b0   :  { %1602 = vst.msk [vmem:[#allocation2 + $0x20] sm:$0xff] %vm1596_vm3, %v1435_v0  ;;  %v1865_v27 = vld [vmem:[#allocation2 + $0x10] sm:$0xff]  ;;  %v995_v21 = vadd.f32 %v994_v25, %v899_v13  ;;  %v965_v0 = vadd.f32 %v4779_v60, %v4754_v15 }
 0x2b1   :  { %1603 = vst.msk [vmem:[#allocation2 + $0x28] sm:$0x3] %vm1598_vm4, %v1436_v48  ;;  %1897 = vrot.lane.b32.xlu1 %v1865_v27, %s4054_s0  ;;  %v1768_v5 = vld [vmem:[#allocation2 + $0x12] sm:$0xff] }
 0x2b2   :  { %1438 = vst [vmem:[#allocation1 + $0x1] ss:$4 sm:$0xff] %v1290_v8  ;;  %1801 = vrot.lane.b32.xlu2 %v1768_v5, %s4053_s16  ;;  %v1671_v20 = vld [vmem:[#allocation2 + $0x11] sm:$0xff]  ;;  %v1291_v34 = vmax.f32 %v956_v49, %v995_v21  ;;  %1130 = vmatmul.f32.gmra.mxu3 %v709_v46 }
 0x2b3   :  { %1439 = vst [vmem:[#allocation1 + $0x2] ss:$4 sm:$0xff] %v1350_v2  ;;  %v712_v48 = vld [vmem:[%s6277_s11 + $0x218] sm:$0xff]  ;;  %v713_v2 = vld [vmem:[%s6277_s11 + $0x220] sm:$0xff] }
 0x2b4   :  { %1440 = vst [vmem:[#allocation1 + $0x3] ss:$4 sm:$0xff] %v1351_v36  ;;  %3925 = vmatmul.msk.f32.gmra.mxu2 %vm749_vm2, %v704_v32  ;;  %v1353_v41 = vrot.slane %v1291_v34, 2  ;;  %v1354_v14 = vrot.slane %v1291_v34, 4  ;;  %v1355_v37 = vrot.slane %v1291_v34, 6  ;;  %v911_v32 = vpop.f32.mrf.mxu1 }
 0x2b5   :  { %1441 = vst [vmem:[#allocation1 + $0x20] ss:$4 sm:$0xff] %v1352_v33 }
 0x2b6   :  { %1655 = vst.msk [vmem:[#allocation3 + $0x18] sm:$0xff] %vm1596_vm3, %v1865_v27 }
 0x2b7   :  { %v1866_v59 = vld [vmem:[#allocation2 + $0x20] sm:$0xff]  ;;  %v997_v30 = vpop.f32.mrf.mxu2  ;;  %1978 = vst.msk [vmem:[#allocation3 + $0x8] sm:$0xff] %vm1596_vm3, %v1671_v20 }
 0x2b8   :  { %v1672_v17 = vld [vmem:[#allocation2 + $0x21] sm:$0xff]  ;;  %1656 = vst.msk [vmem:[#allocation3 + $0x30] sm:$0xff] %vm1596_vm3, %v1866_v59  ;;  %v998_v40 = vadd.f32 %v997_v30, %v902_v56  ;;  %v968_v30 = vadd.f32 %v4787_v12, %v4768_v39  ;;  %v716_v12 = vld [vmem:[%s6277_s11 + $0x238] sm:$0xff] }
 0x2b9   :  { %v4873_v23 = vld [vmem:[#allocation2 + $0x22] sm:$0xff]  ;;  %1704 = vrot.lane.b32.xlu1 %v1671_v20, %s4052_s28  ;;  %1706 = vrot.lane.b32.xlu0 %v1672_v17, %s4052_s28 }
 0x2ba   :  { %v4880_v57 = vld [vmem:[#allocation2 + $0x21] sm:$0xff]  ;;  %2299 = vst.msk [vmem:[#allocation3 + $0x10] sm:$0xff] %vm1596_vm3, %v4873_v23  ;;  %1899 = vrot.lane.b32.xlu2 %v1866_v59, %s4054_s0  ;;  %v1292_v26 = vmax.f32 %v959_v16, %v998_v40  ;;  %1133 = vmatmul.f32.gmra.mxu3 %v711_v53 }
 0x2bb   :  { %1979 = vst.msk [vmem:[#allocation3 + $0x20] sm:$0xff] %vm1596_vm3, %v4880_v57  ;;  %v1442_v38 = vld.sshfl [vmem:[#allocation1] sm:$0xff pattern:$0x73625140]  ;;  %v1769_v6 = vld [vmem:[#allocation2 + $0x22] sm:$0xff] }
 0x2bc   :  { %v1443_v61 = vld.sshfl [vmem:[#allocation1 + $0x20] sm:$0xff pattern:$0x73625140]  ;;  %1604 = vst.msk [vmem:[#allocation2 + $0x30] sm:$0xff] %vm1596_vm3, %v1442_v38  ;;  %3926 = vmatmul.msk.f32.gmra.mxu2 %vm749_vm2, %v706_v29  ;;  %v1356_v18 = vrot.slane %v1292_v26, 2  ;;  %v1357_v11 = vrot.slane %v1292_v26, 4  ;;  %v914_v38 = vpop.f32.mrf.mxu1 }
 0x2bd   :  { %1605 = vst.msk [vmem:[#allocation2 + $0x38] sm:$0x3] %vm1598_vm4, %v1443_v61  ;;  %v1358_v50 = vrot.slane %v1292_v26, 6  ;;  %v714_v56 = vld [vmem:[%s6277_s11 + $0x228] sm:$0xff]  ;;  %v715_v17 = vld [vmem:[%s6277_s11 + $0x230] sm:$0xff] }
 0x2be   :  { %1444 = vst [vmem:[#allocation1] ss:$4 sm:$0xff] %v1291_v34 }
 0x2bf   :  { %1445 = vst [vmem:[#allocation1 + $0x1] ss:$4 sm:$0xff] %v1353_v41  ;;  %v1000_v42 = vpop.f32.mrf.mxu2 }
 0x2c0   :  { %1446 = vst [vmem:[#allocation1 + $0x2] ss:$4 sm:$0xff] %v1354_v14  ;;  %v1001_v43 = vadd.f32 %v1000_v42, %v905_v44 }
 0x2c1   :  { %1447 = vst [vmem:[#allocation1 + $0x3] ss:$4 sm:$0xff] %v1355_v37  ;;  %2026 = vrot.lane.b32.xlu1 %v1768_v5, %s4052_s28  ;;  %2123 = vrot.lane.b32.xlu0 %v1866_v59, %s4053_s16 }
 0x2c2   :  { %1448 = vst [vmem:[#allocation1 + $0x20] ss:$4 sm:$0xff] %v1292_v26  ;;  %v1293_v1 = vmax.f32 %v962_v47, %v1001_v43  ;;  %1136 = vmatmul.f32.gmra.mxu3 %v713_v2  ;;  %v971_v47 = vadd.f32 %v4789_v63, %v4777_v54  ;;  %v2378_v63 = vld [vmem:[%s6269_s3 + $0x78] sm:$0xff] }
 0x2c3   :  { %v1867_v62 = vld [vmem:[#allocation2 + $0x30] sm:$0xff]  ;;  %2451 = vmatpush.msrb.mxu1 %v2378_v63 }
 0x2c4   :  { %1901 = vrot.lane.b32.xlu2 %v1867_v62, %s4054_s0  ;;  %3927 = vmatmul.msk.f32.gmra.mxu2 %vm749_vm2, %v708_v28  ;;  %1657 = vst.msk [vmem:[#allocation3 + $0x48] sm:$0xff] %vm1596_vm3, %v1867_v62  ;;  %v4905_v31 = vld [vmem:[#allocation2 + $0x32] sm:$0xff]  ;;  %v1359_v4 = vrot.slane %v1293_v1, 2  ;;  %v1360_v36 = vrot.slane %v1293_v1, 4  ;;  %v1361_v60 = vrot.slane %v1293_v1, 6  ;;  %v917_v53 = vpop.f32.mrf.mxu1 }
 0x2c5   :  { %v4907_v51 = vld [vmem:[#allocation2 + $0x31] sm:$0xff]  ;;  %2300 = vst.msk [vmem:[#allocation3 + $0x28] sm:$0xff] %vm1596_vm3, %v4905_v31 }
 0x2c6   :  { %1980 = vst.msk [vmem:[#allocation3 + $0x38] sm:$0xff] %vm1596_vm3, %v4907_v51  ;;  %v1673_v45 = vld [vmem:[#allocation2 + $0x31] sm:$0xff] }
 0x2c7   :  { %v1003_v8 = vpop.f32.mrf.mxu2  ;;  %v1770_v52 = vld [vmem:[#allocation2 + $0x32] sm:$0xff] }
 0x2c8   :  { %v1449_v24 = vld.sshfl [vmem:[#allocation1] sm:$0xff pattern:$0x73625140]  ;;  %v1004_v9 = vadd.f32 %v1003_v8, %v908_v7  ;;  %v974_v7 = vadd.f32 %v4793_v22, %v4785_v10 }
 0x2c9   :  { %1606 = vst.msk [vmem:[#allocation2 + $0x40] sm:$0xff] %vm1596_vm3, %v1449_v24  ;;  %1803 = vrot.lane.b32.xlu1 %v1769_v6, %s4053_s16  ;;  %1708 = vrot.lane.b32.xlu0 %v1673_v45, %s4052_s28  ;;  %v1450_v58 = vld.sshfl [vmem:[#allocation1 + $0x20] sm:$0xff pattern:$0x73625140] }
 0x2ca   :  { %1451 = vst [vmem:[#allocation1] ss:$4 sm:$0xff] %v1356_v18  ;;  %v1294_v25 = vmax.f32 %v965_v0, %v1004_v9  ;;  %1139 = vmatmul.f32.gmra.mxu3 %v715_v17  ;;  %v717_v62 = vld [vmem:[%s6277_s11 + $0x240] sm:$0xff]  ;;  %v718_v18 = vld [vmem:[%s6277_s11 + $0x248] sm:$0xff]  ;;  %v720_v0 = vld [vmem:[%s6277_s11 + $0x258] sm:$0xff] }
 0x2cb   :  { %1452 = vst [vmem:[#allocation1 + $0x1] ss:$4 sm:$0xff] %v1357_v11  ;;  %v2375_v10 = vld [vmem:[%s6269_s3 + $0x60] sm:$0xff] }
 0x2cc   :  { %1453 = vst [vmem:[#allocation1 + $0x2] ss:$4 sm:$0xff] %v1358_v50  ;;  %3928 = vmatmul.msk.f32.gmra.mxu2 %vm749_vm2, %v710_v3  ;;  %v1362_v21 = vrot.slane %v1294_v25, 2  ;;  %v1363_v20 = vrot.slane %v1294_v25, 4  ;;  %v1364_v39 = vrot.slane %v1294_v25, 6  ;;  %v719_v50 = vld [vmem:[%s6277_s11 + $0x250] sm:$0xff]  ;;  %v920_v2 = vpop.f32.mrf.mxu1 }
 0x2cd   :  { %1607 = vst.msk [vmem:[#allocation2 + $0x48] sm:$0x3] %vm1598_vm4, %v1450_v58  ;;  %v2377_v3 = vld [vmem:[%s6269_s3 + $0x70] sm:$0xff]  ;;  %v721_v22 = vld [vmem:[%s6277_s11 + $0x260] sm:$0xff] }
 0x2ce   :  { %1454 = vst [vmem:[#allocation1 + $0x3] ss:$4 sm:$0xff] %v1293_v1  ;;  %2452 = vmatpush.msrb.mxu1 %v2377_v3 }
 0x2cf   :  { %1455 = vst [vmem:[#allocation1 + $0x20] ss:$4 sm:$0xff] %v1359_v4  ;;  %v1006_v55 = vpop.f32.mrf.mxu2 }
 0x2d0   :  { %v1868_v13 = vld [vmem:[#allocation2 + $0x40] sm:$0xff]  ;;  %v1007_v59 = vadd.f32 %v1006_v55, %v911_v32  ;;  %v2373_v32 = vld [vmem:[%s6269_s3 + $0x50] sm:$0xff] }
 0x2d1   :  { %1903 = vrot.lane.b32.xlu2 %v1868_v13, %s4054_s0  ;;  %1805 = vrot.lane.b32.xlu1 %v1770_v52, %s4053_s16  ;;  %1658 = vst.msk [vmem:[#allocation3 + $0x60] sm:$0xff] %vm1596_vm3, %v1868_v13  ;;  %v2376_v13 = vld [vmem:[%s6269_s3 + $0x68] sm:$0xff] }
 0x2d2   :  { %v1295_v29 = vmax.f32 %v968_v30, %v1007_v59  ;;  %1142 = vmatmul.f32.gmra.mxu3 %v717_v62  ;;  %2453 = vmatpush.msrb.mxu1 %v2376_v13  ;;  %v5077_v62 = vpop.f32.mrf.mxu3 }
 0x2d4   :  { %v1674_v27 = vld [vmem:[#allocation2 + $0x41] sm:$0xff]  ;;  %3929 = vmatmul.msk.f32.gmra.mxu2 %vm749_vm2, %v712_v48  ;;  %v1365_v44 = vrot.slane %v1295_v29, 2  ;;  %v1366_v42 = vrot.slane %v1295_v29, 4  ;;  %v1367_v28 = vrot.slane %v1295_v29, 6  ;;  %2454 = vmatpush.msrb.mxu1 %v2375_v10 }
 0x2d5   :  { %v4936_v15 = vld [vmem:[#allocation2 + $0x42] sm:$0xff]  ;;  %v1456_v33 = vld.sshfl [vmem:[#allocation1] sm:$0xff pattern:$0x73625140]  ;;  %1710 = vrot.lane.b32.xlu0 %v1674_v27, %s4052_s28 }
 0x2d6   :  { %2301 = vst.msk [vmem:[#allocation3 + $0x40] sm:$0xff] %vm1596_vm3, %v4936_v15  ;;  %v1457_v5 = vld.sshfl [vmem:[#allocation1 + $0x20] sm:$0xff pattern:$0x73625140]  ;;  %v1771_v49 = vld [vmem:[#allocation2 + $0x42] sm:$0xff] }
 0x2d7   :  { %1458 = vst [vmem:[#allocation1] ss:$4 sm:$0xff] %v1360_v36  ;;  %v4947_v34 = vld [vmem:[#allocation2 + $0x41] sm:$0xff]  ;;  %v1009_v41 = vpop.f32.mrf.mxu2  ;;  %v2374_v36 = vld [vmem:[%s6269_s3 + $0x58] sm:$0xff] }
 0x2d8   :  { %1459 = vst [vmem:[#allocation1 + $0x1] ss:$4 sm:$0xff] %v1361_v60  ;;  %v1010_v43 = vadd.f32 %v1009_v41, %v914_v38  ;;  %2455 = vmatpush.msrb.mxu1 %v2374_v36  ;;  %v734_v36 = vld [vmem:[%s6277_s11 + $0x2c8] sm:$0xff] }
 0x2d9   :  { %1608 = vst.msk [vmem:[#allocation2 + $0x50] sm:$0xff] %vm1596_vm3, %v1456_v33  ;;  %1807 = vrot.lane.b32.xlu1 %v1771_v49, %s4053_s16  ;;  %v977_v49 = vadd.f32 %v4801_v35, %v4791_v19 }
 0x2da   :  { %1609 = vst.msk [vmem:[#allocation2 + $0x58] sm:$0x3] %vm1598_vm4, %v1457_v5  ;;  %v1296_v1 = vmax.f32 %v971_v47, %v1010_v43  ;;  %1145 = vmatmul.f32.gmra.mxu3 %v719_v50  ;;  %2456 = vmatpush.msrb.mxu1 %v2373_v32  ;;  %v2365_v50 = vld [vmem:[%s6269_s3 + $0x10] sm:$0xff] }
 0x2db   :  { %1460 = vst [vmem:[#allocation1 + $0x2] ss:$4 sm:$0xff] %v1294_v25 }
 0x2dc   :  { %1461 = vst [vmem:[#allocation1 + $0x3] ss:$4 sm:$0xff] %v1362_v21  ;;  %3930 = vmatmul.msk.f32.gmra.mxu2 %vm749_vm2, %v714_v56  ;;  %v1368_v4 = vrot.slane %v1296_v1, 2  ;;  %v1369_v9 = vrot.slane %v1296_v1, 4  ;;  %v1370_v52 = vrot.slane %v1296_v1, 6  ;;  %v2372_v56 = vld [vmem:[%s6269_s3 + $0x48] sm:$0xff] }
 0x2dd   :  { %1462 = vst [vmem:[#allocation1 + $0x20] ss:$4 sm:$0xff] %v1363_v20  ;;  %v722_v20 = vld [vmem:[%s6277_s11 + $0x268] sm:$0xff]  ;;  %2457 = vmatpush.msrb.mxu1 %v2372_v56  ;;  %v736_v56 = vld [vmem:[%s6277_s11 + $0x2d8] sm:$0xff] }
 0x2de   :  { %1981 = vst.msk [vmem:[#allocation3 + $0x50] sm:$0xff] %vm1596_vm3, %v4947_v34 }
 0x2df   :  { %v1012_v11 = vpop.f32.mrf.mxu2 }
 0x2e0   :  { %v1869_v40 = vld [vmem:[#allocation2 + $0x50] sm:$0xff]  ;;  %v1013_v54 = vadd.f32 %v1012_v11, %v917_v53 }
 0x2e1   :  { %1905 = vrot.lane.b32.xlu2 %v1869_v40, %s4054_s0  ;;  %v1675_v46 = vld [vmem:[#allocation2 + $0x51] sm:$0xff]  ;;  %1659 = vst.msk [vmem:[#allocation3 + $0x78] sm:$0xff] %vm1596_vm3, %v1869_v40 }
 0x2e2   :  { %v1772_v16 = vld [vmem:[#allocation2 + $0x52] sm:$0xff]  ;;  %1712 = vrot.lane.b32.xlu0 %v1675_v46, %s4052_s28  ;;  %v1297_v48 = vmax.f32 %v974_v7, %v1013_v54  ;;  %1148 = vmatmul.f32.gmra.mxu3 %v721_v22  ;;  %v730_v7 = vld [vmem:[%s6277_s11 + $0x2a8] sm:$0xff] }
 0x2e3   :  { %v4959_v61 = vld [vmem:[#allocation2 + $0x52] sm:$0xff]  ;;  %1809 = vrot.lane.b32.xlu1 %v1772_v16, %s4053_s16 }
 0x2e4   :  { %v4966_v14 = vld [vmem:[#allocation2 + $0x51] sm:$0xff]  ;;  %2302 = vst.msk [vmem:[#allocation3 + $0x58] sm:$0xff] %vm1596_vm3, %v4959_v61  ;;  %3931 = vmatmul.msk.f32.gmra.mxu2 %vm749_vm2, %v716_v12  ;;  %v1371_v17 = vrot.slane %v1297_v48, 2  ;;  %v1372_v19 = vrot.slane %v1297_v48, 4  ;;  %v1373_v38 = vrot.slane %v1297_v48, 6  ;;  %v2369_v12 = vld [vmem:[%s6269_s3 + $0x30] sm:$0xff] }
 0x2e5   :  { %v1463_v37 = vld.sshfl [vmem:[#allocation1] sm:$0xff pattern:$0x73625140]  ;;  %1982 = vst.msk [vmem:[#allocation3 + $0x68] sm:$0xff] %vm1596_vm3, %v4966_v14  ;;  %v2370_v16 = vld [vmem:[%s6269_s3 + $0x38] sm:$0xff] }
 0x2e6   :  { %v1464_v26 = vld.sshfl [vmem:[#allocation1 + $0x20] sm:$0xff pattern:$0x73625140]  ;;  %1465 = vst [vmem:[#allocation1] ss:$4 sm:$0xff] %v1364_v39  ;;  %v728_v54 = vld [vmem:[%s6277_s11 + $0x298] sm:$0xff] }
 0x2e7   :  { %1610 = vst.msk [vmem:[#allocation2 + $0x60] sm:$0xff] %vm1596_vm3, %v1463_v37  ;;  %v1015_v25 = vpop.f32.mrf.mxu2  ;;  %v2371_v40 = vld [vmem:[%s6269_s3 + $0x40] sm:$0xff]  ;;  %v724_v37 = vld [vmem:[%s6277_s11 + $0x278] sm:$0xff]  ;;  %v5111_v63 = vpop.f32.mrf.mxu3 }
 0x2e8   :  { %1611 = vst.msk [vmem:[#allocation2 + $0x68] sm:$0x3] %vm1598_vm4, %v1464_v26  ;;  %v1016_v5 = vadd.f32 %v1015_v25, %v920_v2  ;;  %2458 = vmatpush.msrb.mxu1 %v2371_v40  ;;  %v2368_v26 = vld [vmem:[%s6269_s3 + $0x28] sm:$0xff]  ;;  %v733_v22 = vld [vmem:[%s6277_s11 + $0x2c0] sm:$0xff] }
 0x2e9   :  { %1466 = vst [vmem:[#allocation1 + $0x1] ss:$4 sm:$0xff] %v1295_v29  ;;  %v723_v29 = vld [vmem:[%s6277_s11 + $0x270] sm:$0xff]  ;;  %v738_v40 = vld [vmem:[%s6277_s11 + $0x2e8] sm:$0xff] }
 0x2ea   :  { %1467 = vst [vmem:[#allocation1 + $0x2] ss:$4 sm:$0xff] %v1365_v44  ;;  %v1298_v35 = vmax.f32 %v977_v49, %v1016_v5  ;;  %1151 = vmatmul.f32.gmra.mxu3 %v723_v29  ;;  %2459 = vmatpush.msrb.mxu1 %v2370_v16  ;;  %v725_v44 = vld [vmem:[%s6277_s11 + $0x280] sm:$0xff]  ;;  %v735_v5 = vld [vmem:[%s6277_s11 + $0x2d0] sm:$0xff] }
 0x2eb   :  { %1468 = vst [vmem:[#allocation1 + $0x3] ss:$4 sm:$0xff] %v1366_v42  ;;  %v739_v16 = vld [vmem:[%s6277_s11 + $0x2f0] sm:$0xff] }
 0x2ec   :  { %1469 = vst [vmem:[#allocation1 + $0x20] ss:$4 sm:$0xff] %v1367_v28  ;;  %3932 = vmatmul.msk.f32.gmra.mxu2 %vm749_vm2, %v718_v18  ;;  %v1374_v39 = vrot.slane %v1298_v35, 2  ;;  %2460 = vmatpush.msrb.mxu1 %v2369_v12  ;;  %v2367_v28 = vld [vmem:[%s6269_s3 + $0x20] sm:$0xff]  ;;  %v726_v18 = vld [vmem:[%s6277_s11 + $0x288] sm:$0xff] }
 0x2ee   :  { %v1870_v24 = vld [vmem:[#allocation2 + $0x60] sm:$0xff]  ;;  %2461 = vmatpush.msrb.mxu1 %v2368_v26 }
 0x2ef   :  { %1907 = vrot.lane.b32.xlu2 %v1870_v24, %s4054_s0  ;;  %v1676_v6 = vld [vmem:[#allocation2 + $0x61] sm:$0xff]  ;;  %1660 = vst.msk [vmem:[#allocation3 + $0x90] sm:$0xff] %vm1596_vm3, %v1870_v24  ;;  %v2366_v24 = vld [vmem:[%s6269_s3 + $0x18] sm:$0xff] }
 0x2f0   :  { %v1773_v45 = vld [vmem:[#allocation2 + $0x62] sm:$0xff]  ;;  %1714 = vrot.lane.b32.xlu0 %v1676_v6, %s4052_s28  ;;  %2462 = vmatpush.msrb.mxu1 %v2367_v28 }
 0x2f1   :  { %1811 = vrot.lane.b32.xlu1 %v1773_v45, %s4053_s16  ;;  %v5017_v27 = vld [vmem:[#allocation2 + $0x61] sm:$0xff]  ;;  %v2363_v45 = vld [vmem:[%s6269_s3] sm:$0xff] }
 0x2f2   :  { %v1470_v58 = vld.sshfl [vmem:[#allocation1] sm:$0xff pattern:$0x73625140]  ;;  %v2287_v60 = vld [vmem:[#allocation2 + $0x62] sm:$0xff]  ;;  %1983 = vst.msk [vmem:[#allocation3 + $0x80] sm:$0xff] %vm1596_vm3, %v5017_v27  ;;  %1154 = vmatmul.f32.gmra.mxu3 %v725_v44  ;;  %2463 = vmatpush.msrb.mxu1 %v2366_v24 }
 0x2f3   :  { %v1471_v8 = vld.sshfl [vmem:[#allocation1 + $0x20] sm:$0xff pattern:$0x73625140]  ;;  %1612 = vst.msk [vmem:[#allocation2 + $0x70] sm:$0xff] %vm1596_vm3, %v1470_v58  ;;  %v2364_v6 = vld [vmem:[%s6269_s3 + $0x8] sm:$0xff] }
 0x2f4   :  { %1613 = vst.msk [vmem:[#allocation2 + $0x78] sm:$0x3] %vm1598_vm4, %v1471_v8  ;;  %3933 = vmatmul.msk.f32.gmra.mxu2 %vm749_vm2, %v720_v0  ;;  %2464 = vmatpush.msrb.mxu1 %v2365_v50  ;;  %v729_v58 = vld [vmem:[%s6277_s11 + $0x2a0] sm:$0xff]  ;;  %v731_v8 = vld [vmem:[%s6277_s11 + $0x2b0] sm:$0xff]  ;;  %v732_v0 = vld [vmem:[%s6277_s11 + $0x2b8] sm:$0xff] }
 0x2f5   :  { %1472 = vst [vmem:[#allocation1] ss:$4 sm:$0xff] %v1296_v1  ;;  %v727_v1 = vld [vmem:[%s6277_s11 + $0x290] sm:$0xff]  ;;  %v741_v44 = vld [vmem:[%s6277_s11 + $0x300] sm:$0xff]  ;;  %v742_v24 = vld [vmem:[%s6277_s11 + $0x308] sm:$0xff] }
 0x2f6   :  { %1473 = vst [vmem:[#allocation1 + $0x1] ss:$4 sm:$0xff] %v1368_v4  ;;  %2465 = vmatpush.msrb.mxu1 %v2364_v6  ;;  %v743_v6 = vld [vmem:[%s6277_s11 + $0x310] sm:$0xff] }
 0x2f7   :  { %1474 = vst [vmem:[#allocation1 + $0x2] ss:$4 sm:$0xff] %v1369_v9  ;;  %v5125_v9 = vpop.f32.mrf.mxu3 }
 0x2f8   :  { %1475 = vst [vmem:[#allocation1 + $0x3] ss:$4 sm:$0xff] %v1370_v52  ;;  %2466 = vmatpush.msrb.mxu1 %v2363_v45 }
 0x2f9   :  { %1476 = vst [vmem:[#allocation1 + $0x20] ss:$4 sm:$0xff] %v1297_v48 }
 0x2fa   :  { %v1871_v33 = vld [vmem:[#allocation2 + $0x70] sm:$0xff]  ;;  %2303 = vst.msk [vmem:[#allocation3 + $0x70] sm:$0xff] %vm1596_vm3, %v2287_v60  ;;  %1157 = vmatmul.f32.gmra.mxu3 %v727_v1 }
 0x2fb   :  { %1909 = vrot.lane.b32.xlu2 %v1871_v33, %s4054_s0  ;;  %v1677_v55 = vld [vmem:[#allocation2 + $0x71] sm:$0xff]  ;;  %1661 = vst.msk [vmem:[#allocation3 + $0xa8] sm:$0xff] %vm1596_vm3, %v1871_v33 }
 0x2fc   :  { %v5025_v21 = vld [vmem:[#allocation2 + $0x72] sm:$0xff]  ;;  %1716 = vrot.lane.b32.xlu0 %v1677_v55, %s4052_s28  ;;  %3934 = vmatmul.msk.f32.gmra.mxu2 %vm749_vm2, %v722_v20 }
 0x2fd   :  { %1813 = vrot.lane.b32.xlu1 %v5025_v21, %s4053_s16  ;;  %v5039_v59 = vld [vmem:[#allocation2 + $0x71] sm:$0xff] }
 0x2fe   :  { %v2288_v30 = vld [vmem:[#allocation2 + $0x72] sm:$0xff]  ;;  %1984 = vst.msk [vmem:[#allocation3 + $0x98] sm:$0xff] %vm1596_vm3, %v5039_v59 }
 0x2ff   :  { %2304 = vst.msk [vmem:[#allocation3 + $0x88] sm:$0xff] %vm1596_vm3, %v2288_v30  ;;  %v1477_v46 = vld.sshfl [vmem:[#allocation1] sm:$0xff pattern:$0x73625140] }
 0x300   :  { %1614 = vst.msk [vmem:[#allocation2 + $0x80] sm:$0xff] %vm1596_vm3, %v1477_v46  ;;  %v1478_v41 = vld.sshfl [vmem:[#allocation1 + $0x20] sm:$0xff pattern:$0x73625140] }
 0x301   :  { %1479 = vst [vmem:[#allocation1] ss:$4 sm:$0xff] %v1371_v17  ;;  %v737_v17 = vld [vmem:[%s6277_s11 + $0x2e0] sm:$0xff] }
 0x302   :  { %1480 = vst [vmem:[#allocation1 + $0x1] ss:$4 sm:$0xff] %v1372_v19  ;;  %1160 = vmatmul.f32.gmra.mxu3 %v729_v58 }
 0x303   :  { %1481 = vst [vmem:[#allocation1 + $0x2] ss:$4 sm:$0xff] %v1373_v38 }
 0x304   :  { %1615 = vst.msk [vmem:[#allocation2 + $0x88] sm:$0x3] %vm1598_vm4, %v1478_v41  ;;  %3935 = vmatmul.msk.f32.gmra.mxu2 %vm749_vm2, %v724_v37  ;;  %v740_v37 = vld [vmem:[%s6277_s11 + $0x2f8] sm:$0xff] }
 0x305   :  { %1482 = vst [vmem:[#allocation1 + $0x3] ss:$4 sm:$0xff] %v1298_v35 }
 0x306   :  { %1483 = vst [vmem:[#allocation1 + $0x20] ss:$4 sm:$0xff] %v1374_v39 }
 0x307   :  { %v5069_v42 = vld [vmem:[#allocation2 + $0x80] sm:$0xff] }
 0x308   :  { %1911 = vrot.lane.b32.xlu2 %v5069_v42, %s4054_s0 }
 0x30a   :  { %1163 = vmatmul.f32.gmra.mxu3 %v731_v8 }
 0x30b   :  { %v5079_v43 = vld [vmem:[#allocation2 + $0x81] sm:$0xff] }
 0x30c   :  { %v1484_v47 = vld.sshfl [vmem:[#allocation1] sm:$0xff pattern:$0x73625140]  ;;  %v5084_v53 = vld [vmem:[#allocation2 + $0x82] sm:$0xff]  ;;  %1985 = vst.msk [vmem:[#allocation3 + $0xb0] sm:$0xff] %vm1596_vm3, %v5079_v43  ;;  %3936 = vmatmul.msk.f32.gmra.mxu2 %vm749_vm2, %v726_v18  ;;  %v1802_v48 = vpop.permute.xlu2 %1801 }
 0x30d   :  { %v1485_v11 = vld.sshfl [vmem:[#allocation1 + $0x20] sm:$0xff pattern:$0x73625140]  ;;  %1616 = vst.msk [vmem:[#allocation2 + $0x90] sm:$0xff] %vm1596_vm3, %v1484_v47 }
 0x30e   :  { %1617 = vst.msk [vmem:[#allocation2 + $0x98] sm:$0x3] %vm1598_vm4, %v1485_v11 }
 0x30f   :  { %2305 = vst.msk [vmem:[#allocation3 + $0xa0] sm:$0xff] %vm1596_vm3, %v5084_v53 }
 0x312   :  { %1166 = vmatmul.f32.gmra.mxu3 %v733_v22 }
 0x314   :  { %3937 = vmatmul.msk.f32.gmra.mxu2 %vm749_vm2, %v728_v54  ;;  %v1900_v55 = vpop.permute.xlu2 %1899 }
 0x315   :  { %v2290_v3 = vld [vmem:[#allocation2 + $0x92] sm:$0xff] }
 0x316   :  { %2306 = vst.msk [vmem:[#allocation3 + $0xb8] sm:$0xff] %vm1596_vm3, %v2290_v3 }
 0x317   :  { %v1703_v4 = vpop.permute.xlu0 %1702 }
 0x318   :  { %1751 = vst.msk [vmem:[#allocation3] sm:$0xff] %vm1750_vm5, %v1703_v4  ;;  %v744_v4 = vld [vmem:[%s6277_s11 + $0x318] sm:$0xff] }
 0x31a   :  { %1169 = vmatmul.f32.gmra.mxu3 %v735_v5 }
 0x31c   :  { %3938 = vmatmul.msk.f32.gmra.mxu2 %vm749_vm2, %v730_v7 }
 0x31d   :  { %v5139_v2 = vpop.f32.mrf.mxu3 }
 0x31e   :  { %v1902_v38 = vpop.permute.xlu2 %1901 }
 0x31f   :  { %v1800_v13 = vpop.permute.xlu0 %1799  ;;  %v5128_v52 = vpop.f32.mrf.mxu2 }
 0x320   :  { %1848 = vst.msk [vmem:[#allocation3] sm:$0xff] %vm1847_vm6, %v1800_v13  ;;  %v745_v13 = vld [vmem:[%s6277_s11 + $0x320] sm:$0xff] }
 0x322   :  { %1172 = vmatmul.f32.gmra.mxu3 %v737_v17 }
 0x323   :  { %v1898_v10 = vpop.permute.xlu1 %1897 }
 0x324   :  { %1946 = vst.msk [vmem:[#allocation3] sm:$0xff] %vm1945_vm7, %v1898_v10  ;;  %3939 = vmatmul.msk.f32.gmra.mxu2 %vm749_vm2, %v732_v0 }
 0x325   :  { %v5156_v49 = vpop.f32.mrf.mxu3 }
 0x327   :  { %v5141_v25 = vpop.f32.mrf.mxu2 }
 0x32a   :  { %1175 = vmatmul.f32.gmra.mxu3 %v739_v16 }
 0x32b   :  { %v1705_v60 = vpop.permute.xlu1 %1704  ;;  %v2315_v33 = vld [vmem:[#allocation3] sm:$0xff]  ;;  %v1707_v32 = vpop.permute.xlu0 %1706 }
 0x32c   :  { %1752 = vst.msk [vmem:[#allocation3 + $0x18] sm:$0xff] %vm1750_vm5, %v1705_v60  ;;  %2467 = vmatmul.f32.vlgmr.msrb.gmra.mxu1 %v2315_v33  ;;  %3940 = vmatmul.msk.f32.gmra.mxu2 %vm749_vm2, %v734_v36  ;;  %v1904_v47 = vpop.permute.xlu2 %1903  ;;  %v746_v36 = vld [vmem:[%s6277_s11 + $0x328] sm:$0xff]  ;;  %v747_v60 = vld [vmem:[%s6277_s11 + $0x330] sm:$0xff] }
 0x32d   :  { %1849 = vst.msk [vmem:[#allocation3 + $0x18] sm:$0xff] %vm1847_vm6, %v1802_v48  ;;  %v5172_v46 = vpop.f32.mrf.mxu3 }
 0x32e   :  { %1947 = vst.msk [vmem:[#allocation3 + $0x18] sm:$0xff] %vm1945_vm7, %v1900_v55 }
 0x32f   :  { %1753 = vst.msk [vmem:[#allocation3 + $0x30] sm:$0xff] %vm1750_vm5, %v1707_v32  ;;  %v5154_v20 = vpop.f32.mrf.mxu2 }
 0x332   :  { %1178 = vmatmul.f32.gmra.mxu3 %v741_v44 }
 0x333   :  { %v2027_v30 = vpop.permute.xlu1 %2026  ;;  %v2124_v19 = vpop.permute.xlu0 %2123 }
 0x334   :  { %2074 = vst.msk [vmem:[#allocation3 + $0x8] sm:$0xff] %vm1750_vm5, %v2027_v30  ;;  %3941 = vmatmul.msk.f32.gmra.mxu2 %vm749_vm2, %v736_v56  ;;  %v748_v30 = vld [vmem:[%s6277_s11 + $0x338] sm:$0xff] }
 0x335   :  { %2171 = vst.msk [vmem:[#allocation3 + $0x8] sm:$0xff] %vm1847_vm6, %v2124_v19  ;;  %v2318_v35 = vld [vmem:[#allocation3 + $0x18] sm:$0xff]  ;;  %v5189_v28 = vpop.f32.mrf.mxu3 }
 0x336   :  { %2470 = vmatmul.f32.gmra.mxu1 %v2318_v35 }
 0x337   :  { %v5167_v29 = vpop.f32.mrf.mxu2 }
 0x33a   :  { %1181 = vmatmul.f32.gmra.mxu3 %v743_v6 }
 0x33b   :  { %v1804_v41 = vpop.permute.xlu1 %1803  ;;  %v1709_v39 = vpop.permute.xlu0 %1708 }
 0x33c   :  { %1850 = vst.msk [vmem:[#allocation3 + $0x30] sm:$0xff] %vm1847_vm6, %v1804_v41  ;;  %3942 = vmatmul.msk.f32.gmra.mxu2 %vm749_vm2, %v738_v40  ;;  %v1906_v45 = vpop.permute.xlu2 %1905 }
 0x33d   :  { %1948 = vst.msk [vmem:[#allocation3 + $0x30] sm:$0xff] %vm1945_vm7, %v1902_v38  ;;  %v5206_v3 = vpop.f32.mrf.mxu3 }
 0x33e   :  { %1754 = vst.msk [vmem:[#allocation3 + $0x48] sm:$0xff] %vm1750_vm5, %v1709_v39 }
 0x33f   :  { %v5181_v12 = vpop.f32.mrf.mxu2 }
 0x342   :  { %1184 = vmatmul.f32.gmra.mxu3 %v745_v13 }
 0x343   :  { %v1806_v26 = vpop.permute.xlu1 %1805 }
 0x344   :  { %1851 = vst.msk [vmem:[#allocation3 + $0x48] sm:$0xff] %vm1847_vm6, %v1806_v26  ;;  %v2321_v18 = vld [vmem:[#allocation3 + $0x30] sm:$0xff]  ;;  %3943 = vmatmul.msk.f32.gmra.mxu2 %vm749_vm2, %v740_v37 }
 0x345   :  { %1949 = vst.msk [vmem:[#allocation3 + $0x48] sm:$0xff] %vm1945_vm7, %v1904_v47  ;;  %2473 = vmatmul.f32.gmra.mxu1 %v2321_v18  ;;  %v5222_v22 = vpop.f32.mrf.mxu3 }
 0x347   :  { %v1711_v11 = vpop.permute.xlu0 %1710  ;;  %v5194_v1 = vpop.f32.mrf.mxu2 }
 0x348   :  { %1755 = vst.msk [vmem:[#allocation3 + $0x60] sm:$0xff] %vm1750_vm5, %v1711_v11 }
 0x349   :  { %v1908_v48 = vpop.permute.xlu2 %1907 }
 0x34a   :  { %1187 = vmatmul.f32.gmra.mxu3 %v747_v60 }
 0x34b   :  { %v1808_v50 = vpop.permute.xlu1 %1807 }
 0x34c   :  { %1852 = vst.msk [vmem:[#allocation3 + $0x60] sm:$0xff] %vm1847_vm6, %v1808_v50  ;;  %v2324_v54 = vld [vmem:[#allocation3 + $0x48] sm:$0xff]  ;;  %3944 = vmatmul.msk.f32.gmra.mxu2 %vm749_vm2, %v742_v24  ;;  %v1209_v50 = vadd.f32 %v5128_v52, %v5077_v62 }
 0x34d   :  { %1950 = vst.msk [vmem:[#allocation3 + $0x60] sm:$0xff] %vm1945_vm7, %v1906_v45  ;;  %2476 = vmatmul.f32.gmra.mxu1 %v2324_v54  ;;  %v5238_v17 = vpop.f32.mrf.mxu3 }
 0x34f   :  { %v5208_v58 = vpop.f32.mrf.mxu2 }
 0x354   :  { %v1713_v7 = vpop.permute.xlu0 %1712  ;;  %v2327_v0 = vld [vmem:[#allocation3 + $0x60] sm:$0xff]  ;;  %3945 = vmatmul.msk.f32.gmra.mxu2 %vm749_vm2, %v744_v4 }
 0x355   :  { %v1810_v8 = vpop.permute.xlu1 %1809  ;;  %1756 = vst.msk [vmem:[#allocation3 + $0x78] sm:$0xff] %vm1750_vm5, %v1713_v7  ;;  %2479 = vmatmul.f32.gmra.mxu1 %v2327_v0  ;;  %v1910_v56 = vpop.permute.xlu2 %1909  ;;  %v1212_v0 = vadd.f32 %v5141_v25, %v5111_v63 }
 0x356   :  { %1853 = vst.msk [vmem:[#allocation3 + $0x78] sm:$0xff] %vm1847_vm6, %v1810_v8  ;;  %v5244_v40 = vpop.f32.mrf.mxu3 }
 0x357   :  { %1951 = vst.msk [vmem:[#allocation3 + $0x78] sm:$0xff] %vm1945_vm7, %v1908_v48  ;;  %v5220_v10 = vpop.f32.mrf.mxu2 }
 0x35c   :  { %3946 = vmatmul.msk.f32.gmra.mxu2 %vm749_vm2, %v746_v36 }
 0x35e   :  { %v2330_v33 = vld [vmem:[#allocation3 + $0x78] sm:$0xff]  ;;  %v5251_v37 = vpop.f32.mrf.mxu3 }
 0x35f   :  { %2482 = vmatmul.f32.gmra.mxu1 %v2330_v33  ;;  %v5232_v55 = vpop.f32.mrf.mxu2 }
 0x362   :  { %v1715_v5 = vpop.permute.xlu0 %1714  ;;  %v1912_v16 = vpop.permute.xlu2 %1911 }
 0x363   :  { %1757 = vst.msk [vmem:[#allocation3 + $0x90] sm:$0xff] %vm1750_vm5, %v1715_v5  ;;  %v1812_v32 = vpop.permute.xlu1 %1811 }
 0x364   :  { %1854 = vst.msk [vmem:[#allocation3 + $0x90] sm:$0xff] %vm1847_vm6, %v1812_v32  ;;  %3947 = vmatmul.msk.f32.gmra.mxu2 %vm749_vm2, %v748_v30 }
 0x365   :  { %1952 = vst.msk [vmem:[#allocation3 + $0x90] sm:$0xff] %vm1945_vm7, %v1910_v56  ;;  %v1215_v56 = vadd.f32 %v5154_v20, %v5125_v9 }
 0x366   :  { %v5255_v47 = vpop.f32.mrf.mxu3 }
 0x367   :  { %v5242_v19 = vpop.f32.mrf.mxu2 }
 0x36c   :  { %v2333_v35 = vld [vmem:[#allocation3 + $0x90] sm:$0xff] }
 0x36d   :  { %2485 = vmatmul.f32.gmra.mxu1 %v2333_v35 }
 0x36e   :  { %v1717_v38 = vpop.permute.xlu0 %1716  ;;  %v1152_v11 = vpop.f32.mrf.mxu3 }
 0x36f   :  { %v1814_v41 = vpop.permute.xlu1 %1813  ;;  %1758 = vst.msk [vmem:[#allocation3 + $0xa8] sm:$0xff] %vm1750_vm5, %v1717_v38  ;;  %v5249_v39 = vpop.f32.mrf.mxu2 }
 0x370   :  { %1855 = vst.msk [vmem:[#allocation3 + $0xa8] sm:$0xff] %vm1847_vm6, %v1814_v41 }
 0x371   :  { %1953 = vst.msk [vmem:[#allocation3 + $0xa8] sm:$0xff] %vm1945_vm7, %v1912_v16 }
 0x376   :  { %v1155_v45 = vpop.f32.mrf.mxu3 }
 0x377   :  { %v5253_v44 = vpop.f32.mrf.mxu2 }
 0x378   :  { %v2336_v26 = vld [vmem:[#allocation3 + $0xa8] sm:$0xff] }
 0x379   :  { %2488 = vmatmul.f32.gmra.mxu1 %v2336_v26  ;;  %v1218_v26 = vadd.f32 %v5167_v29, %v5139_v2 }
 0x37e   :  { %v1158_v36 = vpop.f32.mrf.mxu3 }
 0x37f   :  { %v5257_v18 = vpop.f32.mrf.mxu2 }
 0x386   :  { %v1161_v25 = vpop.f32.mrf.mxu3 }
 0x387   :  { %v1247_v24 = vpop.f32.mrf.mxu2 }
 0x388   :  { %v1248_v6 = vadd.f32 %v1247_v24, %v1152_v11 }
 0x38a   :  { %v1299_v54 = vmax.f32 %v1209_v50, %v1248_v6 }
 0x38c   :  { %v1375_v4 = vrot.slane %v1299_v54, 2  ;;  %v1376_v7 = vrot.slane %v1299_v54, 4  ;;  %v1377_v8 = vrot.slane %v1299_v54, 6  ;;  %1486 = vst [vmem:[#allocation1] ss:$4 sm:$0xff] %v1299_v54 }
 0x38e   :  { %1487 = vst [vmem:[#allocation1 + $0x1] ss:$4 sm:$0xff] %v1375_v4  ;;  %v1164_v4 = vpop.f32.mrf.mxu3 }
 0x38f   :  { %1488 = vst [vmem:[#allocation1 + $0x2] ss:$4 sm:$0xff] %v1376_v7  ;;  %v1250_v13 = vpop.f32.mrf.mxu2 }
 0x390   :  { %1489 = vst [vmem:[#allocation1 + $0x3] ss:$4 sm:$0xff] %v1377_v8  ;;  %v1251_v48 = vadd.f32 %v1250_v13, %v1155_v45  ;;  %v1221_v13 = vadd.f32 %v5181_v12, %v5156_v49 }
 0x392   :  { %v1300_v60 = vmax.f32 %v1212_v0, %v1251_v48 }
 0x394   :  { %1490 = vst [vmem:[#allocation1 + $0x20] ss:$4 sm:$0xff] %v1300_v60  ;;  %v1378_v33 = vrot.slane %v1300_v60, 2  ;;  %v1379_v62 = vrot.slane %v1300_v60, 4  ;;  %v1380_v5 = vrot.slane %v1300_v60, 6 }
 0x397   :  { %v1491_v52 = vld.sshfl [vmem:[#allocation1] sm:$0xff pattern:$0x73625140]  ;;  %v1253_v32 = vpop.f32.mrf.mxu2 }
 0x398   :  { %1618 = vst.msk [vmem:[#allocation2 + $0xa0] sm:$0xff] %vm1596_vm3, %v1491_v52  ;;  %v1254_v30 = vadd.f32 %v1253_v32, %v1158_v36 }
 0x399   :  { %1493 = vst [vmem:[#allocation1] ss:$4 sm:$0xff] %v1378_v33  ;;  %v1167_v33 = vpop.f32.mrf.mxu3 }
 0x39a   :  { %1494 = vst [vmem:[#allocation1 + $0x1] ss:$4 sm:$0xff] %v1379_v62  ;;  %v1301_v35 = vmax.f32 %v1215_v56, %v1254_v30 }
 0x39b   :  { %v1492_v63 = vld.sshfl [vmem:[#allocation1 + $0x20] sm:$0xff pattern:$0x73625140]  ;;  %1495 = vst [vmem:[#allocation1 + $0x2] ss:$4 sm:$0xff] %v1380_v5 }
 0x39c   :  { %1619 = vst.msk [vmem:[#allocation2 + $0xa8] sm:$0x3] %vm1598_vm4, %v1492_v63  ;;  %v1381_v38 = vrot.slane %v1301_v35, 2  ;;  %v1382_v11 = vrot.slane %v1301_v35, 4  ;;  %v1383_v6 = vrot.slane %v1301_v35, 6 }
 0x39d   :  { %1496 = vst [vmem:[#allocation1 + $0x3] ss:$4 sm:$0xff] %v1301_v35  ;;  %v1224_v35 = vadd.f32 %v5194_v1, %v5172_v46 }
 0x39e   :  { %1497 = vst [vmem:[#allocation1 + $0x20] ss:$4 sm:$0xff] %v1381_v38 }
 0x39f   :  { %v1256_v41 = vpop.f32.mrf.mxu2  ;;  %v1646_v16 = vld [vmem:[#allocation2 + $0xa0] sm:$0xff] }
 0x3a0   :  { %v1257_v9 = vadd.f32 %v1256_v41, %v1161_v25  ;;  %1662 = vst.msk [vmem:[#allocation3 + $0xc0] sm:$0xff] %vm1596_vm3, %v1646_v16 }
 0x3a1   :  { %v1170_v63 = vpop.f32.mrf.mxu3 }
 0x3a2   :  { %v1302_v20 = vmax.f32 %v1218_v26, %v1257_v9 }
 0x3a3   :  { %v1775_v24 = vld [vmem:[#allocation2 + $0xa2] sm:$0xff] }
 0x3a4   :  { %v1678_v50 = vld [vmem:[#allocation2 + $0xa1] sm:$0xff]  ;;  %v1498_v45 = vld.sshfl [vmem:[#allocation1] sm:$0xff pattern:$0x73625140]  ;;  %1815 = vrot.lane.b32.xlu1 %v1775_v24, %s4053_s16  ;;  %v1384_v7 = vrot.slane %v1302_v20, 2  ;;  %v1385_v2 = vrot.slane %v1302_v20, 4 }
 0x3a5   :  { %1718 = vrot.lane.b32.xlu0 %v1678_v50, %s4052_s28  ;;  %v1499_v54 = vld.sshfl [vmem:[#allocation1 + $0x20] sm:$0xff pattern:$0x73625140]  ;;  %1500 = vst [vmem:[#allocation1] ss:$4 sm:$0xff] %v1382_v11  ;;  %v1386_v52 = vrot.slane %v1302_v20, 6 }
 0x3a6   :  { %1501 = vst [vmem:[#allocation1 + $0x1] ss:$4 sm:$0xff] %v1383_v6 }
 0x3a7   :  { %1620 = vst.msk [vmem:[#allocation2 + $0xb0] sm:$0xff] %vm1596_vm3, %v1498_v45  ;;  %v1259_v29 = vpop.f32.mrf.mxu2 }
 0x3a8   :  { %1621 = vst.msk [vmem:[#allocation2 + $0xb8] sm:$0x3] %vm1598_vm4, %v1499_v54  ;;  %v1260_v8 = vadd.f32 %v1259_v29, %v1164_v4 }
 0x3a9   :  { %1502 = vst [vmem:[#allocation1 + $0x2] ss:$4 sm:$0xff] %v1302_v20  ;;  %v1227_v20 = vadd.f32 %v5208_v58, %v5189_v28  ;;  %v1173_v45 = vpop.f32.mrf.mxu3 }
 0x3aa   :  { %1503 = vst [vmem:[#allocation1 + $0x3] ss:$4 sm:$0xff] %v1384_v7  ;;  %v1303_v0 = vmax.f32 %v1221_v13, %v1260_v8 }
 0x3ab   :  { %1504 = vst [vmem:[#allocation1 + $0x20] ss:$4 sm:$0xff] %v1385_v2  ;;  %v1230_v2 = vadd.f32 %v5220_v10, %v5206_v3 }
 0x3ac   :  { %v1387_v5 = vrot.slane %v1303_v0, 2  ;;  %v1388_v32 = vrot.slane %v1303_v0, 4  ;;  %v1389_v56 = vrot.slane %v1303_v0, 6 }
 0x3ae   :  { %v1873_v48 = vld [vmem:[#allocation2 + $0xb0] sm:$0xff] }
 0x3af   :  { %1913 = vrot.lane.b32.xlu2 %v1873_v48, %s4054_s0  ;;  %v5277_v36 = vld [vmem:[#allocation2 + $0xb2] sm:$0xff]  ;;  %v1262_v62 = vpop.f32.mrf.mxu2  ;;  %1663 = vst.msk [vmem:[#allocation3 + $0xd8] sm:$0xff] %vm1596_vm3, %v1873_v48 }
 0x3b0   :  { %v1679_v60 = vld [vmem:[#allocation2 + $0xb1] sm:$0xff]  ;;  %1817 = vrot.lane.b32.xlu1 %v5277_v36, %s4053_s16  ;;  %v1263_v30 = vadd.f32 %v1262_v62, %v1167_v33 }
 0x3b1   :  { %1720 = vrot.lane.b32.xlu0 %v1679_v60, %s4052_s28  ;;  %1986 = vst.msk [vmem:[#allocation3 + $0xc8] sm:$0xff] %vm1596_vm3, %v1679_v60  ;;  %v1505_v49 = vld.sshfl [vmem:[#allocation1] sm:$0xff pattern:$0x73625140]  ;;  %v1176_v60 = vpop.f32.mrf.mxu3 }
 0x3b2   :  { %v1506_v12 = vld.sshfl [vmem:[#allocation1 + $0x20] sm:$0xff pattern:$0x73625140]  ;;  %1507 = vst [vmem:[#allocation1] ss:$4 sm:$0xff] %v1386_v52  ;;  %v1304_v38 = vmax.f32 %v1224_v35, %v1263_v30 }
 0x3b3   :  { %1622 = vst.msk [vmem:[#allocation2 + $0xc0] sm:$0xff] %vm1596_vm3, %v1505_v49  ;;  %v1233_v49 = vadd.f32 %v5232_v55, %v5222_v22 }
 0x3b4   :  { %1623 = vst.msk [vmem:[#allocation2 + $0xc8] sm:$0x3] %vm1598_vm4, %v1506_v12  ;;  %v1390_v9 = vrot.slane %v1304_v38, 2  ;;  %v1391_v24 = vrot.slane %v1304_v38, 4  ;;  %v1392_v50 = vrot.slane %v1304_v38, 6 }
 0x3b5   :  { %1508 = vst [vmem:[#allocation1 + $0x1] ss:$4 sm:$0xff] %v1303_v0 }
 0x3b6   :  { %1509 = vst [vmem:[#allocation1 + $0x2] ss:$4 sm:$0xff] %v1387_v5 }
 0x3b7   :  { %1510 = vst [vmem:[#allocation1 + $0x3] ss:$4 sm:$0xff] %v1388_v32  ;;  %v1265_v25 = vpop.f32.mrf.mxu2 }
 0x3b8   :  { %1511 = vst [vmem:[#allocation1 + $0x20] ss:$4 sm:$0xff] %v1389_v56  ;;  %v1266_v46 = vadd.f32 %v1265_v25, %v1170_v63 }
 0x3b9   :  { %v1179_v55 = vpop.f32.mrf.mxu3 }
 0x3ba   :  { %v5288_v41 = vld [vmem:[#allocation2 + $0xc0] sm:$0xff]  ;;  %v1305_v6 = vmax.f32 %v1227_v20, %v1266_v46 }
 0x3bb   :  { %1915 = vrot.lane.b32.xlu2 %v5288_v41, %s4054_s0  ;;  %v5292_v16 = vld [vmem:[#allocation2 + $0xc2] sm:$0xff]  ;;  %1664 = vst.msk [vmem:[#allocation3 + $0xf0] sm:$0xff] %vm1596_vm3, %v5288_v41 }
 0x3bc   :  { %v5294_v26 = vld [vmem:[#allocation2 + $0xc1] sm:$0xff]  ;;  %1819 = vrot.lane.b32.xlu1 %v5292_v16, %s4053_s16  ;;  %2307 = vst.msk [vmem:[#allocation3 + $0xd0] sm:$0xff] %vm1596_vm3, %v5292_v16  ;;  %v1393_v29 = vrot.slane %v1305_v6, 2  ;;  %v1394_v8 = vrot.slane %v1305_v6, 4  ;;  %v1395_v48 = vrot.slane %v1305_v6, 6 }
 0x3bd   :  { %1722 = vrot.lane.b32.xlu0 %v5294_v26, %s4052_s28  ;;  %1987 = vst.msk [vmem:[#allocation3 + $0xe0] sm:$0xff] %vm1596_vm3, %v5294_v26 }
 0x3be   :  { %v1512_v1 = vld.sshfl [vmem:[#allocation1] sm:$0xff pattern:$0x73625140] }
 0x3bf   :  { %v1513_v11 = vld.sshfl [vmem:[#allocation1 + $0x20] sm:$0xff pattern:$0x73625140]  ;;  %1624 = vst.msk [vmem:[#allocation2 + $0xd0] sm:$0xff] %vm1596_vm3, %v1512_v1  ;;  %v1268_v54 = vpop.f32.mrf.mxu2  ;;  %v1236_v1 = vadd.f32 %v5242_v19, %v5238_v17 }
 0x3c0   :  { %1625 = vst.msk [vmem:[#allocation2 + $0xd8] sm:$0x3] %vm1598_vm4, %v1513_v11  ;;  %v1269_v7 = vadd.f32 %v1268_v54, %v1173_v45 }
 0x3c1   :  { %1514 = vst [vmem:[#allocation1] ss:$4 sm:$0xff] %v1304_v38 }
 0x3c2   :  { %1515 = vst [vmem:[#allocation1 + $0x1] ss:$4 sm:$0xff] %v1390_v9  ;;  %v1306_v13 = vmax.f32 %v1230_v2, %v1269_v7 }
 0x3c3   :  { %1516 = vst [vmem:[#allocation1 + $0x2] ss:$4 sm:$0xff] %v1391_v24 }
 0x3c4   :  { %1517 = vst [vmem:[#allocation1 + $0x3] ss:$4 sm:$0xff] %v1392_v50  ;;  %v1396_v10 = vrot.slane %v1306_v13, 2  ;;  %v1397_v5 = vrot.slane %v1306_v13, 4  ;;  %v1398_v30 = vrot.slane %v1306_v13, 6  ;;  %v1182_v50 = vpop.f32.mrf.mxu3 }
 0x3c5   :  { %1518 = vst [vmem:[#allocation1 + $0x20] ss:$4 sm:$0xff] %v1305_v6 }
 0x3c6   :  { %v5310_v4 = vld [vmem:[#allocation2 + $0xd0] sm:$0xff] }
 0x3c7   :  { %1917 = vrot.lane.b32.xlu2 %v5310_v4, %s4054_s0  ;;  %v5314_v28 = vld [vmem:[#allocation2 + $0xd2] sm:$0xff]  ;;  %1665 = vst.msk [vmem:[#allocation3 + $0x108] sm:$0xff] %vm1596_vm3, %v5310_v4  ;;  %v1271_v33 = vpop.f32.mrf.mxu2 }
 0x3c8   :  { %v5316_v58 = vld [vmem:[#allocation2 + $0xd1] sm:$0xff]  ;;  %1821 = vrot.lane.b32.xlu1 %v5314_v28, %s4053_s16  ;;  %2308 = vst.msk [vmem:[#allocation3 + $0xe8] sm:$0xff] %vm1596_vm3, %v5314_v28  ;;  %v1272_v62 = vadd.f32 %v1271_v33, %v1176_v60 }
 0x3c9   :  { %1724 = vrot.lane.b32.xlu0 %v5316_v58, %s4052_s28  ;;  %1988 = vst.msk [vmem:[#allocation3 + $0xf8] sm:$0xff] %vm1596_vm3, %v5316_v58 }
 0x3ca   :  { %v1307_v12 = vmax.f32 %v1233_v49, %v1272_v62  ;;  %v1242_v62 = vadd.f32 %v5253_v44, %v5251_v37 }
 0x3cb   :  { %v1519_v0 = vld.sshfl [vmem:[#allocation1] sm:$0xff pattern:$0x73625140] }
 0x3cc   :  { %1626 = vst.msk [vmem:[#allocation2 + $0xe0] sm:$0xff] %vm1596_vm3, %v1519_v0  ;;  %v1520_v3 = vld.sshfl [vmem:[#allocation1 + $0x20] sm:$0xff pattern:$0x73625140]  ;;  %v1399_v25 = vrot.slane %v1307_v12, 2  ;;  %v1400_v38 = vrot.slane %v1307_v12, 4 }
 0x3cd   :  { %1521 = vst [vmem:[#allocation1] ss:$4 sm:$0xff] %v1393_v29  ;;  %v1401_v45 = vrot.slane %v1307_v12, 6 }
 0x3ce   :  { %1522 = vst [vmem:[#allocation1 + $0x1] ss:$4 sm:$0xff] %v1394_v8  ;;  %v1239_v8 = vadd.f32 %v5249_v39, %v5244_v40 }
 0x3cf   :  { %1523 = vst [vmem:[#allocation1 + $0x2] ss:$4 sm:$0xff] %v1395_v48  ;;  %v1274_v63 = vpop.f32.mrf.mxu2 }
 0x3d0   :  { %1627 = vst.msk [vmem:[#allocation2 + $0xe8] sm:$0x3] %vm1598_vm4, %v1520_v3  ;;  %v1275_v46 = vadd.f32 %v1274_v63, %v1179_v55 }
 0x3d1   :  { %1524 = vst [vmem:[#allocation1 + $0x3] ss:$4 sm:$0xff] %v1306_v13  ;;  %v1185_v13 = vpop.f32.mrf.mxu3 }
 0x3d2   :  { %1525 = vst [vmem:[#allocation1 + $0x20] ss:$4 sm:$0xff] %v1396_v10  ;;  %v1308_v9 = vmax.f32 %v1236_v1, %v1275_v46 }
 0x3d3   :  { %v5332_v52 = vld [vmem:[#allocation2 + $0xe0] sm:$0xff] }
 0x3d4   :  { %1919 = vrot.lane.b32.xlu2 %v5332_v52, %s4054_s0  ;;  %1666 = vst.msk [vmem:[#allocation3 + $0x120] sm:$0xff] %vm1596_vm3, %v5332_v52  ;;  %v1402_v54 = vrot.slane %v1308_v9, 2  ;;  %v1403_v7 = vrot.slane %v1308_v9, 4  ;;  %v1404_v2 = vrot.slane %v1308_v9, 6 }
 0x3d7   :  { %v5340_v32 = vld [vmem:[#allocation2 + $0xe2] sm:$0xff]  ;;  %v1277_v6 = vpop.f32.mrf.mxu2 }
 0x3d8   :  { %v5342_v56 = vld [vmem:[#allocation2 + $0xe1] sm:$0xff]  ;;  %v1526_v35 = vld.sshfl [vmem:[#allocation1] sm:$0xff pattern:$0x73625140]  ;;  %1823 = vrot.lane.b32.xlu1 %v5340_v32, %s4053_s16  ;;  %2309 = vst.msk [vmem:[#allocation3 + $0x100] sm:$0xff] %vm1596_vm3, %v5340_v32  ;;  %v1278_v29 = vadd.f32 %v1277_v6, %v1182_v50 }
 0x3d9   :  { %1726 = vrot.lane.b32.xlu0 %v5342_v56, %s4052_s28  ;;  %1989 = vst.msk [vmem:[#allocation3 + $0x110] sm:$0xff] %vm1596_vm3, %v5342_v56  ;;  %v1527_v22 = vld.sshfl [vmem:[#allocation1 + $0x20] sm:$0xff pattern:$0x73625140] }
 0x3da   :  { %1528 = vst [vmem:[#allocation1] ss:$4 sm:$0xff] %v1397_v5  ;;  %v1309_v48 = vmax.f32 %v1239_v8, %v1278_v29 }
 0x3db   :  { %1529 = vst [vmem:[#allocation1 + $0x1] ss:$4 sm:$0xff] %v1398_v30 }
 0x3dc   :  { %1628 = vst.msk [vmem:[#allocation2 + $0xf0] sm:$0xff] %vm1596_vm3, %v1526_v35  ;;  %v1405_v33 = vrot.slane %v1309_v48, 2  ;;  %v1407_v5 = vrot.slane %v1309_v48, 6  ;;  %v1188_v35 = vpop.f32.mrf.mxu3 }
 0x3dd   :  { %1629 = vst.msk [vmem:[#allocation2 + $0xf8] sm:$0x3] %vm1598_vm4, %v1527_v22 }
 0x3de   :  { %1530 = vst [vmem:[#allocation1 + $0x2] ss:$4 sm:$0xff] %v1307_v12  ;;  %v1406_v12 = vrot.slane %v1309_v48, 4 }
 0x3df   :  { %1531 = vst [vmem:[#allocation1 + $0x3] ss:$4 sm:$0xff] %v1399_v25  ;;  %v1280_v0 = vpop.f32.mrf.mxu2  ;;  %v1245_v25 = vadd.f32 %v5257_v18, %v5255_v47 }
 0x3e0   :  { %1532 = vst [vmem:[#allocation1 + $0x20] ss:$4 sm:$0xff] %v1400_v38  ;;  %v1281_v40 = vadd.f32 %v1280_v0, %v1185_v13  ;;  %v4025_v0 = vld [vmem:[#allocation2 + $0x62] sm:$0xff] }
 0x3e2   :  { %v1310_v30 = vmax.f32 %v1242_v62, %v1281_v40  ;;  %v2096_v40 = vld [vmem:[#allocation2 + $0x70] sm:$0xff] }
 0x3e3   :  { %v5356_v20 = vld [vmem:[#allocation2 + $0xf0] sm:$0xff] }
 0x3e4   :  { %1921 = vrot.lane.b32.xlu2 %v5356_v20, %s4054_s0  ;;  %v5360_v11 = vld [vmem:[#allocation2 + $0xf2] sm:$0xff]  ;;  %1667 = vst.msk [vmem:[#allocation3 + $0x138] sm:$0xff] %vm1596_vm3, %v5356_v20  ;;  %v1408_v38 = vrot.slane %v1310_v30, 2  ;;  %v1409_v46 = vrot.slane %v1310_v30, 4  ;;  %v1410_v50 = vrot.slane %v1310_v30, 6 }
 0x3e5   :  { %v5362_v24 = vld [vmem:[#allocation2 + $0xf1] sm:$0xff]  ;;  %1825 = vrot.lane.b32.xlu1 %v5360_v11, %s4053_s16  ;;  %2310 = vst.msk [vmem:[#allocation3 + $0x118] sm:$0xff] %vm1596_vm3, %v5360_v11 }
 0x3e6   :  { %1728 = vrot.lane.b32.xlu0 %v5362_v24, %s4052_s28  ;;  %1990 = vst.msk [vmem:[#allocation3 + $0x128] sm:$0xff] %vm1596_vm3, %v5362_v24  ;;  %v1533_v17 = vld.sshfl [vmem:[#allocation1] sm:$0xff pattern:$0x73625140] }
 0x3e7   :  { %v1534_v19 = vld.sshfl [vmem:[#allocation1 + $0x20] sm:$0xff pattern:$0x73625140]  ;;  %1535 = vst [vmem:[#allocation1] ss:$4 sm:$0xff] %v1401_v45  ;;  %v1283_v22 = vpop.f32.mrf.mxu2 }
 0x3e8   :  { %1630 = vst.msk [vmem:[#allocation2 + $0x100] sm:$0xff] %vm1596_vm3, %v1533_v17  ;;  %v1284_v63 = vadd.f32 %v1283_v22, %v1188_v35  ;;  %v2098_v22 = vld [vmem:[#allocation2 + $0x90] sm:$0xff] }
 0x3e9   :  { %1631 = vst.msk [vmem:[#allocation2 + $0x108] sm:$0x3] %vm1598_vm4, %v1534_v19 }
 0x3ea   :  { %1536 = vst [vmem:[#allocation1 + $0x1] ss:$4 sm:$0xff] %v1308_v9  ;;  %v1311_v1 = vmax.f32 %v1245_v25, %v1284_v63  ;;  %v2194_v63 = vld [vmem:[#allocation2 + $0x91] sm:$0xff]  ;;  %v2385_v25 = vld [vmem:[%s6269_s3 + $0xb0] sm:$0xff] }
 0x3eb   :  { %1537 = vst [vmem:[#allocation1 + $0x2] ss:$4 sm:$0xff] %v1402_v54  ;;  %v2092_v54 = vld [vmem:[#allocation2 + $0x30] sm:$0xff] }
 0x3ec   :  { %1538 = vst [vmem:[#allocation1 + $0x3] ss:$4 sm:$0xff] %v1403_v7  ;;  %v1411_v6 = vrot.slane %v1311_v1, 2 }
 0x3ed   :  { %1539 = vst [vmem:[#allocation1 + $0x20] ss:$4 sm:$0xff] %v1404_v2  ;;  %v2093_v2 = vld [vmem:[#allocation2 + $0x40] sm:$0xff] }
 0x3ef   :  { %v5378_v3 = vld [vmem:[#allocation2 + $0x100] sm:$0xff] }
 0x3f0   :  { %1923 = vrot.lane.b32.xlu2 %v5378_v3, %s4054_s0  ;;  %v5382_v10 = vld [vmem:[#allocation2 + $0x102] sm:$0xff]  ;;  %1668 = vst.msk [vmem:[#allocation3 + $0x150] sm:$0xff] %vm1596_vm3, %v5378_v3 }
 0x3f1   :  { %v5384_v60 = vld [vmem:[#allocation2 + $0x101] sm:$0xff]  ;;  %1827 = vrot.lane.b32.xlu1 %v5382_v10, %s4053_s16  ;;  %2311 = vst.msk [vmem:[#allocation3 + $0x130] sm:$0xff] %vm1596_vm3, %v5382_v10 }
 0x3f2   :  { %1730 = vrot.lane.b32.xlu0 %v5384_v60, %s4052_s28  ;;  %1991 = vst.msk [vmem:[#allocation3 + $0x140] sm:$0xff] %vm1596_vm3, %v5384_v60 }
 0x3f3   :  { %v1540_v39 = vld.sshfl [vmem:[#allocation1] sm:$0xff pattern:$0x73625140] }
 0x3f4   :  { %v1541_v49 = vld.sshfl [vmem:[#allocation1 + $0x20] sm:$0xff pattern:$0x73625140]  ;;  %1632 = vst.msk [vmem:[#allocation2 + $0x110] sm:$0xff] %vm1596_vm3, %v1540_v39 }
 0x3f5   :  { %1633 = vst.msk [vmem:[#allocation2 + $0x118] sm:$0x3] %vm1598_vm4, %v1541_v49  ;;  %v2391_v49 = vld [vmem:[%s6269_s3 + $0xe0] sm:$0xff] }
 0x3f6   :  { %1542 = vst [vmem:[#allocation1] ss:$4 sm:$0xff] %v1309_v48 }
 0x3f7   :  { %1543 = vst [vmem:[#allocation1 + $0x1] ss:$4 sm:$0xff] %v1405_v33  ;;  %v2394_v33 = vld [vmem:[%s6269_s3 + $0xf8] sm:$0xff] }
 0x3f8   :  { %1544 = vst [vmem:[#allocation1 + $0x2] ss:$4 sm:$0xff] %v1406_v12  ;;  %2516 = vmatpush.msrb.mxu3 %v2394_v33  ;;  %v2390_v12 = vld [vmem:[%s6269_s3 + $0xd8] sm:$0xff] }
 0x3f9   :  { %1545 = vst [vmem:[#allocation1 + $0x3] ss:$4 sm:$0xff] %v1407_v5 }
 0x3fa   :  { %1546 = vst [vmem:[#allocation1 + $0x20] ss:$4 sm:$0xff] %v1310_v30 }
 0x3fb   :  { %v5400_v55 = vld [vmem:[#allocation2 + $0x110] sm:$0xff] }
 0x3fc   :  { %1925 = vrot.lane.b32.xlu2 %v5400_v55, %s4054_s0  ;;  %v5404_v37 = vld [vmem:[#allocation2 + $0x111] sm:$0xff]  ;;  %1669 = vst.msk [vmem:[#allocation3 + $0x168] sm:$0xff] %vm1596_vm3, %v5400_v55 }
 0x3fd   :  { %v5406_v44 = vld [vmem:[#allocation2 + $0x112] sm:$0xff]  ;;  %1732 = vrot.lane.b32.xlu0 %v5404_v37, %s4052_s28  ;;  %1992 = vst.msk [vmem:[#allocation3 + $0x158] sm:$0xff] %vm1596_vm3, %v5404_v37 }
 0x3fe   :  { %2312 = vst.msk [vmem:[#allocation3 + $0x148] sm:$0xff] %vm1596_vm3, %v5406_v44 }
 0x400   :  { %v1547_v9 = vld.sshfl [vmem:[#allocation1] sm:$0xff pattern:$0x73625140] }
 0x401   :  { %1634 = vst.msk [vmem:[#allocation2 + $0x120] sm:$0xff] %vm1596_vm3, %v1547_v9  ;;  %v1548_v47 = vld.sshfl [vmem:[#allocation1 + $0x20] sm:$0xff pattern:$0x73625140] }
 0x402   :  { %1549 = vst [vmem:[#allocation1] ss:$4 sm:$0xff] %v1408_v38  ;;  %v2383_v9 = vld [vmem:[%s6269_s3 + $0xa0] sm:$0xff] }
 0x403   :  { %1550 = vst [vmem:[#allocation1 + $0x1] ss:$4 sm:$0xff] %v1409_v46 }
 0x404   :  { %1551 = vst [vmem:[#allocation1 + $0x2] ss:$4 sm:$0xff] %v1410_v50  ;;  %1829 = vrot.lane.b32.xlu2 %v5406_v44, %s4053_s16  ;;  %v2382_v50 = vld [vmem:[%s6269_s3 + $0x98] sm:$0xff] }
 0x405   :  { %1552 = vst [vmem:[#allocation1 + $0x3] ss:$4 sm:$0xff] %v1311_v1  ;;  %2028 = vrot.lane.b32.xlu0 %v4873_v23, %s4052_s28  ;;  %v2384_v1 = vld [vmem:[%s6269_s3 + $0xa8] sm:$0xff] }
 0x406   :  { %1635 = vst.msk [vmem:[#allocation2 + $0x128] sm:$0x3] %vm1598_vm4, %v1548_v47  ;;  %v2381_v47 = vld [vmem:[%s6269_s3 + $0x90] sm:$0xff] }
 0x407   :  { %1553 = vst [vmem:[#allocation1 + $0x20] ss:$4 sm:$0xff] %v1411_v6 }
 0x408   :  { %v5424_v18 = vld [vmem:[#allocation2 + $0x120] sm:$0xff] }
 0x409   :  { %1927 = vrot.lane.b32.xlu1 %v5424_v18, %s4054_s0  ;;  %v1914_v29 = vpop.permute.xlu2 %1913 }
 0x40c   :  { %2219 = vrot.lane.b32.xlu2 %v4880_v57, %s4054_s0  ;;  %v1554_v45 = vld.sshfl [vmem:[#allocation1] sm:$0xff pattern:$0x73625140] }
 0x40d   :  { %2030 = vrot.lane.b32.xlu0 %v4905_v31, %s4052_s28  ;;  %v5432_v17 = vld [vmem:[#allocation2 + $0x122] sm:$0xff]  ;;  %1636 = vst.msk [vmem:[#allocation2 + $0x130] sm:$0xff] %vm1596_vm3, %v1554_v45 }
 0x40e   :  { %v5435_v23 = vld [vmem:[#allocation2 + $0x121] sm:$0xff]  ;;  %v1555_v19 = vld.sshfl [vmem:[#allocation1 + $0x20] sm:$0xff pattern:$0x73625140]  ;;  %2313 = vst.msk [vmem:[#allocation3 + $0x160] sm:$0xff] %vm1596_vm3, %v5432_v17 }
 0x40f   :  { %1993 = vst.msk [vmem:[#allocation3 + $0x170] sm:$0xff] %vm1596_vm3, %v5435_v23 }
 0x410   :  { %1637 = vst.msk [vmem:[#allocation2 + $0x138] sm:$0x3] %vm1598_vm4, %v1555_v19 }
 0x411   :  { %2125 = vrot.lane.b32.xlu1 %v2092_v54, %s4053_s16 }
 0x414   :  { %2221 = vrot.lane.b32.xlu2 %v4907_v51, %s4054_s0  ;;  %v2094_v51 = vld [vmem:[#allocation2 + $0x50] sm:$0xff] }
 0x415   :  { %2032 = vrot.lane.b32.xlu0 %v4936_v15, %s4052_s28  ;;  %v1916_v48 = vpop.permute.xlu2 %1915 }
 0x416   :  { %v1816_v31 = vpop.permute.xlu1 %1815 }
 0x417   :  { %v2298_v57 = vld [vmem:[#allocation2 + $0x132] sm:$0xff]  ;;  %v1719_v7 = vpop.permute.xlu0 %1718 }
 0x418   :  { %2314 = vst.msk [vmem:[#allocation3 + $0x178] sm:$0xff] %vm1596_vm3, %v2298_v57 }
 0x419   :  { %1759 = vst.msk [vmem:[#allocation3 + $0xc0] sm:$0xff] %vm1750_vm5, %v1719_v7  ;;  %2127 = vrot.lane.b32.xlu1 %v2093_v2, %s4053_s16 }
 0x41a   :  { %1856 = vst.msk [vmem:[#allocation3 + $0xc0] sm:$0xff] %vm1847_vm6, %v1816_v31 }
 0x41b   :  { %1954 = vst.msk [vmem:[#allocation3 + $0xc0] sm:$0xff] %vm1945_vm7, %v1914_v29 }
 0x41c   :  { %2223 = vrot.lane.b32.xlu2 %v4947_v34, %s4054_s0  ;;  %v2095_v34 = vld [vmem:[#allocation2 + $0x60] sm:$0xff] }
 0x41d   :  { %2034 = vrot.lane.b32.xlu0 %v4959_v61, %s4052_s28 }
 0x421   :  { %2129 = vrot.lane.b32.xlu1 %v2094_v51, %s4053_s16  ;;  %v1918_v62 = vpop.permute.xlu2 %1917 }
 0x422   :  { %v2339_v15 = vld [vmem:[#allocation3 + $0xc0] sm:$0xff]  ;;  %v1818_v8 = vpop.permute.xlu1 %1817 }
 0x423   :  { %2491 = vmatmul.f32.gmra.mxu1 %v2339_v15  ;;  %v1721_v13 = vpop.permute.xlu0 %1720  ;;  %v2106_v15 = vld [vmem:[#allocation2 + $0x130] sm:$0xff] }
 0x424   :  { %2225 = vrot.lane.b32.xlu2 %v4966_v14, %s4054_s0  ;;  %1760 = vst.msk [vmem:[#allocation3 + $0xd8] sm:$0xff] %vm1750_vm5, %v1721_v13 }
 0x425   :  { %2036 = vrot.lane.b32.xlu0 %v4025_v0, %s4052_s28  ;;  %1857 = vst.msk [vmem:[#allocation3 + $0xd8] sm:$0xff] %vm1847_vm6, %v1818_v8  ;;  %v2202_v0 = vld [vmem:[#allocation2 + $0x131] sm:$0xff] }
 0x426   :  { %1955 = vst.msk [vmem:[#allocation3 + $0xd8] sm:$0xff] %vm1945_vm7, %v1916_v48 }
 0x429   :  { %2131 = vrot.lane.b32.xlu1 %v2095_v34, %s4053_s16 }
 0x42c   :  { %2227 = vrot.lane.b32.xlu2 %v5017_v27, %s4054_s0  ;;  %v2393_v27 = vld [vmem:[%s6269_s3 + $0xf0] sm:$0xff] }
 0x42d   :  { %2038 = vrot.lane.b32.xlu0 %v5025_v21, %s4052_s28  ;;  %v2342_v61 = vld [vmem:[#allocation3 + $0xd8] sm:$0xff]  ;;  %v2392_v21 = vld [vmem:[%s6269_s3 + $0xe8] sm:$0xff]  ;;  %2517 = vmatpush.msrb.mxu3 %v2393_v27 }
 0x42e   :  { %2494 = vmatmul.f32.gmra.mxu1 %v2342_v61  ;;  %v1820_v14 = vpop.permute.xlu1 %1819  ;;  %v1920_v35 = vpop.permute.xlu2 %1919  ;;  %v2317_v61 = vld [vmem:[#allocation3 + $0x10] sm:$0xff] }
 0x42f   :  { %v1723_v39 = vpop.permute.xlu0 %1722  ;;  %2518 = vmatpush.msrb.mxu3 %v2392_v21 }
 0x430   :  { %1761 = vst.msk [vmem:[#allocation3 + $0xf0] sm:$0xff] %vm1750_vm5, %v1723_v39 }
 0x431   :  { %2133 = vrot.lane.b32.xlu1 %v2096_v40, %s4053_s16  ;;  %1858 = vst.msk [vmem:[#allocation3 + $0xf0] sm:$0xff] %vm1847_vm6, %v1820_v14  ;;  %2519 = vmatpush.msrb.mxu3 %v2391_v49 }
 0x432   :  { %1956 = vst.msk [vmem:[#allocation3 + $0xf0] sm:$0xff] %vm1945_vm7, %v1918_v62  ;;  %v2320_v62 = vld [vmem:[#allocation3 + $0x28] sm:$0xff] }
 0x433   :  { %2520 = vmatpush.msrb.mxu3 %v2390_v12 }
 0x434   :  { %2229 = vrot.lane.b32.xlu2 %v5039_v59, %s4054_s0 }
 0x435   :  { %2040 = vrot.lane.b32.xlu0 %v5084_v53, %s4052_s28  ;;  %v2389_v53 = vld [vmem:[%s6269_s3 + $0xd0] sm:$0xff] }
 0x436   :  { %2521 = vmatpush.msrb.mxu3 %v2389_v53 }
 0x439   :  { %2135 = vrot.lane.b32.xlu1 %v5069_v42, %s4053_s16  ;;  %v2345_v5 = vld [vmem:[#allocation3 + $0xf0] sm:$0xff]  ;;  %v2388_v42 = vld [vmem:[%s6269_s3 + $0xc8] sm:$0xff] }
 0x43a   :  { %v1822_v30 = vpop.permute.xlu1 %1821  ;;  %2497 = vmatmul.f32.gmra.mxu1 %v2345_v5  ;;  %2522 = vmatpush.msrb.mxu3 %v2388_v42 }
 0x43b   :  { %v1725_v59 = vpop.permute.xlu0 %1724 }
 0x43c   :  { %2231 = vrot.lane.b32.xlu2 %v5079_v43, %s4054_s0  ;;  %1762 = vst.msk [vmem:[#allocation3 + $0x108] sm:$0xff] %vm1750_vm5, %v1725_v59  ;;  %v2387_v43 = vld [vmem:[%s6269_s3 + $0xc0] sm:$0xff] }
 0x43d   :  { %2042 = vrot.lane.b32.xlu0 %v5277_v36, %s4052_s28  ;;  %1859 = vst.msk [vmem:[#allocation3 + $0x108] sm:$0xff] %vm1847_vm6, %v1822_v30  ;;  %v2386_v36 = vld [vmem:[%s6269_s3 + $0xb8] sm:$0xff]  ;;  %2523 = vmatpush.msrb.mxu3 %v2387_v43  ;;  %v2323_v30 = vld [vmem:[#allocation3 + $0x40] sm:$0xff] }
 0x43e   :  { %1957 = vst.msk [vmem:[#allocation3 + $0x108] sm:$0xff] %vm1945_vm7, %v1920_v35  ;;  %v1922_v38 = vpop.permute.xlu2 %1921 }
 0x43f   :  { %2524 = vmatpush.msrb.mxu3 %v2386_v36 }
 0x441   :  { %2137 = vrot.lane.b32.xlu1 %v2098_v22, %s4053_s16  ;;  %2525 = vmatpush.msrb.mxu3 %v2385_v25  ;;  %v2326_v22 = vld [vmem:[#allocation3 + $0x58] sm:$0xff] }
 0x443   :  { %2526 = vmatpush.msrb.mxu3 %v2384_v1 }
 0x444   :  { %2233 = vrot.lane.b32.xlu2 %v2194_v63, %s4054_s0 }
 0x445   :  { %2044 = vrot.lane.b32.xlu0 %v5292_v16, %s4052_s28  ;;  %v2348_v46 = vld [vmem:[#allocation3 + $0x108] sm:$0xff]  ;;  %2527 = vmatpush.msrb.mxu3 %v2383_v9 }
 0x446   :  { %2500 = vmatmul.f32.gmra.mxu1 %v2348_v46  ;;  %v2329_v46 = vld [vmem:[#allocation3 + $0x70] sm:$0xff] }
 0x447   :  { %2528 = vmatpush.msrb.mxu3 %v2382_v50 }
 0x449   :  { %2139 = vrot.lane.b32.xlu1 %v5288_v41, %s4053_s16  ;;  %v2380_v41 = vld [vmem:[%s6269_s3 + $0x88] sm:$0xff]  ;;  %2529 = vmatpush.msrb.mxu3 %v2381_v47  ;;  %v2332_v47 = vld [vmem:[#allocation3 + $0x88] sm:$0xff] }
 0x44a   :  { %v1824_v16 = vpop.permute.xlu1 %1823  ;;  %v1924_v45 = vpop.permute.xlu2 %1923 }
 0x44b   :  { %v1727_v6 = vpop.permute.xlu0 %1726  ;;  %2530 = vmatpush.msrb.mxu3 %v2380_v41 }
 0x44c   :  { %2235 = vrot.lane.b32.xlu2 %v5294_v26, %s4054_s0  ;;  %1763 = vst.msk [vmem:[#allocation3 + $0x120] sm:$0xff] %vm1750_vm5, %v1727_v6  ;;  %v2379_v26 = vld [vmem:[%s6269_s3 + $0x80] sm:$0xff] }
 0x44d   :  { %2046 = vrot.lane.b32.xlu0 %v5314_v28, %s4052_s28  ;;  %1860 = vst.msk [vmem:[#allocation3 + $0x120] sm:$0xff] %vm1847_vm6, %v1824_v16  ;;  %2531 = vmatpush.msrb.mxu3 %v2379_v26 }
 0x44e   :  { %1958 = vst.msk [vmem:[#allocation3 + $0x120] sm:$0xff] %vm1945_vm7, %v1922_v38 }
 0x451   :  { %2141 = vrot.lane.b32.xlu1 %v5310_v4, %s4053_s16 }
 0x454   :  { %2237 = vrot.lane.b32.xlu2 %v5316_v58, %s4054_s0 }
 0x455   :  { %2048 = vrot.lane.b32.xlu0 %v5340_v32, %s4052_s28  ;;  %v2351_v28 = vld [vmem:[#allocation3 + $0x120] sm:$0xff] }
 0x456   :  { %v1926_v19 = vpop.permute.xlu2 %1925  ;;  %2503 = vmatmul.f32.gmra.mxu1 %v2351_v28 }
 0x457   :  { %v1826_v54 = vpop.permute.xlu1 %1825 }
 0x458   :  { %v1729_v57 = vpop.permute.xlu0 %1728 }
 0x459   :  { %1764 = vst.msk [vmem:[#allocation3 + $0x138] sm:$0xff] %vm1750_vm5, %v1729_v57  ;;  %2143 = vrot.lane.b32.xlu1 %v5332_v52, %s4053_s16  ;;  %v2398_v52 = vld [vmem:[%s6269_s3 + $0x118] sm:$0xff] }
 0x45a   :  { %1861 = vst.msk [vmem:[#allocation3 + $0x138] sm:$0xff] %vm1847_vm6, %v1826_v54  ;;  %2593 = vmatpush.msra.mxu1 %v2398_v52  ;;  %v2335_v54 = vld [vmem:[#allocation3 + $0xa0] sm:$0xff]  ;;  %v2338_v52 = vld [vmem:[#allocation3 + $0xb8] sm:$0xff] }
 0x45b   :  { %1959 = vst.msk [vmem:[#allocation3 + $0x138] sm:$0xff] %vm1945_vm7, %v1924_v45 }
 0x45c   :  { %2239 = vrot.lane.b32.xlu2 %v5342_v56, %s4054_s0  ;;  %v2397_v56 = vld [vmem:[%s6269_s3 + $0x110] sm:$0xff] }
 0x45d   :  { %2050 = vrot.lane.b32.xlu0 %v5360_v11, %s4052_s28  ;;  %v2396_v11 = vld [vmem:[%s6269_s3 + $0x108] sm:$0xff]  ;;  %2594 = vmatpush.msra.mxu1 %v2397_v56 }
 0x45e   :  { %v1830_v4 = vpop.permute.xlu2 %1829 }
 0x45f   :  { %2595 = vmatpush.msra.mxu1 %v2396_v11 }
 0x461   :  { %2145 = vrot.lane.b32.xlu1 %v5356_v20, %s4053_s16 }
 0x462   :  { %v2354_v58 = vld [vmem:[#allocation3 + $0x138] sm:$0xff] }
 0x463   :  { %2506 = vmatmul.f32.gmra.mxu1 %v2354_v58  ;;  %v1828_v32 = vpop.permute.xlu1 %1827 }
 0x464   :  { %v1731_v31 = vpop.permute.xlu0 %1730  ;;  %2241 = vrot.lane.b32.xlu2 %v5362_v24, %s4054_s0  ;;  %v2395_v24 = vld [vmem:[%s6269_s3 + $0x100] sm:$0xff] }
 0x465   :  { %1765 = vst.msk [vmem:[#allocation3 + $0x150] sm:$0xff] %vm1750_vm5, %v1731_v31  ;;  %2052 = vrot.lane.b32.xlu0 %v5382_v10, %s4052_s28  ;;  %2596 = vmatpush.msra.mxu1 %v2395_v24 }
 0x466   :  { %1862 = vst.msk [vmem:[#allocation3 + $0x150] sm:$0xff] %vm1847_vm6, %v1828_v32  ;;  %v2220_v20 = vpop.permute.xlu2 %2219 }
 0x467   :  { %1960 = vst.msk [vmem:[#allocation3 + $0x150] sm:$0xff] %vm1945_vm7, %v1926_v19 }
 0x468   :  { %2267 = vst.msk [vmem:[#allocation3 + $0x8] sm:$0xff] %vm1945_vm7, %v2220_v20 }
 0x469   :  { %2147 = vrot.lane.b32.xlu1 %v5378_v3, %s4053_s16 }
 0x46c   :  { %2243 = vrot.lane.b32.xlu2 %v5384_v60, %s4054_s0  ;;  %v5597_v60 = vpop.f32.mrf.mxu1 }
 0x46d   :  { %2054 = vrot.lane.b32.xlu0 %v5406_v44, %s4052_s28 }
 0x46e   :  { %v2357_v10 = vld [vmem:[#allocation3 + $0x150] sm:$0xff]  ;;  %v2222_v7 = vpop.permute.xlu2 %2221 }
 0x46f   :  { %v2316_v2 = vld [vmem:[#allocation3 + $0x8] sm:$0xff]  ;;  %2509 = vmatmul.f32.gmra.mxu1 %v2357_v10  ;;  %v1733_v29 = vpop.permute.xlu0 %1732  ;;  %v2341_v10 = vld [vmem:[#allocation3 + $0xd0] sm:$0xff] }
 0x470   :  { %2532 = vmatmul.f32.vlgmr.msrb.gmra.mxu3 %v2316_v2  ;;  %1766 = vst.msk [vmem:[#allocation3 + $0x168] sm:$0xff] %vm1750_vm5, %v1733_v29 }
 0x471   :  { %2149 = vrot.lane.b32.xlu1 %v5400_v55, %s4053_s16  ;;  %1863 = vst.msk [vmem:[#allocation3 + $0x168] sm:$0xff] %vm1847_vm6, %v1830_v4 }
 0x474   :  { %2245 = vrot.lane.b32.xlu2 %v5404_v37, %s4054_s0 }
 0x475   :  { %2056 = vrot.lane.b32.xlu0 %v5432_v17, %s4052_s28  ;;  %v5606_v17 = vpop.f32.mrf.mxu1 }
 0x476   :  { %v2224_v3 = vpop.permute.xlu2 %2223 }
 0x477   :  { %v2029_v44 = vpop.permute.xlu0 %2028 }
 0x478   :  { %2075 = vst.msk [vmem:[#allocation3 + $0x20] sm:$0xff] %vm1750_vm5, %v2029_v44  ;;  %v2344_v44 = vld [vmem:[#allocation3 + $0xe8] sm:$0xff] }
 0x479   :  { %2151 = vrot.lane.b32.xlu1 %v5424_v18, %s4053_s16 }
 0x47b   :  { %v1928_v51 = vpop.permute.xlu1 %1927 }
 0x47c   :  { %1961 = vst.msk [vmem:[#allocation3 + $0x168] sm:$0xff] %vm1945_vm7, %v1928_v51  ;;  %2247 = vrot.lane.b32.xlu2 %v5435_v23, %s4054_s0 }
 0x47d   :  { %v5613_v48 = vpop.f32.mrf.mxu1 }
 0x47e   :  { %v2226_v55 = vpop.permute.xlu2 %2225 }
 0x47f   :  { %v2031_v37 = vpop.permute.xlu0 %2030 }
 0x480   :  { %2076 = vst.msk [vmem:[#allocation3 + $0x38] sm:$0xff] %vm1750_vm5, %v2031_v37 }
 0x481   :  { %2153 = vrot.lane.b32.xlu1 %v2106_v15, %s4053_s16 }
 0x483   :  { %v2126_v8 = vpop.permute.xlu1 %2125  ;;  %v2360_v13 = vld [vmem:[#allocation3 + $0x168] sm:$0xff] }
 0x484   :  { %2172 = vst.msk [vmem:[#allocation3 + $0x20] sm:$0xff] %vm1847_vm6, %v2126_v8  ;;  %2512 = vmatmul.f32.gmra.mxu1 %v2360_v13  ;;  %2249 = vrot.lane.b32.xlu2 %v2202_v0, %s4054_s0  ;;  %v2347_v13 = vld [vmem:[#allocation3 + $0x100] sm:$0xff] }
 0x485   :  { %2268 = vst.msk [vmem:[#allocation3 + $0x20] sm:$0xff] %vm1945_vm7, %v2222_v7  ;;  %v5619_v33 = vpop.f32.mrf.mxu1 }
 0x486   :  { %v2228_v18 = vpop.permute.xlu2 %2227 }
 0x487   :  { %v2033_v23 = vpop.permute.xlu0 %2032 }
 0x488   :  { %2077 = vst.msk [vmem:[#allocation3 + $0x50] sm:$0xff] %vm1750_vm5, %v2033_v23 }
 0x48b   :  { %v2128_v34 = vpop.permute.xlu1 %2127 }
 0x48c   :  { %2173 = vst.msk [vmem:[#allocation3 + $0x38] sm:$0xff] %vm1847_vm6, %v2128_v34  ;;  %3948 = vmatmul.msk.f32.vlgmr.msra.gmra.mxu1 %vm1596_vm3, %v2317_v61  ;;  %v2319_v14 = vld [vmem:[#allocation3 + $0x20] sm:$0xff] }
 0x48d   :  { %2269 = vst.msk [vmem:[#allocation3 + $0x38] sm:$0xff] %vm1945_vm7, %v2224_v3  ;;  %2535 = vmatmul.f32.gmra.mxu3 %v2319_v14  ;;  %v5627_v53 = vpop.f32.mrf.mxu1  ;;  %v2350_v14 = vld [vmem:[#allocation3 + $0x118] sm:$0xff] }
 0x48e   :  { %v2230_v39 = vpop.permute.xlu2 %2229 }
 0x48f   :  { %v2035_v40 = vpop.permute.xlu0 %2034 }
 0x490   :  { %2078 = vst.msk [vmem:[#allocation3 + $0x68] sm:$0xff] %vm1750_vm5, %v2035_v40 }
 0x493   :  { %v2130_v27 = vpop.permute.xlu1 %2129 }
 0x494   :  { %2174 = vst.msk [vmem:[#allocation3 + $0x50] sm:$0xff] %vm1847_vm6, %v2130_v27  ;;  %3949 = vmatmul.msk.f32.gmra.mxu1 %vm1596_vm3, %v2320_v62  ;;  %v2322_v21 = vld [vmem:[#allocation3 + $0x38] sm:$0xff] }
 0x495   :  { %2270 = vst.msk [vmem:[#allocation3 + $0x50] sm:$0xff] %vm1945_vm7, %v2226_v55  ;;  %2538 = vmatmul.f32.gmra.mxu3 %v2322_v21  ;;  %v5634_v63 = vpop.f32.mrf.mxu1 }
 0x496   :  { %v2232_v12 = vpop.permute.xlu2 %2231 }
 0x497   :  { %v2037_v49 = vpop.permute.xlu0 %2036 }
 0x498   :  { %2079 = vst.msk [vmem:[#allocation3 + $0x80] sm:$0xff] %vm1750_vm5, %v2037_v49  ;;  %v2353_v49 = vld [vmem:[#allocation3 + $0x130] sm:$0xff] }
 0x49b   :  { %v2132_v5 = vpop.permute.xlu1 %2131 }
 0x49c   :  { %2175 = vst.msk [vmem:[#allocation3 + $0x68] sm:$0xff] %vm1847_vm6, %v2132_v5  ;;  %3950 = vmatmul.msk.f32.gmra.mxu1 %vm1596_vm3, %v2323_v30  ;;  %v2325_v59 = vld [vmem:[#allocation3 + $0x50] sm:$0xff] }
 0x49d   :  { %2271 = vst.msk [vmem:[#allocation3 + $0x68] sm:$0xff] %vm1945_vm7, %v2228_v18  ;;  %2541 = vmatmul.f32.gmra.mxu3 %v2325_v59  ;;  %v5641_v16 = vpop.f32.mrf.mxu1  ;;  %v2356_v59 = vld [vmem:[#allocation3 + $0x148] sm:$0xff] }
 0x49e   :  { %v2234_v43 = vpop.permute.xlu2 %2233 }
 0x49f   :  { %v2039_v35 = vpop.permute.xlu0 %2038 }
 0x4a0   :  { %2080 = vst.msk [vmem:[#allocation3 + $0x98] sm:$0xff] %vm1750_vm5, %v2039_v35 }
 0x4a3   :  { %v2134_v42 = vpop.permute.xlu1 %2133 }
 0x4a4   :  { %2176 = vst.msk [vmem:[#allocation3 + $0x80] sm:$0xff] %vm1847_vm6, %v2134_v42  ;;  %3951 = vmatmul.msk.f32.gmra.mxu1 %vm1596_vm3, %v2326_v22  ;;  %v2328_v36 = vld [vmem:[#allocation3 + $0x68] sm:$0xff] }
 0x4a5   :  { %2272 = vst.msk [vmem:[#allocation3 + $0x80] sm:$0xff] %vm1945_vm7, %v2230_v39  ;;  %2544 = vmatmul.f32.gmra.mxu3 %v2328_v36  ;;  %v5647_v28 = vpop.f32.mrf.mxu1 }
 0x4a6   :  { %v2236_v9 = vpop.permute.xlu2 %2235 }
 0x4a7   :  { %v2041_v25 = vpop.permute.xlu0 %2040 }
 0x4a8   :  { %2081 = vst.msk [vmem:[#allocation3 + $0xb0] sm:$0xff] %vm1750_vm5, %v2041_v25 }
 0x4ab   :  { %v2136_v38 = vpop.permute.xlu1 %2135 }
 0x4ac   :  { %2177 = vst.msk [vmem:[#allocation3 + $0x98] sm:$0xff] %vm1847_vm6, %v2136_v38  ;;  %3952 = vmatmul.msk.f32.gmra.mxu1 %vm1596_vm3, %v2329_v46  ;;  %v2331_v1 = vld [vmem:[#allocation3 + $0x80] sm:$0xff]  ;;  %v2362_v38 = vld [vmem:[#allocation3 + $0x178] sm:$0xff] }
 0x4ad   :  { %2273 = vst.msk [vmem:[#allocation3 + $0x98] sm:$0xff] %vm1945_vm7, %v2232_v12  ;;  %2547 = vmatmul.f32.gmra.mxu3 %v2331_v1  ;;  %v5653_v32 = vpop.f32.mrf.mxu1 }
 0x4ae   :  { %v2238_v26 = vpop.permute.xlu2 %2237 }
 0x4af   :  { %v2043_v50 = vpop.permute.xlu0 %2042 }
 0x4b0   :  { %2082 = vst.msk [vmem:[#allocation3 + $0xc8] sm:$0xff] %vm1750_vm5, %v2043_v50 }
 0x4b3   :  { %v2138_v6 = vpop.permute.xlu1 %2137 }
 0x4b4   :  { %2178 = vst.msk [vmem:[#allocation3 + $0xb0] sm:$0xff] %vm1847_vm6, %v2138_v6  ;;  %3953 = vmatmul.msk.f32.gmra.mxu1 %vm1596_vm3, %v2332_v47  ;;  %v2334_v45 = vld [vmem:[#allocation3 + $0x98] sm:$0xff] }
 0x4b5   :  { %2274 = vst.msk [vmem:[#allocation3 + $0xb0] sm:$0xff] %vm1945_vm7, %v2234_v43  ;;  %2550 = vmatmul.f32.gmra.mxu3 %v2334_v45  ;;  %v5659_v11 = vpop.f32.mrf.mxu1  ;;  %v2359_v43 = vld [vmem:[#allocation3 + $0x160] sm:$0xff] }
 0x4b6   :  { %v2240_v58 = vpop.permute.xlu2 %2239 }
 0x4b7   :  { %v2045_v41 = vpop.permute.xlu0 %2044 }
 0x4b8   :  { %2083 = vst.msk [vmem:[#allocation3 + $0xe0] sm:$0xff] %vm1750_vm5, %v2045_v41 }
 0x4bb   :  { %v2140_v19 = vpop.permute.xlu1 %2139 }
 0x4bc   :  { %2179 = vst.msk [vmem:[#allocation3 + $0xc8] sm:$0xff] %vm1847_vm6, %v2140_v19  ;;  %3954 = vmatmul.msk.f32.gmra.mxu1 %vm1596_vm3, %v2335_v54  ;;  %v2337_v57 = vld [vmem:[#allocation3 + $0xb0] sm:$0xff] }
 0x4bd   :  { %2275 = vst.msk [vmem:[#allocation3 + $0xc8] sm:$0xff] %vm1945_vm7, %v2236_v9  ;;  %2553 = vmatmul.f32.gmra.mxu3 %v2337_v57  ;;  %v5667_v55 = vpop.f32.mrf.mxu1 }
 0x4be   :  { %v2242_v7 = vpop.permute.xlu2 %2241 }
 0x4bf   :  { %v2047_v4 = vpop.permute.xlu0 %2046 }
 0x4c0   :  { %2084 = vst.msk [vmem:[#allocation3 + $0xf8] sm:$0xff] %vm1750_vm5, %v2047_v4 }
 0x4c3   :  { %v2142_v31 = vpop.permute.xlu1 %2141 }
 0x4c4   :  { %2180 = vst.msk [vmem:[#allocation3 + $0xe0] sm:$0xff] %vm1847_vm6, %v2142_v31  ;;  %3955 = vmatmul.msk.f32.gmra.mxu1 %vm1596_vm3, %v2338_v52  ;;  %v2340_v56 = vld [vmem:[#allocation3 + $0xc8] sm:$0xff] }
 0x4c5   :  { %2276 = vst.msk [vmem:[#allocation3 + $0xe0] sm:$0xff] %vm1945_vm7, %v2238_v26  ;;  %2556 = vmatmul.f32.gmra.mxu3 %v2340_v56  ;;  %v5674_v18 = vpop.f32.mrf.mxu1 }
 0x4c6   :  { %v2244_v37 = vpop.permute.xlu2 %2243 }
 0x4c7   :  { %v2049_v20 = vpop.permute.xlu0 %2048 }
 0x4c8   :  { %2085 = vst.msk [vmem:[#allocation3 + $0x110] sm:$0xff] %vm1750_vm5, %v2049_v20 }
 0x4cb   :  { %v2144_v24 = vpop.permute.xlu1 %2143 }
 0x4cc   :  { %2181 = vst.msk [vmem:[#allocation3 + $0xf8] sm:$0xff] %vm1847_vm6, %v2144_v24  ;;  %3956 = vmatmul.msk.f32.gmra.mxu1 %vm1596_vm3, %v2341_v10  ;;  %v2343_v2 = vld [vmem:[#allocation3 + $0xe0] sm:$0xff] }
 0x4cd   :  { %2277 = vst.msk [vmem:[#allocation3 + $0xf8] sm:$0xff] %vm1945_vm7, %v2240_v58  ;;  %2559 = vmatmul.f32.gmra.mxu3 %v2343_v2  ;;  %v5700_v58 = vld [vmem:[%s6270_s4] ss:$0 sm:$0xff] }
 0x4ce   :  { %v2246_v34 = vpop.permute.xlu2 %2245  ;;  %v2487_v52 = vadd.f32 %v5700_v58, %v5641_v16  ;;  %v2484_v56 = vadd.f32 %v5700_v58, %v5634_v63  ;;  %v2481_v24 = vadd.f32 %v5700_v58, %v5627_v53  ;;  %v2490_v10 = vadd.f32 %v5700_v58, %v5647_v28 }
 0x4cf   :  { %v2051_v29 = vpop.permute.xlu0 %2050  ;;  %v2475_v16 = vadd.f32 %v5700_v58, %v5613_v48  ;;  %v2472_v53 = vadd.f32 %v5700_v58, %v5606_v17 }
 0x4d0   :  { %2086 = vst.msk [vmem:[#allocation3 + $0x128] sm:$0xff] %vm1750_vm5, %v2051_v29  ;;  %v2478_v29 = vadd.f32 %v5700_v58, %v5619_v33 }
 0x4d3   :  { %v2146_v3 = vpop.permute.xlu1 %2145  ;;  %v5680_v39 = vpop.f32.mrf.mxu1 }
 0x4d4   :  { %2182 = vst.msk [vmem:[#allocation3 + $0x110] sm:$0xff] %vm1847_vm6, %v2146_v3  ;;  %3957 = vmatmul.msk.f32.gmra.mxu1 %vm1596_vm3, %v2344_v44  ;;  %v2346_v51 = vld [vmem:[#allocation3 + $0xf8] sm:$0xff] }
 0x4d5   :  { %2278 = vst.msk [vmem:[#allocation3 + $0x110] sm:$0xff] %vm1945_vm7, %v2242_v7  ;;  %2562 = vmatmul.f32.gmra.mxu3 %v2346_v51 }
 0x4d6   :  { %v2248_v62 = vpop.permute.xlu2 %2247 }
 0x4d7   :  { %v2053_v15 = vpop.permute.xlu0 %2052 }
 0x4d8   :  { %2087 = vst.msk [vmem:[#allocation3 + $0x140] sm:$0xff] %vm1750_vm5, %v2053_v15 }
 0x4db   :  { %v2148_v8 = vpop.permute.xlu1 %2147 }
 0x4dc   :  { %2183 = vst.msk [vmem:[#allocation3 + $0x128] sm:$0xff] %vm1847_vm6, %v2148_v8  ;;  %3958 = vmatmul.msk.f32.gmra.mxu1 %vm1596_vm3, %v2347_v13  ;;  %v2349_v0 = vld [vmem:[#allocation3 + $0x110] sm:$0xff] }
 0x4dd   :  { %2279 = vst.msk [vmem:[#allocation3 + $0x128] sm:$0xff] %vm1945_vm7, %v2244_v37  ;;  %2565 = vmatmul.f32.gmra.mxu3 %v2349_v0 }
 0x4de   :  { %v2250_v35 = vpop.permute.xlu2 %2249 }
 0x4df   :  { %v2055_v23 = vpop.permute.xlu0 %2054 }
 0x4e0   :  { %2088 = vst.msk [vmem:[#allocation3 + $0x158] sm:$0xff] %vm1750_vm5, %v2055_v23  ;;  %v5686_v5 = vpop.f32.mrf.mxu1 }
 0x4e3   :  { %v2150_v61 = vpop.permute.xlu1 %2149 }
 0x4e4   :  { %2184 = vst.msk [vmem:[#allocation3 + $0x140] sm:$0xff] %vm1847_vm6, %v2150_v61  ;;  %3959 = vmatmul.msk.f32.gmra.mxu1 %vm1596_vm3, %v2350_v14  ;;  %v2352_v40 = vld [vmem:[#allocation3 + $0x128] sm:$0xff] }
 0x4e5   :  { %2280 = vst.msk [vmem:[#allocation3 + $0x140] sm:$0xff] %vm1945_vm7, %v2246_v34  ;;  %2568 = vmatmul.f32.gmra.mxu3 %v2352_v40 }
 0x4e7   :  { %v2057_v27 = vpop.permute.xlu0 %2056 }
 0x4e8   :  { %2089 = vst.msk [vmem:[#allocation3 + $0x170] sm:$0xff] %vm1750_vm5, %v2057_v27  ;;  %v2469_v27 = vadd.f32 %v5700_v58, %v5597_v60 }
 0x4eb   :  { %v2152_v21 = vpop.permute.xlu1 %2151 }
 0x4ec   :  { %2185 = vst.msk [vmem:[#allocation3 + $0x158] sm:$0xff] %vm1847_vm6, %v2152_v21  ;;  %3960 = vmatmul.msk.f32.gmra.mxu1 %vm1596_vm3, %v2353_v49  ;;  %v2355_v12 = vld [vmem:[#allocation3 + $0x140] sm:$0xff]  ;;  %v5691_v22 = vpop.f32.mrf.mxu1 }
 0x4ed   :  { %2281 = vst.msk [vmem:[#allocation3 + $0x158] sm:$0xff] %vm1945_vm7, %v2248_v62  ;;  %2571 = vmatmul.f32.gmra.mxu3 %v2355_v12 }
 0x4f3   :  { %v2154_v30 = vpop.permute.xlu1 %2153  ;;  %v2533_v46 = vpop.f32.mrf.mxu3 }
 0x4f4   :  { %2186 = vst.msk [vmem:[#allocation3 + $0x170] sm:$0xff] %vm1847_vm6, %v2154_v30  ;;  %3961 = vmatmul.msk.f32.gmra.mxu1 %vm1596_vm3, %v2356_v59  ;;  %v2358_v42 = vld [vmem:[#allocation3 + $0x158] sm:$0xff]  ;;  %v2534_v17 = vadd.f32 %v2533_v46, %v2469_v27 }
 0x4f5   :  { %2282 = vst.msk [vmem:[#allocation3 + $0x170] sm:$0xff] %vm1945_vm7, %v2250_v35  ;;  %2574 = vmatmul.f32.gmra.mxu3 %v2358_v42  ;;  %v2676_v46 = vld [vmem:[%s6278_s12] sm:$0xff] }
 0x4fc   :  { %3962 = vmatmul.msk.f32.gmra.mxu1 %vm1596_vm3, %v2359_v43  ;;  %v2361_v36 = vld [vmem:[#allocation3 + $0x170] sm:$0xff] }
 0x4fd   :  { %2577 = vmatmul.f32.gmra.mxu3 %v2361_v36 }
 0x501   :  { %v5694_v25 = vpop.f32.mrf.mxu1 }
 0x504   :  { %3963 = vmatmul.msk.f32.gmra.mxu1 %vm1596_vm3, %v2362_v38 }
 0x509   :  { %v2598_v1 = vpop.f32.mrf.mxu1 }
 0x50a   :  { %v2599_v35 = vadd.f32 %v2598_v1, %v2534_v17 }
 0x50c   :  { %v2646_v60 = vmax.f32 %v2599_v35, 0.0 }
 0x510   :  { %v2536_v9 = vpop.f32.mrf.mxu3 }
 0x511   :  { %v2601_v50 = vpop.f32.mrf.mxu1  ;;  %v2537_v34 = vadd.f32 %v2536_v9, %v2472_v53  ;;  %v2502_v53 = vadd.f32 %v5700_v58, %v5674_v18  ;;  %v2493_v18 = vadd.f32 %v5700_v58, %v5653_v32 }
 0x513   :  { %v2602_v12 = vadd.f32 %v2601_v50, %v2537_v34 }
 0x515   :  { %v2647_v36 = vmax.f32 %v2602_v12, 0.0 }
 0x518   :  { %v2539_v6 = vpop.f32.mrf.mxu3 }
 0x519   :  { %v2604_v47 = vpop.f32.mrf.mxu1  ;;  %v2540_v13 = vadd.f32 %v2539_v6, %v2475_v16 }
 0x51b   :  { %v2605_v48 = vadd.f32 %v2604_v47, %v2540_v13 }
 0x51d   :  { %v2648_v42 = vmax.f32 %v2605_v48, 0.0 }
 0x51f   :  { %v2663_v6 = vmax.f32 %v2647_v36, %v2648_v42 }
 0x520   :  { %v2542_v45 = vpop.f32.mrf.mxu3 }
 0x521   :  { %v2607_v41 = vpop.f32.mrf.mxu1  ;;  %v2543_v63 = vadd.f32 %v2542_v45, %v2478_v29  ;;  %v2662_v45 = vmax.f32 %v2646_v60, %v2647_v36  ;;  %v2684_v60 = vld [vmem:[%s6278_s12 + $0x40] sm:$0xff] }
 0x523   :  { %v2608_v61 = vadd.f32 %v2607_v41, %v2543_v63  ;;  %v2677_v41 = vld [vmem:[%s6278_s12 + $0x8] sm:$0xff]  ;;  %v2505_v63 = vadd.f32 %v5700_v58, %v5680_v39  ;;  %v2682_v39 = vld [vmem:[%s6278_s12 + $0x30] sm:$0xff] }
 0x525   :  { %v2649_v30 = vmax.f32 %v2608_v61, 0.0 }
 0x527   :  { %v2664_v38 = vmax.f32 %v2648_v42, %v2649_v30 }
 0x528   :  { %v2545_v26 = vpop.f32.mrf.mxu3 }
 0x529   :  { %v2610_v19 = vpop.f32.mrf.mxu1  ;;  %v2546_v3 = vadd.f32 %v2545_v26, %v2481_v24  ;;  %v2680_v24 = vld [vmem:[%s6278_s12 + $0x20] sm:$0xff] }
 0x52b   :  { %v2611_v28 = vadd.f32 %v2610_v19, %v2546_v3 }
 0x52d   :  { %v2650_v62 = vmax.f32 %v2611_v28, 0.0 }
 0x52f   :  { %v2665_v43 = vmax.f32 %v2649_v30, %v2650_v62 }
 0x530   :  { %v2548_v54 = vpop.f32.mrf.mxu3 }
 0x531   :  { %v2613_v57 = vpop.f32.mrf.mxu1  ;;  %v2549_v7 = vadd.f32 %v2548_v54, %v2484_v56  ;;  %v2678_v54 = vld [vmem:[%s6278_s12 + $0x10] sm:$0xff] }
 0x533   :  { %v2614_v15 = vadd.f32 %v2613_v57, %v2549_v7  ;;  %v2511_v7 = vadd.f32 %v5700_v58, %v5691_v22 }
 0x535   :  { %v2651_v33 = vmax.f32 %v2614_v15, 0.0  ;;  %v2514_v15 = vadd.f32 %v5700_v58, %v5694_v25  ;;  %v2496_v25 = vadd.f32 %v5700_v58, %v5659_v11  ;;  %v2683_v11 = vld [vmem:[%s6278_s12 + $0x38] sm:$0xff] }
 0x537   :  { %v2666_v59 = vmax.f32 %v2650_v62, %v2651_v33 }
 0x538   :  { %v2551_v4 = vpop.f32.mrf.mxu3 }
 0x539   :  { %v2616_v31 = vpop.f32.mrf.mxu1  ;;  %v2552_v20 = vadd.f32 %v2551_v4, %v2487_v52 }
 0x53b   :  { %v2617_v44 = vadd.f32 %v2616_v31, %v2552_v20  ;;  %v2679_v31 = vld [vmem:[%s6278_s12 + $0x18] sm:$0xff]  ;;  %v2508_v20 = vadd.f32 %v5700_v58, %v5686_v5 }
 0x53d   :  { %v2652_v0 = vmax.f32 %v2617_v44, 0.0 }
 0x53f   :  { %v2667_v21 = vmax.f32 %v2651_v33, %v2652_v0 }
 0x540   :  { %v2554_v2 = vpop.f32.mrf.mxu3 }
 0x541   :  { %v2555_v51 = vadd.f32 %v2554_v2, %v2490_v10  ;;  %v2619_v37 = vpop.f32.mrf.mxu1 }
 0x543   :  { %v2620_v8 = vadd.f32 %v2619_v37, %v2555_v51  ;;  %v2681_v37 = vld [vmem:[%s6278_s12 + $0x28] sm:$0xff] }
 0x545   :  { %v2653_v23 = vmax.f32 %v2620_v8, 0.0 }
 0x547   :  { %v2668_v14 = vmax.f32 %v2652_v0, %v2653_v23  ;;  %v2499_v23 = vadd.f32 %v5700_v58, %v5667_v55 }
 0x548   :  { %v5716_v40 = vpop.f32.mrf.mxu3 }
 0x549   :  { %v5720_v49 = vpop.f32.mrf.mxu1  ;;  %2736 = vmatpush.msra.mxu3 %v2668_v14 }
 0x54b   :  { %2737 = vmatpush.msra.mxu3 %v2667_v21  ;;  %v2558_v21 = vadd.f32 %v5716_v40, %v2493_v18 }
 0x54d   :  { %2738 = vmatpush.msra.mxu3 %v2666_v59  ;;  %v2623_v42 = vadd.f32 %v5720_v49, %v2558_v21  ;;  %v2686_v49 = vld [vmem:[%s6278_s12 + $0x50] sm:$0xff] }
 0x54f   :  { %2739 = vmatpush.msra.mxu3 %v2665_v43  ;;  %v2654_v36 = vmax.f32 %v2623_v42, 0.0 }
 0x550   :  { %v2560_v9 = vpop.f32.mrf.mxu3 }
 0x551   :  { %v2625_v47 = vpop.f32.mrf.mxu1  ;;  %2740 = vmatpush.msra.mxu3 %v2664_v38  ;;  %v2561_v48 = vadd.f32 %v2560_v9, %v2496_v25 }
 0x553   :  { %2741 = vmatpush.msra.mxu3 %v2663_v6  ;;  %v2626_v30 = vadd.f32 %v2625_v47, %v2561_v48  ;;  %v2687_v6 = vld [vmem:[%s6278_s12 + $0x58] sm:$0xff]  ;;  %v2685_v47 = vld [vmem:[%s6278_s12 + $0x48] sm:$0xff] }
 0x555   :  { %2742 = vmatpush.msra.mxu3 %v2662_v45  ;;  %v2655_v58 = vmax.f32 %v2626_v30, 0.0  ;;  %v2688_v45 = vld [vmem:[%s6278_s12 + $0x60] sm:$0xff] }
 0x556   :  { %3964 = vmatmul.msk.f32.vlgmr.msra.gmra.mxu3 %vm2696_vm8, %v2676_v46  ;;  %v2689_v46 = vld [vmem:[%s6278_s12 + $0x68] sm:$0xff] }
 0x557   :  { %v2669_v9 = vmax.f32 %v2654_v36, %v2655_v58 }
 0x558   :  { %v2563_v1 = vpop.f32.mrf.mxu3 }
 0x559   :  { %v2628_v50 = vpop.f32.mrf.mxu1  ;;  %v2564_v33 = vadd.f32 %v2563_v1, %v2499_v23  ;;  %v2690_v1 = vld [vmem:[%s6278_s12 + $0x70] sm:$0xff] }
 0x55b   :  { %v2629_v17 = vadd.f32 %v2628_v50, %v2564_v33  ;;  %v2691_v50 = vld [vmem:[%s6278_s12 + $0x78] sm:$0xff] }
 0x55d   :  { %v2656_v43 = vmax.f32 %v2629_v17, 0.0 }
 0x55e   :  { %3965 = vmatmul.msk.f32.gmra.mxu3 %vm2696_vm8, %v2677_v41  ;;  %v3346_v41 = vld [vmem:[%s6271_s5 + $0x238] sm:$0xff] }
 0x55f   :  { %v2670_v38 = vmax.f32 %v2655_v58, %v2656_v43  ;;  %3575 = vmatpush.msrb.mxu0 %v3346_v41 }
 0x560   :  { %v2566_v26 = vpop.f32.mrf.mxu3 }
 0x561   :  { %v2631_v19 = vpop.f32.mrf.mxu1  ;;  %v2567_v34 = vadd.f32 %v2566_v26, %v2502_v53  ;;  %v2692_v26 = vld [vmem:[%s6278_s12 + $0x80] sm:$0xff] }
 0x563   :  { %v2632_v62 = vadd.f32 %v2631_v19, %v2567_v34  ;;  %v2693_v19 = vld [vmem:[%s6278_s12 + $0x88] sm:$0xff] }
 0x565   :  { %v2657_v59 = vmax.f32 %v2632_v62, 0.0 }
 0x566   :  { %3966 = vmatmul.msk.f32.gmra.mxu3 %vm2696_vm8, %v2678_v54  ;;  %v2694_v54 = vld [vmem:[%s6278_s12 + $0x90] sm:$0xff] }
 0x567   :  { %v2671_v40 = vmax.f32 %v2656_v43, %v2657_v59 }
 0x568   :  { %v2569_v57 = vpop.f32.mrf.mxu3 }
 0x569   :  { %v2634_v4 = vpop.f32.mrf.mxu1  ;;  %v2570_v13 = vadd.f32 %v2569_v57, %v2505_v63 }
 0x56b   :  { %v2635_v14 = vadd.f32 %v2634_v4, %v2570_v13  ;;  %v2695_v4 = vld [vmem:[%s6278_s12 + $0x98] sm:$0xff] }
 0x56d   :  { %v2658_v12 = vmax.f32 %v2635_v14, 0.0 }
 0x56e   :  { %3967 = vmatmul.msk.f32.gmra.mxu3 %vm2696_vm8, %v2679_v31 }
 0x56f   :  { %v2672_v32 = vmax.f32 %v2657_v59, %v2658_v12 }
 0x570   :  { %v2572_v52 = vpop.f32.mrf.mxu3 }
 0x571   :  { %v2637_v56 = vpop.f32.mrf.mxu1  ;;  %v2573_v10 = vadd.f32 %v2572_v52, %v2508_v20 }
 0x573   :  { %v2638_v29 = vadd.f32 %v2637_v56, %v2573_v10  ;;  %v3345_v10 = vld [vmem:[%s6271_s5 + $0x230] sm:$0xff] }
 0x574   :  { %3576 = vmatpush.msrb.mxu0 %v3345_v10 }
 0x575   :  { %v2659_v5 = vmax.f32 %v2638_v29, 0.0 }
 0x576   :  { %3968 = vmatmul.msk.f32.gmra.mxu3 %vm2696_vm8, %v2680_v24 }
 0x577   :  { %v2673_v35 = vmax.f32 %v2658_v12, %v2659_v5 }
 0x578   :  { %v2575_v2 = vpop.f32.mrf.mxu3 }
 0x579   :  { %v2576_v3 = vadd.f32 %v2575_v2, %v2511_v7  ;;  %v2640_v44 = vpop.f32.mrf.mxu1 }
 0x57b   :  { %v2641_v51 = vadd.f32 %v2640_v44, %v2576_v3 }
 0x57d   :  { %v2660_v16 = vmax.f32 %v2641_v51, 0.0 }
 0x57e   :  { %3969 = vmatmul.msk.f32.gmra.mxu3 %vm2696_vm8, %v2681_v37 }
 0x57f   :  { %v2674_v22 = vmax.f32 %v2659_v5, %v2660_v16 }
 0x580   :  { %v2578_v8 = vpop.f32.mrf.mxu3 }
 0x581   :  { %v2579_v28 = vadd.f32 %v2578_v8, %v2514_v15  ;;  %v2643_v0 = vpop.f32.mrf.mxu1 }
 0x583   :  { %v2644_v61 = vadd.f32 %v2643_v0, %v2579_v28 }
 0x585   :  { %v2661_v27 = vmax.f32 %v2644_v61, 0.0 }
 0x586   :  { %3970 = vmatmul.msk.f32.gmra.mxu3 %vm2696_vm8, %v2682_v39 }
 0x587   :  { %v2675_v55 = vmax.f32 %v2660_v16, %v2661_v27 }
 0x589   :  { %2813 = vmatpush.msra.mxu2 %v2675_v55 }
 0x58b   :  { %2814 = vmatpush.msra.mxu2 %v2674_v22 }
 0x58d   :  { %2815 = vmatpush.msra.mxu2 %v2673_v35 }
 0x58e   :  { %3971 = vmatmul.msk.f32.gmra.mxu3 %vm2696_vm8, %v2683_v11 }
 0x58f   :  { %2816 = vmatpush.msra.mxu2 %v2672_v32 }
 0x591   :  { %2817 = vmatpush.msra.mxu2 %v2671_v40 }
 0x593   :  { %2818 = vmatpush.msra.mxu2 %v2670_v38 }
 0x595   :  { %2819 = vmatpush.msra.mxu2 %v2669_v9 }
 0x596   :  { %3972 = vmatmul.msk.f32.gmra.mxu3 %vm2696_vm8, %v2684_v60  ;;  %3974 = vmatmul.msk.f32.vlgmr.msra.gmra.mxu2 %vm2696_vm8, %v2686_v49 }
 0x59e   :  { %3975 = vmatmul.msk.f32.gmra.mxu2 %vm2696_vm8, %v2687_v6  ;;  %3973 = vmatmul.msk.f32.gmra.mxu3 %vm2696_vm8, %v2685_v47 }
 0x5a6   :  { %3976 = vmatmul.msk.f32.gmra.mxu2 %vm2696_vm8, %v2688_v45 }
 0x5ae   :  { %3977 = vmatmul.msk.f32.gmra.mxu2 %vm2696_vm8, %v2689_v46 }
 0x5b6   :  { %3978 = vmatmul.msk.f32.gmra.mxu2 %vm2696_vm8, %v2690_v1 }
 0x5be   :  { %3979 = vmatmul.msk.f32.gmra.mxu2 %vm2696_vm8, %v2691_v50 }
 0x5c6   :  { %3980 = vmatmul.msk.f32.gmra.mxu2 %vm2696_vm8, %v2692_v26 }
 0x5ce   :  { %3981 = vmatmul.msk.f32.gmra.mxu2 %vm2696_vm8, %v2693_v19 }
 0x5d6   :  { %3982 = vmatmul.msk.f32.gmra.mxu2 %vm2696_vm8, %v2694_v54 }
 0x5d9   :  { %v2744_v57 = vpop.f32.mrf.mxu3 }
 0x5de   :  { %3983 = vmatmul.msk.f32.gmra.mxu2 %vm2696_vm8, %v2695_v4 }
 0x5e1   :  { %v2747_v31 = vpop.f32.mrf.mxu3 }
 0x5e9   :  { %v2750_v52 = vpop.f32.mrf.mxu3 }
 0x5f1   :  { %v2753_v56 = vpop.f32.mrf.mxu3 }
 0x5f9   :  { %v5823_v20 = vpop.f32.mrf.mxu3 }
 0x601   :  { %v2759_v24 = vpop.f32.mrf.mxu3 }
 0x602   :  { %v2851_v7 = vmax.f32 %v2744_v57, %v2759_v24 }
 0x604   :  { %v2871_v2 = vrot.slane %v2851_v7, 2  ;;  %v2872_v29 = vrot.slane %v2851_v7, 4  ;;  %v2873_v3 = vrot.slane %v2851_v7, 6  ;;  %2897 = vst [vmem:[#allocation1] ss:$4 sm:$0xff] %v2851_v7 }
 0x606   :  { %2899 = vst [vmem:[#allocation1 + $0x1] ss:$4 sm:$0xff] %v2871_v2 }
 0x607   :  { %2901 = vst [vmem:[#allocation1 + $0x2] ss:$4 sm:$0xff] %v2872_v29 }
 0x608   :  { %2904 = vst [vmem:[#allocation1 + $0x20] ss:$4 sm:$0xff] %v2873_v3 }
 0x609   :  { %v2762_v44 = vpop.f32.mrf.mxu3 }
 0x60a   :  { %v2852_v51 = vmax.f32 %v2747_v31, %v2762_v44 }
 0x60c   :  { %v2874_v37 = vrot.slane %v2852_v51, 2  ;;  %v2875_v5 = vrot.slane %v2852_v51, 4  ;;  %2906 = vst [vmem:[#allocation1 + $0x21] ss:$4 sm:$0xff] %v2852_v51  ;;  %v2876_v16 = vrot.slane %v2852_v51, 6 }
 0x60e   :  { %2908 = vst [vmem:[#allocation1 + $0x22] ss:$4 sm:$0xff] %v2874_v37  ;;  %v2902_v63 = vld.sshfl [vmem:[#allocation1] sm:$0xff pattern:$0x73625140]  ;;  %v3344_v37 = vld [vmem:[%s6271_s5 + $0x228] sm:$0xff] }
 0x60f   :  { %2963 = vst.msk [vmem:[#allocation4] sm:$0x3f] %vm2962_vm9, %v2902_v63  ;;  %3577 = vmatpush.msrb.mxu0 %v3344_v37 }
 0x610   :  { %2910 = vst [vmem:[#allocation1] ss:$4 sm:$0xff] %v2875_v5 }
 0x611   :  { %v2765_v15 = vpop.f32.mrf.mxu3  ;;  %2911 = vst [vmem:[#allocation1 + $0x1] ss:$4 sm:$0xff] %v2876_v16 }
 0x612   :  { %v2853_v22 = vmax.f32 %v2750_v52, %v2765_v15 }
 0x614   :  { %v2877_v8 = vrot.slane %v2853_v22, 2  ;;  %v2878_v53 = vrot.slane %v2853_v22, 4  ;;  %2912 = vst [vmem:[#allocation1 + $0x2] ss:$4 sm:$0xff] %v2853_v22  ;;  %v2879_v13 = vrot.slane %v2853_v22, 6 }
 0x615   :  { %v2909_v28 = vld.sshfl [vmem:[#allocation1 + $0x20] sm:$0xff pattern:$0x73625140] }
 0x616   :  { %v2992_v0 = vld [vmem:[#allocation4 + $0x1] sm:$0xf]  ;;  %2964 = vst.msk [vmem:[#allocation4 + $0x8] sm:$0x3f] %vm2962_vm9, %v2909_v28  ;;  %v3342_v28 = vld [vmem:[%s6271_s5 + $0x218] sm:$0xff] }
 0x617   :  { %3008 = vrot.lane.b32.xlu0 %v2992_v0, %s4053_s16  ;;  %2914 = vst [vmem:[#allocation1 + $0x20] ss:$4 sm:$0xff] %v2877_v8  ;;  %v3041_v23 = vld [vmem:[#allocation4 + $0x2] sm:$0xf] }
 0x618   :  { %2915 = vst [vmem:[#allocation1 + $0x21] ss:$4 sm:$0xff] %v2878_v53  ;;  %v2975_v34 = vld [vmem:[#allocation4] sm:$0xf]  ;;  %v3343_v53 = vld [vmem:[%s6271_s5 + $0x220] sm:$0xff] }
 0x619   :  { %v2768_v61 = vpop.f32.mrf.mxu3  ;;  %v5831_v39 = vpop.f32.mrf.mxu2  ;;  %2916 = vst [vmem:[#allocation1 + $0x22] ss:$4 sm:$0xff] %v2879_v13  ;;  %3578 = vmatpush.msrb.mxu0 %v3343_v53 }
 0x61a   :  { %v2854_v25 = vmax.f32 %v2753_v56, %v2768_v61  ;;  %3049 = vst.msk [vmem:[#allocation5 + $0x4] sm:$0xf] %vm2983_vm10, %v3041_v23  ;;  %v3341_v23 = vld [vmem:[%s6271_s5 + $0x210] sm:$0xff] }
 0x61b   :  { %v2913_v33 = vld.sshfl [vmem:[#allocation1] sm:$0xff pattern:$0x73625140]  ;;  %2984 = vst.msk [vmem:[#allocation5] sm:$0xf] %vm2983_vm10, %v2975_v34  ;;  %3579 = vmatpush.msrb.mxu0 %v3342_v28 }
 0x61c   :  { %v2880_v14 = vrot.slane %v2854_v25, 2  ;;  %v2881_v27 = vrot.slane %v2854_v25, 4  ;;  %2965 = vst.msk [vmem:[#allocation4 + $0x10] sm:$0x3f] %vm2962_vm9, %v2913_v33  ;;  %v2882_v62 = vrot.slane %v2854_v25, 6 }
 0x61d   :  { %v2993_v18 = vld [vmem:[#allocation4 + $0x9] sm:$0xf]  ;;  %2918 = vst [vmem:[#allocation1] ss:$4 sm:$0xff] %v2854_v25  ;;  %3580 = vmatpush.msrb.mxu0 %v3341_v23  ;;  %v3283_v23 = vld [vmem:[%s6271_s5 + $0x40] sm:$0xff] }
 0x61e   :  { %v3058_v48 = vld [vmem:[#allocation4 + $0x8] sm:$0xf]  ;;  %3010 = vrot.lane.b32.xlu1 %v2993_v18, %s4053_s16  ;;  %2919 = vst [vmem:[#allocation1 + $0x1] ss:$4 sm:$0xff] %v2880_v14 }
 0x61f   :  { %3074 = vrot.lane.b32.xlu2 %v3058_v48, %s4053_s16  ;;  %v3106_v55 = vld [vmem:[#allocation4 + $0x9] sm:$0xf]  ;;  %2920 = vst [vmem:[#allocation1 + $0x2] ss:$4 sm:$0xff] %v2881_v27  ;;  %v3339_v27 = vld [vmem:[%s6271_s5 + $0x200] sm:$0xff] }
 0x620   :  { %v2917_v21 = vld.sshfl [vmem:[#allocation1 + $0x20] sm:$0xff pattern:$0x73625140]  ;;  %3114 = vst.msk [vmem:[#allocation5 + $0x8] sm:$0xf] %vm2983_vm10, %v3106_v55 }
 0x621   :  { %v5839_v17 = vpop.f32.mrf.mxu2  ;;  %2966 = vst.msk [vmem:[#allocation4 + $0x18] sm:$0x3f] %vm2962_vm9, %v2917_v21  ;;  %v2771_v12 = vpop.f32.mrf.mxu3  ;;  %v2976_v11 = vld [vmem:[#allocation4 + $0x8] sm:$0xf] }
 0x622   :  { %2922 = vst [vmem:[#allocation1 + $0x20] ss:$4 sm:$0xff] %v2882_v62  ;;  %v2855_v30 = vmax.f32 %v5823_v20, %v2771_v12  ;;  %v3122_v43 = vld [vmem:[#allocation4 + $0xa] sm:$0xf] }
 0x623   :  { %v3059_v59 = vld [vmem:[#allocation4 + $0x10] sm:$0xf]  ;;  %2985 = vst.msk [vmem:[#allocation5 + $0x14] sm:$0xf] %vm2983_vm10, %v2976_v11  ;;  %v3042_v36 = vld [vmem:[#allocation4 + $0xa] sm:$0xf] }
 0x624   :  { %v3235_v35 = vld [vmem:[#allocation4 + $0x12] sm:$0xf]  ;;  %3076 = vrot.lane.b32.xlu0 %v3059_v59, %s4053_s16  ;;  %2923 = vst [vmem:[#allocation1 + $0x21] ss:$4 sm:$0xff] %v2855_v30  ;;  %v2883_v58 = vrot.slane %v2855_v30, 2 }
 0x625   :  { %3243 = vst.msk [vmem:[#allocation5 + $0x10] sm:$0xf] %vm2983_vm10, %v3235_v35  ;;  %v2994_v42 = vld [vmem:[#allocation4 + $0x11] sm:$0xf] }
 0x626   :  { %3012 = vrot.lane.b32.xlu1 %v2994_v42, %s4053_s16  ;;  %v2921_v32 = vld.sshfl [vmem:[#allocation1] sm:$0xff pattern:$0x73625140]  ;;  %2924 = vst [vmem:[#allocation1 + $0x22] ss:$4 sm:$0xff] %v2883_v58 }
 0x627   :  { %3138 = vrot.lane.b32.xlu2 %v3122_v43, %s4053_s16  ;;  %2967 = vst.msk [vmem:[#allocation4 + $0x20] sm:$0x3f] %vm2962_vm9, %v2921_v32  ;;  %v2977_v60 = vld [vmem:[#allocation4 + $0x10] sm:$0xf] }
 0x628   :  { %v3236_v40 = vld [vmem:[#allocation4 + $0x1a] sm:$0xf]  ;;  %v3123_v49 = vld [vmem:[#allocation4 + $0x12] sm:$0xf]  ;;  %3050 = vst.msk [vmem:[#allocation5 + $0x18] sm:$0xf] %vm2983_vm10, %v3042_v36 }
 0x629   :  { %v5849_v38 = vpop.f32.mrf.mxu2  ;;  %3244 = vst.msk [vmem:[#allocation5 + $0x24] sm:$0xf] %vm2983_vm10, %v3236_v40  ;;  %v2978_v9 = vld [vmem:[#allocation4 + $0x18] sm:$0xf]  ;;  %v3187_v6 = vld [vmem:[#allocation4 + $0x11] sm:$0xf] }
 0x62a   :  { %2987 = vst.msk [vmem:[#allocation5 + $0x3c] sm:$0xf] %vm2983_vm10, %v2978_v9  ;;  %v3107_v47 = vld [vmem:[#allocation4 + $0x11] sm:$0xf]  ;;  %v2995_v45 = vld [vmem:[#allocation4 + $0x19] sm:$0xf] }
 0x62b   :  { %2986 = vst.msk [vmem:[#allocation5 + $0x28] sm:$0xf] %vm2983_vm10, %v2977_v60  ;;  %v3172_v46 = vld [vmem:[#allocation4 + $0x18] sm:$0xf]  ;;  %v3171_v1 = vld [vmem:[#allocation4 + $0x10] sm:$0xf] }
 0x62c   :  { %3140 = vrot.lane.b32.xlu0 %v3123_v49, %s4053_s16  ;;  %3115 = vst.msk [vmem:[#allocation5 + $0x1c] sm:$0xf] %vm2983_vm10, %v3107_v47  ;;  %v3043_v50 = vld [vmem:[#allocation4 + $0x12] sm:$0xf]  ;;  %v3044_v41 = vld [vmem:[#allocation4 + $0x1a] sm:$0xf] }
 0x62d   :  { %3180 = vst.msk [vmem:[#allocation5 + $0x20] sm:$0xf] %vm2983_vm10, %v3172_v46  ;;  %v2925_v19 = vld.sshfl [vmem:[#allocation1 + $0x20] sm:$0xff pattern:$0x73625140]  ;;  %v3290_v46 = vld [vmem:[%s6271_s5 + $0x78] sm:$0xff] }
 0x62e   :  { %3203 = vrot.lane.b32.xlu1 %v3187_v6, %s4053_s16  ;;  %3179 = vst.msk [vmem:[#allocation5 + $0xc] sm:$0xf] %vm2983_vm10, %v3171_v1  ;;  %v3237_v54 = vld [vmem:[#allocation4 + $0x22] sm:$0xf]  ;;  %v3060_v57 = vld [vmem:[#allocation4 + $0x18] sm:$0xf]  ;;  %3451 = vmatpush.msrb.mxu3 %v3290_v46 }
 0x62f   :  { %3014 = vrot.lane.b32.xlu2 %v2995_v45, %s4053_s16  ;;  %2968 = vst.msk [vmem:[#allocation4 + $0x28] sm:$0x3f] %vm2962_vm9, %v2925_v19  ;;  %v3108_v4 = vld [vmem:[#allocation4 + $0x19] sm:$0xf]  ;;  %v3109_v52 = vld [vmem:[#allocation4 + $0x21] sm:$0xf] }
 0x630   :  { %3051 = vst.msk [vmem:[#allocation5 + $0x2c] sm:$0xf] %vm2983_vm10, %v3043_v50  ;;  %v3188_v31 = vld [vmem:[#allocation4 + $0x19] sm:$0xf]  ;;  %v3061_v56 = vld [vmem:[#allocation4 + $0x20] sm:$0xf] }
 0x631   :  { %v5860_v26 = vpop.f32.mrf.mxu2  ;;  %3052 = vst.msk [vmem:[#allocation5 + $0x40] sm:$0xf] %vm2983_vm10, %v3044_v41  ;;  %v3173_v20 = vld [vmem:[#allocation4 + $0x20] sm:$0xf]  ;;  %v3253_v41 = vld [vmem:[#allocation5 + $0x10] sm:$0xf] }
 0x632   :  { %3245 = vst.msk [vmem:[#allocation5 + $0x38] sm:$0xf] %vm2983_vm10, %v3237_v54 }
 0x633   :  { %3116 = vst.msk [vmem:[#allocation5 + $0x30] sm:$0xf] %vm2983_vm10, %v3108_v4  ;;  %v3124_v4 = vld [vmem:[#allocation4 + $0x1a] sm:$0xf] }
 0x634   :  { %3078 = vrot.lane.b32.xlu0 %v3060_v57, %s4053_s16  ;;  %3117 = vst.msk [vmem:[#allocation5 + $0x44] sm:$0xf] %vm2983_vm10, %v3109_v52  ;;  %v3288_v52 = vld [vmem:[%s6271_s5 + $0x68] sm:$0xff] }
 0x635   :  { %3181 = vst.msk [vmem:[#allocation5 + $0x34] sm:$0xf] %vm2983_vm10, %v3173_v20  ;;  %v3125_v20 = vld [vmem:[#allocation4 + $0x22] sm:$0xf] }
 0x636   :  { %3080 = vrot.lane.b32.xlu1 %v3061_v56, %s4053_s16  ;;  %v3238_v10 = vld [vmem:[#allocation4 + $0x2a] sm:$0xf] }
 0x637   :  { %3205 = vrot.lane.b32.xlu2 %v3188_v31, %s4053_s16  ;;  %v3174_v7 = vld [vmem:[#allocation4 + $0x28] sm:$0xf]  ;;  %3246 = vst.msk [vmem:[#allocation5 + $0x4c] sm:$0xf] %vm2983_vm10, %v3238_v10 }
 0x638   :  { %3182 = vst.msk [vmem:[#allocation5 + $0x48] sm:$0xf] %vm2983_vm10, %v3174_v7  ;;  %v3289_v31 = vld [vmem:[%s6271_s5 + $0x70] sm:$0xff]  ;;  %v3287_v7 = vld [vmem:[%s6271_s5 + $0x60] sm:$0xff] }
 0x639   :  { %v5873_v24 = vpop.f32.mrf.mxu2  ;;  %3452 = vmatpush.msrb.mxu3 %v3289_v31 }
 0x63b   :  { %3453 = vmatpush.msrb.mxu3 %v3288_v52 }
 0x63d   :  { %3454 = vmatpush.msrb.mxu3 %v3287_v7 }
 0x641   :  { %v2836_v2 = vpop.f32.mrf.mxu2 }
 0x642   :  { %v2856_v29 = vmax.f32 %v5831_v39, %v2836_v2  ;;  %v3340_v39 = vld [vmem:[%s6271_s5 + $0x208] sm:$0xff] }
 0x643   :  { %3581 = vmatpush.msrb.mxu0 %v3340_v39 }
 0x644   :  { %v2884_v3 = vrot.slane %v2856_v29, 2  ;;  %v2885_v44 = vrot.slane %v2856_v29, 4  ;;  %v2886_v51 = vrot.slane %v2856_v29, 6  ;;  %2926 = vst [vmem:[#allocation1] ss:$4 sm:$0xff] %v2856_v29  ;;  %v3286_v29 = vld [vmem:[%s6271_s5 + $0x58] sm:$0xff] }
 0x645   :  { %3582 = vmatpush.msrb.mxu0 %v3339_v27  ;;  %3455 = vmatpush.msrb.mxu3 %v3286_v29 }
 0x646   :  { %2927 = vst [vmem:[#allocation1 + $0x1] ss:$4 sm:$0xff] %v2884_v3  ;;  %v3322_v3 = vld [vmem:[%s6271_s5 + $0x178] sm:$0xff] }
 0x647   :  { %2928 = vst [vmem:[#allocation1 + $0x2] ss:$4 sm:$0xff] %v2885_v44  ;;  %3509 = vmatpush.msrb.mxu1 %v3322_v3  ;;  %v3259_v3 = vld [vmem:[#allocation5 + $0x38] sm:$0xf] }
 0x648   :  { %2930 = vst [vmem:[#allocation1 + $0x20] ss:$4 sm:$0xff] %v2886_v51  ;;  %v3189_v51 = vld [vmem:[#allocation4 + $0x21] sm:$0xf] }
 0x649   :  { %v2839_v5 = vpop.f32.mrf.mxu2 }
 0x64a   :  { %v2857_v16 = vmax.f32 %v5839_v17, %v2839_v5  ;;  %v3285_v5 = vld [vmem:[%s6271_s5 + $0x50] sm:$0xff] }
 0x64b   :  { %3456 = vmatpush.msrb.mxu3 %v3285_v5 }
 0x64c   :  { %v2887_v63 = vrot.slane %v2857_v16, 2  ;;  %v2888_v15 = vrot.slane %v2857_v16, 4  ;;  %2931 = vst [vmem:[#allocation1 + $0x21] ss:$4 sm:$0xff] %v2857_v16  ;;  %v2889_v22 = vrot.slane %v2857_v16, 6  ;;  %v3321_v16 = vld [vmem:[%s6271_s5 + $0x170] sm:$0xff] }
 0x64d   :  { %3510 = vmatpush.msrb.mxu1 %v3321_v16 }
 0x64e   :  { %v2929_v8 = vld.sshfl [vmem:[#allocation1] sm:$0xff pattern:$0x73625140]  ;;  %2932 = vst [vmem:[#allocation1 + $0x22] ss:$4 sm:$0xff] %v2887_v63 }
 0x64f   :  { %2969 = vst.msk [vmem:[#allocation4 + $0x30] sm:$0x3f] %vm2962_vm9, %v2929_v8  ;;  %v3320_v8 = vld [vmem:[%s6271_s5 + $0x168] sm:$0xff] }
 0x650   :  { %2934 = vst [vmem:[#allocation1] ss:$4 sm:$0xff] %v2888_v15  ;;  %3511 = vmatpush.msrb.mxu1 %v3320_v8 }
 0x651   :  { %v2842_v13 = vpop.f32.mrf.mxu2  ;;  %2935 = vst [vmem:[#allocation1 + $0x1] ss:$4 sm:$0xff] %v2889_v22  ;;  %v3284_v22 = vld [vmem:[%s6271_s5 + $0x48] sm:$0xff] }
 0x652   :  { %v2858_v0 = vmax.f32 %v5849_v38, %v2842_v13  ;;  %v3190_v13 = vld [vmem:[#allocation4 + $0x29] sm:$0xf]  ;;  %3457 = vmatpush.msrb.mxu3 %v3284_v22  ;;  %v3304_v22 = vld [vmem:[%s6271_s5 + $0xe8] sm:$0xff] }
 0x654   :  { %v2890_v34 = vrot.slane %v2858_v0, 2  ;;  %v2891_v61 = vrot.slane %v2858_v0, 4  ;;  %2936 = vst [vmem:[#allocation1 + $0x2] ss:$4 sm:$0xff] %v2858_v0  ;;  %v2892_v25 = vrot.slane %v2858_v0, 6  ;;  %3458 = vmatpush.msrb.mxu3 %v3283_v23 }
 0x655   :  { %v2933_v33 = vld.sshfl [vmem:[#allocation1 + $0x20] sm:$0xff pattern:$0x73625140] }
 0x656   :  { %v2996_v14 = vld [vmem:[#allocation4 + $0x31] sm:$0xf]  ;;  %2970 = vst.msk [vmem:[#allocation4 + $0x38] sm:$0x3f] %vm2962_vm9, %v2933_v33  ;;  %v3319_v33 = vld [vmem:[%s6271_s5 + $0x160] sm:$0xff] }
 0x657   :  { %3016 = vrot.lane.b32.xlu0 %v2996_v14, %s4053_s16  ;;  %2938 = vst [vmem:[#allocation1 + $0x20] ss:$4 sm:$0xff] %v2890_v34  ;;  %v3045_v18 = vld [vmem:[#allocation4 + $0x32] sm:$0xf]  ;;  %v3281_v14 = vld [vmem:[%s6271_s5 + $0x30] sm:$0xff]  ;;  %3512 = vmatpush.msrb.mxu1 %v3319_v33 }
 0x658   :  { %2939 = vst [vmem:[#allocation1 + $0x21] ss:$4 sm:$0xff] %v2891_v61  ;;  %v2979_v48 = vld [vmem:[#allocation4 + $0x30] sm:$0xf] }
 0x659   :  { %v2845_v62 = vpop.f32.mrf.mxu2  ;;  %2940 = vst [vmem:[#allocation1 + $0x22] ss:$4 sm:$0xff] %v2892_v25  ;;  %v3282_v25 = vld [vmem:[%s6271_s5 + $0x38] sm:$0xff] }
 0x65a   :  { %v2859_v55 = vmax.f32 %v5860_v26, %v2845_v62  ;;  %3053 = vst.msk [vmem:[#allocation5 + $0x54] sm:$0xf] %vm2983_vm10, %v3045_v18  ;;  %v3256_v26 = vld [vmem:[#allocation5 + $0x24] sm:$0xf]  ;;  %3459 = vmatpush.msrb.mxu3 %v3282_v25  ;;  %v3298_v33 = vld [vmem:[%s6271_s5 + $0xb8] sm:$0xff] }
 0x65b   :  { %v2937_v21 = vld.sshfl [vmem:[#allocation1] sm:$0xff pattern:$0x73625140]  ;;  %2988 = vst.msk [vmem:[#allocation5 + $0x50] sm:$0xf] %vm2983_vm10, %v2979_v48  ;;  %v3318_v48 = vld [vmem:[%s6271_s5 + $0x158] sm:$0xff] }
 0x65c   :  { %v2893_v17 = vrot.slane %v2859_v55, 2  ;;  %v2894_v12 = vrot.slane %v2859_v55, 4  ;;  %2971 = vst.msk [vmem:[#allocation4 + $0x40] sm:$0x3f] %vm2962_vm9, %v2937_v21  ;;  %v2895_v35 = vrot.slane %v2859_v55, 6  ;;  %v3280_v62 = vld [vmem:[%s6271_s5 + $0x28] sm:$0xff]  ;;  %3460 = vmatpush.msrb.mxu3 %v3281_v14  ;;  %3513 = vmatpush.msrb.mxu1 %v3318_v48 }
 0x65d   :  { %v3062_v30 = vld [vmem:[#allocation4 + $0x38] sm:$0xf]  ;;  %2942 = vst [vmem:[#allocation1] ss:$4 sm:$0xff] %v2859_v55  ;;  %v3317_v55 = vld [vmem:[%s6271_s5 + $0x150] sm:$0xff] }
 0x65e   :  { %v2997_v59 = vld [vmem:[#allocation4 + $0x39] sm:$0xf]  ;;  %3082 = vrot.lane.b32.xlu2 %v3062_v30, %s4053_s16  ;;  %2943 = vst [vmem:[#allocation1 + $0x1] ss:$4 sm:$0xff] %v2893_v17  ;;  %3461 = vmatpush.msrb.mxu3 %v3280_v62  ;;  %v3278_v30 = vld [vmem:[%s6271_s5 + $0x18] sm:$0xff]  ;;  %v3297_v14 = vld [vmem:[%s6271_s5 + $0xb0] sm:$0xff] }
 0x65f   :  { %3018 = vrot.lane.b32.xlu1 %v2997_v59, %s4053_s16  ;;  %v2980_v11 = vld [vmem:[#allocation4 + $0x38] sm:$0xf]  ;;  %2944 = vst [vmem:[#allocation1 + $0x2] ss:$4 sm:$0xff] %v2894_v12  ;;  %v3316_v12 = vld [vmem:[%s6271_s5 + $0x148] sm:$0xff]  ;;  %3514 = vmatpush.msrb.mxu1 %v3317_v55 }
 0x660   :  { %v2941_v42 = vld.sshfl [vmem:[#allocation1 + $0x20] sm:$0xff pattern:$0x73625140]  ;;  %2989 = vst.msk [vmem:[#allocation5 + $0x64] sm:$0xf] %vm2983_vm10, %v2980_v11  ;;  %v3277_v11 = vld [vmem:[%s6271_s5 + $0x10] sm:$0xff] }
 0x661   :  { %v2848_v43 = vpop.f32.mrf.mxu2  ;;  %2972 = vst.msk [vmem:[#allocation4 + $0x48] sm:$0x3f] %vm2962_vm9, %v2941_v42  ;;  %v3046_v60 = vld [vmem:[#allocation4 + $0x3a] sm:$0xf]  ;;  %3515 = vmatpush.msrb.mxu1 %v3316_v12 }
 0x662   :  { %v2860_v32 = vmax.f32 %v5873_v24, %v2848_v43  ;;  %2946 = vst [vmem:[#allocation1 + $0x20] ss:$4 sm:$0xff] %v2895_v35  ;;  %v3110_v10 = vld [vmem:[#allocation4 + $0x39] sm:$0xf] }
 0x663   :  { %v3063_v58 = vld [vmem:[#allocation4 + $0x40] sm:$0xf]  ;;  %3054 = vst.msk [vmem:[#allocation5 + $0x68] sm:$0xf] %vm2983_vm10, %v3046_v60  ;;  %v3126_v61 = vld [vmem:[#allocation4 + $0x3a] sm:$0xf] }
 0x664   :  { %v3239_v40 = vld [vmem:[#allocation4 + $0x42] sm:$0xf]  ;;  %v2896_v36 = vrot.slane %v2860_v32, 2  ;;  %3084 = vrot.lane.b32.xlu0 %v3063_v58, %s4053_s16  ;;  %2947 = vst [vmem:[#allocation1 + $0x21] ss:$4 sm:$0xff] %v2860_v32  ;;  %v3279_v17 = vld [vmem:[%s6271_s5 + $0x20] sm:$0xff] }
 0x665   :  { %3247 = vst.msk [vmem:[#allocation5 + $0x60] sm:$0xf] %vm2983_vm10, %v3239_v40  ;;  %v2998_v38 = vld [vmem:[#allocation4 + $0x41] sm:$0xf]  ;;  %3462 = vmatpush.msrb.mxu3 %v3279_v17  ;;  %v3315_v35 = vld [vmem:[%s6271_s5 + $0x140] sm:$0xff]  ;;  %v3314_v32 = vld [vmem:[%s6271_s5 + $0x138] sm:$0xff] }
 0x666   :  { %2948 = vst [vmem:[#allocation1 + $0x22] ss:$4 sm:$0xff] %v2896_v36  ;;  %v2945_v9 = vld.sshfl [vmem:[#allocation1] sm:$0xff pattern:$0x73625140]  ;;  %3516 = vmatpush.msrb.mxu1 %v3315_v35  ;;  %v3276_v40 = vld [vmem:[%s6271_s5 + $0x8] sm:$0xff] }
 0x667   :  { %3020 = vrot.lane.b32.xlu1 %v2998_v38, %s4053_s16  ;;  %2973 = vst.msk [vmem:[#allocation4 + $0x50] sm:$0x3f] %vm2962_vm9, %v2945_v9  ;;  %v2981_v47 = vld [vmem:[#allocation4 + $0x40] sm:$0xf]  ;;  %3463 = vmatpush.msrb.mxu3 %v3278_v30  ;;  %v3313_v36 = vld [vmem:[%s6271_s5 + $0x130] sm:$0xff]  ;;  %v3275_v9 = vld [vmem:[%s6271_s5] sm:$0xff] }
 0x668   :  { %v2999_v49 = vld [vmem:[#allocation4 + $0x49] sm:$0xf]  ;;  %v3175_v45 = vld [vmem:[#allocation4 + $0x40] sm:$0xf]  ;;  %2990 = vst.msk [vmem:[#allocation5 + $0x78] sm:$0xf] %vm2983_vm10, %v2981_v47  ;;  %3517 = vmatpush.msrb.mxu1 %v3314_v32 }
 0x669   :  { %v3240_v6 = vld [vmem:[#allocation4 + $0x4a] sm:$0xf]  ;;  %3022 = vrot.lane.b32.xlu2 %v2999_v49, %s4053_s16  ;;  %3183 = vst.msk [vmem:[#allocation5 + $0x5c] sm:$0xf] %vm2983_vm10, %v3175_v45  ;;  %v3047_v57 = vld [vmem:[#allocation4 + $0x42] sm:$0xf]  ;;  %3464 = vmatpush.msrb.mxu3 %v3277_v11 }
 0x66a   :  { %3248 = vst.msk [vmem:[#allocation5 + $0x74] sm:$0xf] %vm2983_vm10, %v3240_v6  ;;  %v2982_v1 = vld [vmem:[#allocation4 + $0x48] sm:$0xf]  ;;  %v3111_v2 = vld [vmem:[#allocation4 + $0x41] sm:$0xf]  ;;  %3518 = vmatpush.msrb.mxu1 %v3313_v36 }
 0x66b   :  { %v3064_v50 = vld [vmem:[#allocation4 + $0x48] sm:$0xf]  ;;  %2991 = vst.msk [vmem:[#allocation5 + $0x8c] sm:$0xf] %vm2983_vm10, %v2982_v1  ;;  %v3127_v39 = vld [vmem:[#allocation4 + $0x42] sm:$0xf]  ;;  %3465 = vmatpush.msrb.mxu3 %v3276_v40 }
 0x66c   :  { %3086 = vrot.lane.b32.xlu0 %v3064_v50, %s4053_s16  ;;  %v3048_v56 = vld [vmem:[#allocation4 + $0x4a] sm:$0xf]  ;;  %3055 = vst.msk [vmem:[#allocation5 + $0x7c] sm:$0xf] %vm2983_vm10, %v3047_v57  ;;  %v3191_v27 = vld [vmem:[#allocation4 + $0x41] sm:$0xf] }
 0x66d   :  { %v2949_v19 = vld.sshfl [vmem:[#allocation1 + $0x20] sm:$0xff pattern:$0x73625140]  ;;  %3056 = vst.msk [vmem:[#allocation5 + $0x90] sm:$0xf] %vm2983_vm10, %v3048_v56  ;;  %v3312_v60 = vld [vmem:[%s6271_s5 + $0x128] sm:$0xff]  ;;  %3466 = vmatpush.msrb.mxu3 %v3275_v9 }
 0x66e   :  { %v3065_v54 = vld [vmem:[#allocation4 + $0x50] sm:$0xf]  ;;  %3383 = vst [vmem:[#allocation1 + $0x20] ss:$2 sm:$0xff] %v3253_v41  ;;  %v3176_v44 = vld [vmem:[#allocation4 + $0x48] sm:$0xf]  ;;  %3519 = vmatpush.msrb.mxu1 %v3312_v60 }
 0x66f   :  { %3088 = vrot.lane.b32.xlu1 %v3065_v54, %s4053_s16  ;;  %3385 = vst [vmem:[#allocation1 + $0x21] ss:$2 sm:$0xff] %v3256_v26  ;;  %v3113_v24 = vld [vmem:[#allocation4 + $0x51] sm:$0xf]  ;;  %v3112_v37 = vld [vmem:[#allocation4 + $0x49] sm:$0xf] }
 0x670   :  { %2974 = vst.msk [vmem:[#allocation4 + $0x58] sm:$0x3f] %vm2962_vm9, %v2949_v19  ;;  %v3177_v63 = vld [vmem:[#allocation4 + $0x50] sm:$0xf]  ;;  %v3192_v21 = vld [vmem:[#allocation4 + $0x49] sm:$0xf] }
 0x671   :  { %3142 = vrot.lane.b32.xlu2 %v3124_v4, %s4053_s16  ;;  %3121 = vst.msk [vmem:[#allocation5 + $0x94] sm:$0xf] %vm2983_vm10, %v3113_v24  ;;  %v3241_v0 = vld [vmem:[#allocation4 + $0x52] sm:$0xf]  ;;  %v3128_v59 = vld [vmem:[#allocation4 + $0x4a] sm:$0xf] }
 0x672   :  { %3118 = vst.msk [vmem:[#allocation5 + $0x58] sm:$0xf] %vm2983_vm10, %v3110_v10  ;;  %v3129_v42 = vld [vmem:[#allocation4 + $0x52] sm:$0xf]  ;;  %v3311_v6 = vld [vmem:[%s6271_s5 + $0x120] sm:$0xff]  ;;  %v3309_v50 = vld [vmem:[%s6271_s5 + $0x110] sm:$0xff] }
 0x673   :  { %3119 = vst.msk [vmem:[#allocation5 + $0x6c] sm:$0xf] %vm2983_vm10, %v3111_v2  ;;  %v3193_v38 = vld [vmem:[#allocation4 + $0x51] sm:$0xf]  ;;  %3520 = vmatpush.msrb.mxu1 %v3311_v6  ;;  %v3308_v41 = vld [vmem:[%s6271_s5 + $0x108] sm:$0xff]  ;;  %v3307_v19 = vld [vmem:[%s6271_s5 + $0x100] sm:$0xff] }
 0x674   :  { %3144 = vrot.lane.b32.xlu0 %v3125_v20, %s4053_s16  ;;  %3184 = vst.msk [vmem:[#allocation5 + $0x70] sm:$0xf] %vm2983_vm10, %v3176_v44  ;;  %v3310_v1 = vld [vmem:[%s6271_s5 + $0x118] sm:$0xff]  ;;  %v3295_v62 = vld [vmem:[%s6271_s5 + $0xa0] sm:$0xff]  ;;  %v3293_v17 = vld [vmem:[%s6271_s5 + $0x90] sm:$0xff] }
 0x675   :  { %3120 = vst.msk [vmem:[#allocation5 + $0x80] sm:$0xf] %vm2983_vm10, %v3112_v37  ;;  %3521 = vmatpush.msrb.mxu1 %v3310_v1  ;;  %v3292_v30 = vld [vmem:[%s6271_s5 + $0x88] sm:$0xff]  ;;  %v3291_v11 = vld [vmem:[%s6271_s5 + $0x80] sm:$0xff]  ;;  %v3337_v32 = vld [vmem:[%s6271_s5 + $0x1f0] sm:$0xff] }
 0x676   :  { %v3394_v15 = vld.sshfl [vmem:[#allocation1 + $0x20] sm:$0xff pattern:$0x75316420]  ;;  %3185 = vst.msk [vmem:[#allocation5 + $0x84] sm:$0xf] %vm2983_vm10, %v3177_v63  ;;  %v3306_v63 = vld [vmem:[%s6271_s5 + $0xf8] sm:$0xff] }
 0x677   :  { %3207 = vrot.lane.b32.xlu1 %v3189_v51, %s4053_s16  ;;  %3984 = vmatmul.msk.f32.vlgmr.msrb.gmra.mxu0 %vm3442_vm11, %v3394_v15  ;;  %v3178_v53 = vld [vmem:[#allocation4 + $0x58] sm:$0xf]  ;;  %3249 = vst.msk [vmem:[#allocation5 + $0x88] sm:$0xf] %vm2983_vm10, %v3241_v0  ;;  %v3262_v51 = vld [vmem:[#allocation5 + $0x4c] sm:$0xf] }
 0x678   :  { %v3242_v34 = vld [vmem:[#allocation4 + $0x5a] sm:$0xf]  ;;  %3186 = vst.msk [vmem:[#allocation5 + $0x98] sm:$0xf] %vm2983_vm10, %v3178_v53  ;;  %3522 = vmatpush.msrb.mxu1 %v3309_v50  ;;  %v3305_v15 = vld [vmem:[%s6271_s5 + $0xf0] sm:$0xff]  ;;  %3480 = vmatpush.msra.mxu3 %v3306_v63  ;;  %v3336_v40 = vld [vmem:[%s6271_s5 + $0x1e8] sm:$0xff] }
 0x679   :  { %v3075_v28 = vpop.permute.xlu2 %3074  ;;  %3209 = vrot.lane.b32.xlu2 %v3190_v13, %s4053_s16  ;;  %3250 = vst.msk [vmem:[#allocation5 + $0x9c] sm:$0xf] %vm2983_vm10, %v3242_v34  ;;  %v3194_v49 = vld [vmem:[#allocation4 + $0x59] sm:$0xf]  ;;  %v3301_v0 = vld [vmem:[%s6271_s5 + $0xd0] sm:$0xff]  ;;  %v3300_v34 = vld [vmem:[%s6271_s5 + $0xc8] sm:$0xff] }
 0x67a   :  { %3098 = vst.msk [vmem:[#allocation5 + $0x4] sm:$0xf] %vm3032_vm12, %v3075_v28  ;;  %3523 = vmatpush.msrb.mxu1 %v3308_v41  ;;  %3481 = vmatpush.msra.mxu3 %v3305_v15  ;;  %v3303_v53 = vld [vmem:[%s6271_s5 + $0xe0] sm:$0xff]  ;;  %v3302_v28 = vld [vmem:[%s6271_s5 + $0xd8] sm:$0xff] }
 0x67b   :  { %v3335_v9 = vld [vmem:[%s6271_s5 + $0x1e0] sm:$0xff] }
 0x67c   :  { %3146 = vrot.lane.b32.xlu0 %v3126_v61, %s4053_s16  ;;  %3524 = vmatpush.msrb.mxu1 %v3307_v19  ;;  %v3299_v61 = vld [vmem:[%s6271_s5 + $0xc0] sm:$0xff]  ;;  %v3330_v19 = vld [vmem:[%s6271_s5 + $0x1b8] sm:$0xff] }
 0x67d   :  { %3482 = vmatpush.msra.mxu3 %v3304_v22  ;;  %v3331_v1 = vld [vmem:[%s6271_s5 + $0x1c0] sm:$0xff] }
 0x67e   :  { %v3323_v22 = vld [vmem:[%s6271_s5 + $0x180] sm:$0xff] }
 0x67f   :  { %3148 = vrot.lane.b32.xlu1 %v3127_v39, %s4053_s16  ;;  %3483 = vmatpush.msra.mxu3 %v3303_v53 }
 0x681   :  { %v3139_v18 = vpop.permute.xlu2 %3138  ;;  %3211 = vrot.lane.b32.xlu2 %v3191_v27, %s4053_s16  ;;  %3484 = vmatpush.msra.mxu3 %v3302_v28  ;;  %v3271_v28 = vld [vmem:[#allocation5 + $0x88] sm:$0xf] }
 0x682   :  { %3162 = vst.msk [vmem:[#allocation5 + $0x8] sm:$0xf] %vm3032_vm12, %v3139_v18  ;;  %v3296_v18 = vld [vmem:[%s6271_s5 + $0xa8] sm:$0xff] }
 0x683   :  { %3485 = vmatpush.msra.mxu3 %v3301_v0 }
 0x684   :  { %3213 = vrot.lane.b32.xlu0 %v3192_v21, %s4053_s16  ;;  %v3294_v21 = vld [vmem:[%s6271_s5 + $0x98] sm:$0xff] }
 0x685   :  { %3486 = vmatpush.msra.mxu3 %v3300_v34  ;;  %v3274_v34 = vld [vmem:[#allocation5 + $0x9c] sm:$0xf] }
 0x687   :  { %3150 = vrot.lane.b32.xlu1 %v3128_v59, %s4053_s16  ;;  %3487 = vmatpush.msra.mxu3 %v3299_v61 }
 0x689   :  { %v3015_v43 = vpop.permute.xlu2 %3014  ;;  %3152 = vrot.lane.b32.xlu2 %v3129_v42, %s4053_s16  ;;  %v3009_v58 = vpop.permute.xlu0 %3008  ;;  %3488 = vmatpush.msra.mxu3 %v3298_v33  ;;  %v3338_v42 = vld [vmem:[%s6271_s5 + $0x1f8] sm:$0xff] }
 0x68a   :  { %3036 = vst.msk [vmem:[#allocation5 + $0x3c] sm:$0xf] %vm3032_vm12, %v3015_v43 }
 0x68b   :  { %3033 = vst.msk [vmem:[#allocation5] sm:$0xf] %vm3032_vm12, %v3009_v58  ;;  %3489 = vmatpush.msra.mxu3 %v3297_v14 }
 0x68c   :  { %3215 = vrot.lane.b32.xlu0 %v3193_v38, %s4053_s16 }
 0x68d   :  { %3490 = vmatpush.msra.mxu3 %v3296_v18 }
 0x68f   :  { %3217 = vrot.lane.b32.xlu1 %v3194_v49, %s4053_s16  ;;  %3491 = vmatpush.msra.mxu3 %v3295_v62 }
 0x690   :  { %v3011_v47 = vpop.permute.xlu1 %3010 }
 0x691   :  { %v3206_v45 = vpop.permute.xlu2 %3205  ;;  %3034 = vst.msk [vmem:[#allocation5 + $0x14] sm:$0xf] %vm3032_vm12, %v3011_v47  ;;  %3492 = vmatpush.msra.mxu3 %v3294_v21  ;;  %v3334_v47 = vld [vmem:[%s6271_s5 + $0x1d8] sm:$0xff] }
 0x692   :  { %v3251_v46 = vld [vmem:[#allocation5] sm:$0xff]  ;;  %3228 = vst.msk [vmem:[#allocation5 + $0x20] sm:$0xf] %vm3032_vm12, %v3206_v45  ;;  %v3333_v45 = vld [vmem:[%s6271_s5 + $0x1d0] sm:$0xff]  ;;  %v3607_v21 = vld [vmem:[%s6273_s7 + $0x38] sm:$0xff] }
 0x693   :  { %3375 = vst [vmem:[#allocation1] ss:$2 sm:$0xff] %v3251_v46  ;;  %3493 = vmatpush.msra.mxu3 %v3293_v17  ;;  %v3332_v46 = vld [vmem:[%s6271_s5 + $0x1c8] sm:$0xff]  ;;  %v3606_v17 = vld [vmem:[%s6273_s7 + $0x30] sm:$0xff]  ;;  %3632 = vmatpush.msrb.mxu2 %v3607_v21 }
 0x695   :  { %3494 = vmatpush.msra.mxu3 %v3292_v30  ;;  %3633 = vmatpush.msrb.mxu2 %v3606_v17 }
 0x696   :  { %v3077_v26 = vpop.permute.xlu0 %3076 }
 0x697   :  { %3099 = vst.msk [vmem:[#allocation5 + $0x18] sm:$0xf] %vm3032_vm12, %v3077_v26  ;;  %3495 = vmatpush.msra.mxu3 %v3291_v11  ;;  %v3601_v11 = vld [vmem:[%s6273_s7 + $0x8] sm:$0xff] }
 0x698   :  { %v3013_v54 = vpop.permute.xlu1 %3012 }
 0x699   :  { %3035 = vst.msk [vmem:[#allocation5 + $0x28] sm:$0xf] %vm3032_vm12, %v3013_v54 }
 0x69e   :  { %v3254_v57 = vld [vmem:[#allocation5 + $0x14] sm:$0xff]  ;;  %v3141_v4 = vpop.permute.xlu0 %3140 }
 0x69f   :  { %3377 = vst [vmem:[#allocation1 + $0x1] ss:$2 sm:$0xff] %v3254_v57 }
 0x6a0   :  { %3163 = vst.msk [vmem:[#allocation5 + $0x1c] sm:$0xf] %vm3032_vm12, %v3141_v4  ;;  %v3204_v31 = vpop.permute.xlu1 %3203 }
 0x6a1   :  { %3227 = vst.msk [vmem:[#allocation5 + $0xc] sm:$0xf] %vm3032_vm12, %v3204_v31  ;;  %v3329_v31 = vld [vmem:[%s6271_s5 + $0x1b0] sm:$0xff] }
 0x6a6   :  { %v3079_v52 = vpop.permute.xlu0 %3078  ;;  %v3390_v56 = vld.sshfl [vmem:[#allocation1] sm:$0xff pattern:$0x75316420]  ;;  %v3391_v26 = vld.sshfl [vmem:[#allocation1 + $0x8] sm:$0xff pattern:$0x75316420] }
 0x6a7   :  { %3100 = vst.msk [vmem:[#allocation5 + $0x2c] sm:$0xf] %vm3032_vm12, %v3079_v52  ;;  %3467 = vmatmul.f32.vlgmr.msrb.gmra.mxu3 %v3390_v56  ;;  %v3255_v20 = vld [vmem:[#allocation5 + $0x1c] sm:$0xff] }
 0x6a8   :  { %v3081_v24 = vpop.permute.xlu1 %3080  ;;  %v3252_v10 = vld [vmem:[#allocation5 + $0x8] sm:$0xff]  ;;  %3381 = vst [vmem:[#allocation1 + $0x11] ss:$2 sm:$0xff] %v3255_v20  ;;  %3538 = vmatpush.msrb.mxu3 %v3338_v42  ;;  %v3328_v52 = vld [vmem:[%s6271_s5 + $0x1a8] sm:$0xff] }
 0x6a9   :  { %3101 = vst.msk [vmem:[#allocation5 + $0x40] sm:$0xf] %vm3032_vm12, %v3081_v24  ;;  %v3327_v24 = vld [vmem:[%s6271_s5 + $0x1a0] sm:$0xff] }
 0x6aa   :  { %3379 = vst [vmem:[#allocation1 + $0x10] ss:$2 sm:$0xff] %v3252_v10  ;;  %3539 = vmatpush.msrb.mxu3 %v3337_v32 }
 0x6ac   :  { %3540 = vmatpush.msrb.mxu3 %v3336_v40 }
 0x6ae   :  { %v3257_v7 = vld [vmem:[#allocation5 + $0x28] sm:$0xff]  ;;  %3541 = vmatpush.msrb.mxu3 %v3335_v9 }
 0x6af   :  { %3387 = vst [vmem:[#allocation1 + $0x30] ss:$2 sm:$0xff] %v3257_v7  ;;  %v3326_v7 = vld [vmem:[%s6271_s5 + $0x198] sm:$0xff] }
 0x6b0   :  { %v3260_v2 = vld [vmem:[#allocation5 + $0x3c] sm:$0xff]  ;;  %3542 = vmatpush.msrb.mxu3 %v3334_v47 }
 0x6b1   :  { %3389 = vst [vmem:[#allocation1 + $0x31] ss:$2 sm:$0xff] %v3260_v2  ;;  %v3392_v29 = vld.sshfl [vmem:[#allocation1 + $0x10] sm:$0xff pattern:$0x75316420] }
 0x6b2   :  { %v6055_v44 = vld.sshfl [vmem:[#allocation1 + $0x18] sm:$0xff pattern:$0x75316420]  ;;  %3525 = vmatmul.f32.vlgmr.msrb.gmra.mxu1 %v3392_v29  ;;  %3543 = vmatpush.msrb.mxu3 %v3333_v45 }
 0x6b3   :  { %3399 = vst [vmem:[#allocation1 + $0x10] ss:$2 sm:$0xff] %v3259_v3  ;;  %v3325_v3 = vld [vmem:[%s6271_s5 + $0x190] sm:$0xff] }
 0x6b4   :  { %3400 = vst [vmem:[#allocation1 + $0x11] ss:$2 sm:$0xff] %v3262_v51  ;;  %3544 = vmatpush.msrb.mxu3 %v3332_v46  ;;  %v3265_v51 = vld [vmem:[#allocation5 + $0x60] sm:$0xf] }
 0x6b6   :  { %3545 = vmatpush.msrb.mxu3 %v3331_v1 }
 0x6b8   :  { %v3083_v37 = vpop.permute.xlu2 %3082  ;;  %v3395_v5 = vld.sshfl [vmem:[#allocation1 + $0x30] sm:$0xff pattern:$0x75316420]  ;;  %3546 = vmatpush.msrb.mxu3 %v3330_v19  ;;  %v3396_v10 = vld.sshfl [vmem:[#allocation1 + $0x38] sm:$0xff pattern:$0x75316420] }
 0x6b9   :  { %3102 = vst.msk [vmem:[#allocation5 + $0x54] sm:$0xf] %vm3032_vm12, %v3083_v37  ;;  %3470 = vmatmul.f32.gmra.mxu3 %v3395_v5  ;;  %v3268_v5 = vld [vmem:[#allocation5 + $0x74] sm:$0xf] }
 0x6ba   :  { %3547 = vmatpush.msrb.mxu3 %v3329_v31 }
 0x6bb   :  { %v3407_v16 = vld.sshfl [vmem:[#allocation1 + $0x10] sm:$0xff pattern:$0x75316420] }
 0x6bc   :  { %3985 = vmatmul.msk.f32.gmra.mxu0 %vm3442_vm11, %v3407_v16  ;;  %3548 = vmatpush.msrb.mxu3 %v3328_v52  ;;  %v3324_v16 = vld [vmem:[%s6271_s5 + $0x188] sm:$0xff] }
 0x6be   :  { %3549 = vmatpush.msrb.mxu3 %v3327_v24 }
 0x6c0   :  { %3550 = vmatpush.msrb.mxu3 %v3326_v7 }
 0x6c2   :  { %3551 = vmatpush.msrb.mxu3 %v3325_v3 }
 0x6c3   :  { %v3023_v8 = vpop.permute.xlu2 %3022 }
 0x6c4   :  { %3040 = vst.msk [vmem:[#allocation5 + $0x8c] sm:$0xf] %vm3032_vm12, %v3023_v8  ;;  %3552 = vmatpush.msrb.mxu3 %v3324_v16 }
 0x6c6   :  { %3553 = vmatpush.msrb.mxu3 %v3323_v22 }
 0x6c9   :  { %v3017_v13 = vpop.permute.xlu0 %3016 }
 0x6ca   :  { %3037 = vst.msk [vmem:[#allocation5 + $0x50] sm:$0xf] %vm3032_vm12, %v3017_v13 }
 0x6cb   :  { %v3143_v23 = vpop.permute.xlu2 %3142 }
 0x6cc   :  { %3164 = vst.msk [vmem:[#allocation5 + $0x30] sm:$0xf] %vm3032_vm12, %v3143_v23 }
 0x6d1   :  { %v3019_v39 = vpop.permute.xlu1 %3018  ;;  %v3263_v25 = vld [vmem:[#allocation5 + $0x50] sm:$0xff] }
 0x6d2   :  { %3038 = vst.msk [vmem:[#allocation5 + $0x64] sm:$0xf] %vm3032_vm12, %v3019_v39 }
 0x6d3   :  { %3401 = vst [vmem:[#allocation1 + $0x20] ss:$2 sm:$0xff] %v3263_v25  ;;  %v3210_v27 = vpop.permute.xlu2 %3209 }
 0x6d4   :  { %3230 = vst.msk [vmem:[#allocation5 + $0x48] sm:$0xf] %vm3032_vm12, %v3210_v27 }
 0x6d6   :  { %v3085_v48 = vpop.permute.xlu0 %3084 }
 0x6d7   :  { %3103 = vst.msk [vmem:[#allocation5 + $0x68] sm:$0xf] %vm3032_vm12, %v3085_v48 }
 0x6d9   :  { %v3021_v55 = vpop.permute.xlu1 %3020 }
 0x6da   :  { %3039 = vst.msk [vmem:[#allocation5 + $0x78] sm:$0xf] %vm3032_vm12, %v3021_v55 }
 0x6db   :  { %v3212_v12 = vpop.permute.xlu2 %3211 }
 0x6dc   :  { %3231 = vst.msk [vmem:[#allocation5 + $0x5c] sm:$0xf] %vm3032_vm12, %v3212_v12  ;;  %v3604_v12 = vld [vmem:[%s6273_s7 + $0x20] sm:$0xff] }
 0x6de   :  { %v3266_v59 = vld [vmem:[#allocation5 + $0x64] sm:$0xff]  ;;  %v3087_v35 = vpop.permute.xlu0 %3086 }
 0x6df   :  { %3402 = vst [vmem:[#allocation1 + $0x21] ss:$2 sm:$0xff] %v3266_v59  ;;  %v3603_v59 = vld [vmem:[%s6273_s7 + $0x18] sm:$0xff] }
 0x6e0   :  { %3104 = vst.msk [vmem:[#allocation5 + $0x7c] sm:$0xf] %vm3032_vm12, %v3087_v35  ;;  %v3602_v35 = vld [vmem:[%s6273_s7 + $0x10] sm:$0xff] }
 0x6e1   :  { %v3089_v43 = vpop.permute.xlu1 %3088 }
 0x6e2   :  { %3105 = vst.msk [vmem:[#allocation5 + $0x90] sm:$0xf] %vm3032_vm12, %v3089_v43  ;;  %v3600_v43 = vld [vmem:[%s6273_s7] sm:$0xff] }
 0x6e3   :  { %v3153_v58 = vpop.permute.xlu2 %3152 }
 0x6e4   :  { %3169 = vst.msk [vmem:[#allocation5 + $0x94] sm:$0xf] %vm3032_vm12, %v3153_v58  ;;  %v4004_v58 = vld [vmem:[%s6272_s6] ss:$0 sm:$0xff] }
 0x6e6   :  { %v3145_v36 = vpop.permute.xlu0 %3144  ;;  %v3408_v38 = vld.sshfl [vmem:[#allocation1 + $0x20] sm:$0xff pattern:$0x75316420]  ;;  %v3409_v39 = vld.sshfl [vmem:[#allocation1 + $0x28] sm:$0xff pattern:$0x75316420] }
 0x6e7   :  { %v3269_v60 = vld [vmem:[#allocation5 + $0x78] sm:$0xff]  ;;  %3165 = vst.msk [vmem:[#allocation5 + $0x44] sm:$0xf] %vm3032_vm12, %v3145_v36  ;;  %3473 = vmatmul.f32.gmra.mxu3 %v3408_v38 }
 0x6e8   :  { %3414 = vst [vmem:[#allocation1 + $0x10] ss:$2 sm:$0xff] %v3269_v60 }
 0x6e9   :  { %v3272_v49 = vld [vmem:[#allocation5 + $0x8c] sm:$0xff]  ;;  %v3208_v6 = vpop.permute.xlu1 %3207 }
 0x6ea   :  { %3415 = vst [vmem:[#allocation1 + $0x11] ss:$2 sm:$0xff] %v3272_v49 }
 0x6eb   :  { %3229 = vst.msk [vmem:[#allocation5 + $0x34] sm:$0xf] %vm3032_vm12, %v3208_v6 }
 0x6ee   :  { %v3261_v50 = vld [vmem:[#allocation5 + $0x44] sm:$0xff]  ;;  %v3147_v41 = vpop.permute.xlu0 %3146 }
 0x6ef   :  { %3166 = vst.msk [vmem:[#allocation5 + $0x58] sm:$0xf] %vm3032_vm12, %v3147_v41 }
 0x6f0   :  { %3398 = vst [vmem:[#allocation1 + $0x1] ss:$2 sm:$0xff] %v3261_v50 }
 0x6f1   :  { %v3149_v54 = vpop.permute.xlu1 %3148  ;;  %v3421_v57 = vld.sshfl [vmem:[#allocation1 + $0x10] sm:$0xff pattern:$0x75316420]  ;;  %v3422_v33 = vld.sshfl [vmem:[#allocation1 + $0x18] sm:$0xff pattern:$0x75316420] }
 0x6f2   :  { %v3258_v4 = vld [vmem:[#allocation5 + $0x30] sm:$0xff]  ;;  %3167 = vst.msk [vmem:[#allocation5 + $0x6c] sm:$0xf] %vm3032_vm12, %v3149_v54  ;;  %3476 = vmatmul.f32.gmra.mxu3 %v3421_v57 }
 0x6f3   :  { %3397 = vst [vmem:[#allocation1] ss:$2 sm:$0xff] %v3258_v4 }
 0x6f4   :  { %v3584_v45 = vpop.f32.mrf.mxu0 }
 0x6f6   :  { %v3214_v56 = vpop.permute.xlu0 %3213  ;;  %v3264_v20 = vld [vmem:[#allocation5 + $0x58] sm:$0xff] }
 0x6f7   :  { %3232 = vst.msk [vmem:[#allocation5 + $0x70] sm:$0xf] %vm3032_vm12, %v3214_v56 }
 0x6f8   :  { %3403 = vst [vmem:[#allocation1 + $0x30] ss:$2 sm:$0xff] %v3264_v20 }
 0x6f9   :  { %v3151_v2 = vpop.permute.xlu1 %3150 }
 0x6fa   :  { %3168 = vst.msk [vmem:[#allocation5 + $0x80] sm:$0xf] %vm3032_vm12, %v3151_v2  ;;  %3496 = vmatmul.f32.vlgmr.msra.gmra.mxu3 %v3391_v26  ;;  %v3405_v29 = vld.sshfl [vmem:[#allocation1] sm:$0xff pattern:$0x75316420] }
 0x6fb   :  { %v3406_v37 = vld.sshfl [vmem:[#allocation1 + $0x8] sm:$0xff pattern:$0x75316420]  ;;  %3528 = vmatmul.f32.gmra.mxu1 %v3405_v29 }
 0x6fc   :  { %3412 = vst [vmem:[#allocation1] ss:$2 sm:$0xff] %v3265_v51 }
 0x6fd   :  { %3413 = vst [vmem:[#allocation1 + $0x1] ss:$2 sm:$0xff] %v3268_v5 }
 0x6fe   :  { %v3216_v63 = vpop.permute.xlu0 %3215  ;;  %v3267_v15 = vld [vmem:[#allocation5 + $0x6c] sm:$0xff] }
 0x6ff   :  { %3233 = vst.msk [vmem:[#allocation5 + $0x84] sm:$0xf] %vm3032_vm12, %v3216_v63 }
 0x700   :  { %3404 = vst [vmem:[#allocation1 + $0x31] ss:$2 sm:$0xff] %v3267_v15 }
 0x701   :  { %v3218_v8 = vpop.permute.xlu1 %3217 }
 0x702   :  { %3234 = vst.msk [vmem:[#allocation5 + $0x98] sm:$0xf] %vm3032_vm12, %v3218_v8  ;;  %3499 = vmatmul.f32.gmra.mxu3 %v3396_v10 }
 0x704   :  { %v3420_v53 = vld.sshfl [vmem:[#allocation1] sm:$0xff pattern:$0x75316420] }
 0x705   :  { %3986 = vmatmul.msk.f32.gmra.mxu0 %vm3442_vm11, %v3420_v53 }
 0x706   :  { %v3270_v13 = vld [vmem:[#allocation5 + $0x80] sm:$0xff] }
 0x707   :  { %v3410_v0 = vld.sshfl [vmem:[#allocation1 + $0x30] sm:$0xff pattern:$0x75316420]  ;;  %v3411_v23 = vld.sshfl [vmem:[#allocation1 + $0x38] sm:$0xff pattern:$0x75316420] }
 0x708   :  { %3418 = vst [vmem:[#allocation1 + $0x30] ss:$2 sm:$0xff] %v3271_v28  ;;  %3531 = vmatmul.f32.gmra.mxu1 %v3410_v0 }
 0x709   :  { %v3273_v61 = vld [vmem:[#allocation5 + $0x94] sm:$0xff]  ;;  %3419 = vst [vmem:[#allocation1 + $0x31] ss:$2 sm:$0xff] %v3274_v34 }
 0x70a   :  { %3502 = vmatmul.f32.gmra.mxu3 %v3409_v39  ;;  %3416 = vst [vmem:[#allocation1 + $0x20] ss:$2 sm:$0xff] %v3270_v13  ;;  %v4005_v13 = vld [vmem:[%s6274_s8] ss:$0 sm:$0xff] }
 0x70b   :  { %3417 = vst [vmem:[#allocation1 + $0x21] ss:$2 sm:$0xff] %v3273_v61 }
 0x710   :  { %v3425_v25 = vld.sshfl [vmem:[#allocation1 + $0x30] sm:$0xff pattern:$0x75316420] }
 0x711   :  { %3987 = vmatmul.msk.f32.gmra.mxu0 %vm3442_vm11, %v3425_v25 }
 0x712   :  { %3505 = vmatmul.f32.gmra.mxu3 %v3422_v33  ;;  %v3423_v14 = vld.sshfl [vmem:[#allocation1 + $0x20] sm:$0xff pattern:$0x75316420]  ;;  %v3424_v27 = vld.sshfl [vmem:[#allocation1 + $0x28] sm:$0xff pattern:$0x75316420] }
 0x713   :  { %3534 = vmatmul.f32.gmra.mxu1 %v3423_v14 }
 0x71a   :  { %3554 = vmatmul.f32.vlgmr.msrb.gmra.mxu3 %v6055_v44  ;;  %v3605_v44 = vld [vmem:[%s6273_s7 + $0x28] sm:$0xff] }
 0x71b   :  { %3634 = vmatpush.msrb.mxu2 %v3605_v44 }
 0x71d   :  { %3635 = vmatpush.msrb.mxu2 %v3604_v12 }
 0x71f   :  { %3636 = vmatpush.msrb.mxu2 %v3603_v59 }
 0x721   :  { %3637 = vmatpush.msrb.mxu2 %v3602_v35 }
 0x722   :  { %3557 = vmatmul.f32.gmra.mxu3 %v3406_v37 }
 0x723   :  { %3638 = vmatpush.msrb.mxu2 %v3601_v11 }
 0x725   :  { %3639 = vmatpush.msrb.mxu2 %v3600_v43 }
 0x72a   :  { %3560 = vmatmul.f32.gmra.mxu3 %v3411_v23  ;;  %v3468_v18 = vpop.f32.mrf.mxu3 }
 0x72b   :  { %v3469_v36 = vadd.f32 %v4004_v58, %v3468_v18 }
 0x72f   :  { %v3526_v9 = vpop.f32.mrf.mxu1 }
 0x732   :  { %3563 = vmatmul.f32.gmra.mxu3 %v3424_v27 }
 0x739   :  { %v3587_v4 = vpop.f32.mrf.mxu0 }
 0x73c   :  { %v3471_v48 = vpop.f32.mrf.mxu3 }
 0x73d   :  { %v3472_v6 = vadd.f32 %v4004_v58, %v3471_v48 }
 0x76a   :  { %v3474_v62 = vpop.f32.mrf.mxu3 }
 0x76b   :  { %v3475_v54 = vadd.f32 %v4004_v58, %v3474_v62 }
 0x775   :  { %v3477_v55 = vpop.f32.mrf.mxu3 }
 0x776   :  { %v3478_v7 = vadd.f32 %v4004_v58, %v3477_v55 }
 0x778   :  { %v3529_v41 = vpop.f32.mrf.mxu1 }
 0x77d   :  { %v3497_v30 = vpop.f32.mrf.mxu3 }
 0x77e   :  { %v3498_v38 = vadd.f32 %v3497_v30, %v3469_v36 }
 0x780   :  { %v3527_v60 = vadd.f32 %v3526_v9, %v3498_v38 }
 0x782   :  { %v3590_v29 = vpop.f32.mrf.mxu0 }
 0x785   :  { %v3500_v42 = vpop.f32.mrf.mxu3  ;;  %v3532_v20 = vpop.f32.mrf.mxu1 }
 0x786   :  { %v3501_v46 = vadd.f32 %v3500_v42, %v3472_v6 }
 0x788   :  { %v3530_v26 = vadd.f32 %v3529_v41, %v3501_v46 }
 0x78d   :  { %v3503_v32 = vpop.f32.mrf.mxu3 }
 0x78e   :  { %v3504_v31 = vadd.f32 %v3503_v32, %v3475_v54  ;;  %v3593_v22 = vpop.f32.mrf.mxu0 }
 0x790   :  { %v3533_v24 = vadd.f32 %v3532_v20, %v3504_v31  ;;  %v3535_v5 = vpop.f32.mrf.mxu1 }
 0x795   :  { %v3506_v40 = vpop.f32.mrf.mxu3 }
 0x796   :  { %v3507_v3 = vadd.f32 %v3506_v40, %v3478_v7 }
 0x798   :  { %v3536_v16 = vadd.f32 %v3535_v5, %v3507_v3 }
 0x79d   :  { %v3555_v49 = vpop.f32.mrf.mxu3 }
 0x79e   :  { %v3556_v47 = vadd.f32 %v3555_v49, %v3527_v60 }
 0x7a0   :  { %v3585_v1 = vadd.f32 %v3584_v45, %v3556_v47 }
 0x7a2   :  { %v3596_v50 = vmax.f32 %v3585_v1, 0.0 }
 0x7a4   :  { %3988 = vmatmul.msk.f32.vlgmr.msrb.gmra.mxu2 %vm3442_vm11, %v3596_v50 }
 0x7a5   :  { %v3558_v19 = vpop.f32.mrf.mxu3 }
 0x7a6   :  { %v3559_v57 = vadd.f32 %v3558_v19, %v3530_v26 }
 0x7a8   :  { %v3588_v52 = vadd.f32 %v3587_v4, %v3559_v57 }
 0x7aa   :  { %v3597_v56 = vmax.f32 %v3588_v52, 0.0 }
 0x7ac   :  { %3989 = vmatmul.msk.f32.gmra.mxu2 %vm3442_vm11, %v3597_v56 }
 0x7ad   :  { %v3561_v10 = vpop.f32.mrf.mxu3 }
 0x7ae   :  { %v3562_v2 = vadd.f32 %v3561_v10, %v3533_v24 }
 0x7b0   :  { %v3591_v51 = vadd.f32 %v3590_v29, %v3562_v2 }
 0x7b2   :  { %v3598_v37 = vmax.f32 %v3591_v51, 0.0 }
 0x7b4   :  { %3990 = vmatmul.msk.f32.gmra.mxu2 %vm3442_vm11, %v3598_v37 }
 0x7b5   :  { %v3564_v63 = vpop.f32.mrf.mxu3 }
 0x7b6   :  { %v3565_v15 = vadd.f32 %v3564_v63, %v3536_v16 }
 0x7b8   :  { %v3594_v8 = vadd.f32 %v3593_v22, %v3565_v15  ;;  %v3783_v22 = vld [vmem:[%s6275_s9 + $0x38] sm:$0xff] }
 0x7b9   :  { %3802 = vmatpush.msra.mxu1 %v3783_v22 }
 0x7ba   :  { %v3599_v53 = vmax.f32 %v3594_v8, 0.0  ;;  %v3782_v8 = vld [vmem:[%s6275_s9 + $0x30] sm:$0xff] }
 0x7bb   :  { %3803 = vmatpush.msra.mxu1 %v3782_v8 }
 0x7bc   :  { %3991 = vmatmul.msk.f32.gmra.mxu2 %vm3442_vm11, %v3599_v53 }
 0x827   :  { %v3641_v28 = vpop.f32.mrf.mxu2 }
 0x828   :  { %v6211_v0 = vadd.f32 %v4005_v13, %v3641_v28  ;;  %v4055_v28 = vmov 16.0  }
 0x82a   :  { %v3992_v23 = vmul.f32 -1.442695, %v6211_v0 }
 0x82c   :  { %4007 = vpow2.f32 %v3992_v23  ;;  %v3780_v23 = vld [vmem:[%s6275_s9 + $0x20] sm:$0xff] }
 0x82f   :  { %v3644_v34 = vpop.f32.mrf.mxu2 }
 0x830   :  { %v6214_v61 = vadd.f32 %v4005_v13, %v3644_v34 }
 0x832   :  { %v4008_v39 = vpop.eup %4007  ;;  %v3993_v25 = vmul.f32 -1.442695, %v6214_v61 }
 0x833   :  { %v3665_v33 = vadd.f32 1.0, %v4008_v39 }
 0x834   :  { %4009 = vpow2.f32 %v3993_v25  ;;  %v3779_v25 = vld [vmem:[%s6275_s9 + $0x18] sm:$0xff] }
 0x835   :  { %4011 = vrcp.f32 %v3665_v33  ;;  %v3680_v12 = vand.u32 2147483648, %v3665_v33  ;;  %v3678_v35 = vand.u32 2147483647, %v3665_v33  ;;  %vm3674_vm14 = vweird.f32 %v3665_v33 }
 0x837   :  { %v3647_v14 = vpop.f32.mrf.mxu2  ;;  %v3681_v40 = vor.u32 1.1754944e-38, %v3680_v12  ;;  %vm3679_vm0 = vcmp.eq.f32.partialorder %v3678_v35, 8.507059e+37 }
 0x838   :  { %v6217_v27 = vadd.f32 %v4005_v13, %v3647_v14  ;;  %v3778_v14 = vld [vmem:[%s6275_s9 + $0x10] sm:$0xff] }
 0x83a   :  { %v4010_v18 = vpop.eup %4009  ;;  %v3994_v48 = vmul.f32 -1.442695, %v6217_v27 }
 0x83b   :  { %v4012_v62 = vpop.eup %4011  ;;  %v3666_v55 = vadd.f32 1.0, %v4010_v18 }
 0x83c   :  { %4013 = vpow2.f32 %v3994_v48  ;;  %v3670_v21 = vmul.f32 %v4012_v62, %v3665_v33  ;;  %vm3675_vm13 = vweird.f32 %v4012_v62 }
 0x83d   :  { %4015 = vrcp.f32 %v3666_v55  ;;  %vm3676_vm15 = vmor %vm3674_vm14, %vm3675_vm13  ;;  %v3695_v49 = vand.u32 2147483648, %v3666_v55  ;;  %v3693_v47 = vand.u32 2147483647, %v3666_v55  ;;  %vm3689_vm2 = vweird.f32 %v3666_v55 }
 0x83e   :  { %v3671_v17 = vsub.f32 1.0, %v3670_v21  ;;  %v3777_v21 = vld [vmem:[%s6275_s9 + $0x8] sm:$0xff] }
 0x83f   :  { %v3650_v44 = vpop.f32.mrf.mxu2  ;;  %v3696_v41 = vor.u32 1.1754944e-38, %v3695_v49  ;;  %vm3694_vm4 = vcmp.eq.f32.partialorder %v3693_v47, 8.507059e+37 }
 0x840   :  { %v6220_v30 = vadd.f32 %v4005_v13, %v3650_v44  ;;  %v3672_v59 = vmul.f32 %v4012_v62, %v3671_v17  ;;  %v3781_v13 = vld [vmem:[%s6275_s9 + $0x28] sm:$0xff] }
 0x841   :  { %3804 = vmatpush.msra.mxu1 %v3781_v13 }
 0x842   :  { %v4014_v11 = vpop.eup %4013  ;;  %v3995_v42 = vmul.f32 -1.442695, %v6220_v30  ;;  %v3673_v43 = vadd.f32 %v4012_v62, %v3672_v59 }
 0x843   :  { %v4016_v32 = vpop.eup %4015  ;;  %v3667_v58 = vadd.f32 1.0, %v4014_v11  ;;  %3805 = vmatpush.msra.mxu1 %v3780_v23 }
 0x844   :  { %4017 = vpow2.f32 %v3995_v42  ;;  %v3677_v36 = vsel %vm3676_vm15, %v4012_v62, %v3673_v43  ;;  %v3685_v38 = vmul.f32 %v4016_v32, %v3666_v55  ;;  %vm3690_vm1 = vweird.f32 %v4016_v32 }
 0x845   :  { %4019 = vrcp.f32 %v3667_v58  ;;  %v3682_v9 = vsel %vm3679_vm0, %v3681_v40, %v3677_v36  ;;  %vm3691_vm3 = vmor %vm3689_vm2, %vm3690_vm1  ;;  %v3710_v4 = vand.u32 2147483648, %v3667_v58  ;;  %v3708_v52 = vand.u32 2147483647, %v3667_v58  ;;  %3806 = vmatpush.msra.mxu1 %v3779_v25 }
 0x846   :  { %3733 = vrot.lane.b32.xlu2 %v3682_v9, %s4053_s16  ;;  %v3686_v60 = vsub.f32 1.0, %v3685_v38  ;;  %vm3704_vm6 = vweird.f32 %v3667_v58  ;;  %vm3790_vm15 = vcmask 1041409  }
 0x847   :  { %v3711_v24 = vor.u32 1.1754944e-38, %v3710_v4  ;;  %vm3709_vm8 = vcmp.eq.f32.partialorder %v3708_v52, 8.507059e+37  ;;  %3807 = vmatpush.msra.mxu1 %v3778_v14 }
 0x848   :  { %v3687_v6 = vmul.f32 %v4016_v32, %v3686_v60 }
 0x849   :  { %3808 = vmatpush.msra.mxu1 %v3777_v21 }
 0x84a   :  { %v4018_v45 = vpop.eup %4017  ;;  %v3688_v46 = vadd.f32 %v4016_v32, %v3687_v6 }
 0x84b   :  { %v4020_v1 = vpop.eup %4019  ;;  %v3668_v50 = vadd.f32 1.0, %v4018_v45 }
 0x84c   :  { %v3692_v26 = vsel %vm3691_vm3, %v4016_v32, %v3688_v46  ;;  %v3700_v19 = vmul.f32 %v4020_v1, %v3667_v58  ;;  %vm3705_vm5 = vweird.f32 %v4020_v1 }
 0x84d   :  { %4021 = vrcp.f32 %v3668_v50  ;;  %v3697_v54 = vsel %vm3694_vm4, %v3696_v41, %v3692_v26  ;;  %vm3706_vm7 = vmor %vm3704_vm6, %vm3705_vm5  ;;  %v3725_v3 = vand.u32 2147483648, %v3668_v50  ;;  %v3723_v37 = vand.u32 2147483647, %v3668_v50 }
 0x84e   :  { %3735 = vrot.lane.b32.xlu0 %v3697_v54, %s4053_s16  ;;  %v3701_v57 = vsub.f32 1.0, %v3700_v19  ;;  %vm3719_vm10 = vweird.f32 %v3668_v50  ;;  %4023 = vrcp.f32 %v4055_v28  ;;  %v4006_v19 = vld [vmem:[%s6276_s10] ss:$0 sm:$0xff] }
 0x84f   :  { %v3726_v16 = vor.u32 1.1754944e-38, %v3725_v3  ;;  %vm3724_vm13 = vcmp.eq.f32.partialorder %v3723_v37, 8.507059e+37 }
 0x850   :  { %v3702_v31 = vmul.f32 %v4020_v1, %v3701_v57 }
 0x852   :  { %v3703_v56 = vadd.f32 %v4020_v1, %v3702_v31 }
 0x853   :  { %v4022_v20 = vpop.eup %4021 }
 0x854   :  { %v3707_v10 = vsel %vm3706_vm7, %v4020_v1, %v3703_v56  ;;  %v3715_v7 = vmul.f32 %v4022_v20, %v3668_v50  ;;  %vm3720_vm9 = vweird.f32 %v4022_v20  ;;  %v4024_v62 = vpop.eup %4023 }
 0x855   :  { %v3712_v2 = vsel %vm3709_vm8, %v3711_v24, %v3707_v10  ;;  %vm3721_vm12 = vmor %vm3719_vm10, %vm3720_vm9  ;;  %v3768_v12 = vmul.f32 16.0, %v4024_v62  ;;  %vm3772_vm14 = vweird.f32 %v4024_v62 }
 0x856   :  { %3737 = vrot.lane.b32.xlu1 %v3712_v2, %s4053_s16  ;;  %v3716_v29 = vsub.f32 1.0, %v3715_v7 }
 0x857   :  { %v3769_v32 = vsub.f32 1.0, %v3768_v12 }
 0x858   :  { %v3717_v51 = vmul.f32 %v4022_v20, %v3716_v29 }
 0x859   :  { %v3770_v9 = vmul.f32 %v4024_v62, %v3769_v32 }
 0x85a   :  { %v3718_v5 = vadd.f32 %v4022_v20, %v3717_v51 }
 0x85b   :  { %v3771_v6 = vadd.f32 %v4024_v62, %v3770_v9 }
 0x85c   :  { %v3722_v63 = vsel %vm3721_vm12, %v4022_v20, %v3718_v5 }
 0x85d   :  { %v3727_v15 = vsel %vm3724_vm13, %v3726_v16, %v3722_v63 }
 0x85e   :  { %3739 = vrot.lane.b32.xlu2 %v3727_v15, %s4053_s16 }
 0x8a0   :  { %v3734_v53 = vpop.permute.xlu2 %3733 }
 0x8a1   :  { %v3745_v34 = vmul.f32 %v3734_v53, %v6211_v0 }
 0x8a3   :  { %v3749_v18 = vsel %vm3442_vm11, %v3745_v34, 0.0 }
 0x8b8   :  { %v3740_v0 = vpop.permute.xlu2 %3739 }
 0x8b9   :  { %v3748_v44 = vmul.f32 %v3740_v0, %v6220_v30 }
 0x8bb   :  { %v3759_v43 = vsel %vm3442_vm11, %v3748_v44, 0.0 }
 0x8c0   :  { %v3736_v39 = vpop.permute.xlu0 %3735 }
 0x8c1   :  { %v3746_v33 = vmul.f32 %v3736_v39, %v6214_v61  ;;  %v3776_v61 = vld [vmem:[%s6275_s9] sm:$0xff] }
 0x8c2   :  { %3809 = vmatpush.msra.mxu1 %v3776_v61 }
 0x8c3   :  { %v3750_v48 = vsel %vm3442_vm11, %v3746_v33, 0.0 }
 0x8c4   :  { %v3751_v55 = vadd.f32 %v3750_v48, %v3749_v18 }
 0x8c6   :  { %v3752_v17 = vrot.slane %v3751_v55, 4 }
 0x8c8   :  { %v3753_v59 = vadd.f32 %v3752_v17, %v3751_v55  ;;  %v3738_v35 = vpop.permute.xlu1 %3737 }
 0x8c9   :  { %v3747_v11 = vmul.f32 %v3738_v35, %v6217_v27  ;;  %v3773_v27 = vsel %vm3772_vm14, %v4024_v62, %v3771_v6 }
 0x8ca   :  { %v3754_v42 = vrot.slane %v3753_v59, 2 }
 0x8cb   :  { %v3758_v58 = vsel %vm3442_vm11, %v3747_v11, 0.0 }
 0x8cc   :  { %v3760_v40 = vadd.f32 %v3759_v43, %v3758_v58  ;;  %v3755_v36 = vadd.f32 %v3754_v42, %v3753_v59 }
 0x8ce   :  { %v3761_v38 = vrot.slane %v3760_v40, 4  ;;  %v3756_v49 = vrot.slane %v3755_v36, 1 }
 0x8d0   :  { %v3762_v60 = vadd.f32 %v3761_v38, %v3760_v40  ;;  %v3757_v45 = vadd.f32 %v3756_v49, %v3755_v36 }
 0x8d2   :  { %v3763_v30 = vrot.slane %v3762_v60, 2  ;;  %v3774_v50 = vmul.f32 %v3773_v27, %v3757_v45 }
 0x8d4   :  { %v3764_v47 = vadd.f32 %v3763_v30, %v3762_v60 }
 0x8d6   :  { %v3765_v46 = vrot.slane %v3764_v47, 1 }
 0x8d8   :  { %v3766_v1 = vadd.f32 %v3765_v46, %v3764_v47 }
 0x8da   :  { %v3775_v41 = vmul.f32 %v3773_v27, %v3766_v1 }
 0x8dc   :  { %v3791_v26 = vsel %vm3790_vm15, %v3775_v41, %v3774_v50 }
 0x8dd   :  { %3996 = vmatmul.msk.f32.vlgmr.msra.gmra.mxu1 %vm3442_vm11, %v3791_v26 }
 0x95a   :  { %v3811_v54 = vpop.f32.mrf.mxu1 }
 0x95b   :  { %v3812_v57 = vadd.f32 %v4006_v19, %v3811_v54 }
 0x95d   :  { %3814 = vst [vmem:[#allocation6] sm:$0x3] %v3812_v57 }
 0x95e   :  { %3825 = dma.vmem_to_hbm [thread:$0]  %s3821_s27, 32, %s3823_s14, [#allocation7]  }
 0x95f   :  { %4050 = dma.done.wait [#allocation7], 32  }
 0x960   :  { %4051 = vsyncadd [#allocation7], 4294967264 }
 0x961   :  { %3830 = vsyncpa [#allocation7], 1 }

</bundles_post_ra>
